<compile_context>
chip_gen: v7x
topology: tpu7x:2x2x1
jax: 0.10.0
libtpu: 0.0.40
codegen_flags: <defaults>
</compile_context>

<pallas_src>
import functools
import math

import jax
import jax.numpy as jnp
import numpy as np
from jax.experimental import pallas as pl
from jax.experimental.pallas import tpu as pltpu


def _round_up(x, m):
    return ((x + m - 1) // m) * m


def _cdiv(a, b):
    return -(-a // b)


def _physical_vmem_bytes():
    """Best-effort physical VMEM query; conservative (v7x) fallback."""
    try:
        info = pltpu.get_tpu_info()
        v = getattr(info, "vmem_capacity_bytes", None)
        if v:
            return int(v)
    except Exception:
        pass
    return 64 * 1024 * 1024


# ----------------------------------------------------------------------------
# Filter-bank construction (matches julius.lowpass.LowPassFilters.__init__)
# ----------------------------------------------------------------------------
def make_lowpass_filters(cutoffs, zeros=8.0):
    cutoffs = [float(c) for c in cutoffs]
    positive = [c for c in cutoffs if c > 0.0]
    min_c = min(positive) if positive else 0.5     # guard: all-zero cutoffs
    half_size = int(zeros / min_c / 2)
    n_taps = 2 * half_size + 1
    n = np.arange(n_taps, dtype=np.float64)
    # torch.hann_window(n_taps, periodic=False)
    if n_taps > 1:
        window = 0.5 - 0.5 * np.cos(2.0 * np.pi * n / (n_taps - 1))
    else:
        window = np.ones((1,), np.float64)
    t = np.arange(-half_size, half_size + 1, dtype=np.float64)
    filts = []
    for c in cutoffs:
        if c == 0.0:
            filts.append(np.zeros((n_taps,), np.float64))
        else:
            arg = 2.0 * c * math.pi * t
            safe = np.where(arg == 0.0, 1.0, arg)
            sinc = np.where(arg == 0.0, 1.0, np.sin(safe) / safe)
            f = 2.0 * c * window * sinc
            f = f / f.sum()          # normalize DC gain to 1
            filts.append(f)
    return np.stack(filts).astype(np.float32), half_size   # (F, K), int


# ----------------------------------------------------------------------------
# Shift-invariant banded-Toeplitz weights with the identity (xdec) folded in.
# For a sub-tile window win = xpad[:, base : base + lx_sub + tailw] and output
# sample t in [0, t_sub):
#   high[t] = xpad[base + half_size + t*stride] - sum_k filt[k]*xpad[base+t*stride+k]
#           = sum_u win[u] * W[u, t]
# with  W[u, t] = delta(u == half_size + t*stride) - filt[u - t*stride].
# Columns are laid out as (filter f, offset t) -> column f*t_sub + t so a
# single wide matmul handles all filters.
# ----------------------------------------------------------------------------
def _build_weights(filters_np, stride, half_size, t_sub, tailw):
    n_filters, n_taps = filters_np.shape
    lx_sub = t_sub * stride
    width = lx_sub + tailw
    u = np.arange(width)[:, None]                      # (width, 1)
    t = np.arange(t_sub)[None, :]                      # (1, t_sub)
    k = u - t * stride                                 # (width, t_sub)
    valid = (k >= 0) & (k < n_taps)
    w_low = np.where(valid[None],
                     filters_np[:, np.clip(k, 0, n_taps - 1)], 0.0)   # (F, width, t_sub)
    delta = (u == (half_size + t * stride)).astype(np.float64)        # (width, t_sub)
    w_hp = delta[None] - w_low                                        # high = x - low
    w_full = np.transpose(w_hp, (1, 0, 2)).reshape(width, n_filters * t_sub)
    return w_full.astype(np.float32)                   # (lx_sub + tailw, F*t_sub)


# ----------------------------------------------------------------------------
# Pallas kernel: one (F, b_tile, t_tile) output slab per grid step, built from
# n_sub wide MXU matmuls (one per t_sub-wide output sub-tile).
# ----------------------------------------------------------------------------
def _highpass_kernel(xmain_ref, xtail_ref, wfull_ref, whead_ref, wtail_ref,
                     out_ref, *, n_sub, t_sub, lx_sub, tailw, n_filters):
    prec = jax.lax.Precision.HIGHEST

    # Sub-tiles whose halo still lies inside the main block: ONE wide matmul.
    for s in range(n_sub - 1):
        base = s * lx_sub                                   # static, 128-aligned
        win = xmain_ref[:, base:base + lx_sub + tailw]      # (b_tile, lx_sub+tailw)
        res = jnp.dot(win, wfull_ref[...],
                      preferred_element_type=jnp.float32, precision=prec)
        for f in range(n_filters):
            out_ref[f, :, s * t_sub:(s + 1) * t_sub] = \
                res[:, f * t_sub:(f + 1) * t_sub]

    # Last sub-tile: its halo is the separate narrow block -> split contraction.
    s = n_sub - 1
    base = s * lx_sub
    res = jnp.dot(xmain_ref[:, base:base + lx_sub], whead_ref[...],
                  preferred_element_type=jnp.float32, precision=prec)
    res = res + jnp.dot(xtail_ref[...], wtail_ref[...],
                        preferred_element_type=jnp.float32, precision=prec)
    for f in range(n_filters):
        out_ref[f, :, s * t_sub:(s + 1) * t_sub] = \
            res[:, f * t_sub:(f + 1) * t_sub]


# ----------------------------------------------------------------------------
# Wrapper
# ----------------------------------------------------------------------------
def highpass_filters(x, cutoffs, stride=1, pad=True, zeros=8.0):
    x = jnp.asarray(x, jnp.float32)
    in_shape = x.shape
    seq_len = in_shape[-1]
    batch = int(np.prod(in_shape[:-1])) if len(in_shape) > 1 else 1
    xb = x.reshape(batch, seq_len)

    filters_np, half_size = make_lowpass_filters(cutoffs, zeros)
    n_filters, n_taps = filters_np.shape

    if pad:
        pad_lo = half_size
        t_pad = seq_len + 2 * half_size
    else:
        pad_lo = 0
        t_pad = seq_len
    t_out = (t_pad - n_taps) // stride + 1
    assert t_out >= 1, "input too short for this filter / pad setting"

    # --- tile geometry -------------------------------------------------------
    # Halo width: lane-aligned and >= K - stride so each sub-tile window holds
    # every tap it needs.
    tailw = _round_up(max(n_taps - stride, 1), 128)
    # Guard for the identity fold: the delta column must stay inside the window.
    assert half_size <= tailw + stride - 1
    # Output sub-tile width (lane-dense, and a multiple that keeps tailw | lx).
    t_sub = 256 if tailw <= 256 else tailw
    lx_sub = t_sub * stride
    assert lx_sub % tailw == 0 and tailw <= lx_sub

    b_tile = min(_round_up(batch, 8), 512)
    b_pad = _round_up(batch, b_tile)
    nb = b_pad // b_tile

    bytes_f32 = 4
    weights_bytes = bytes_f32 * n_filters * t_sub * 2 * (lx_sub + tailw)   # resident
    halo_bytes = 2 * bytes_f32 * b_tile * tailw                            # dbl-buffered
    per_sub_bytes = 2 * bytes_f32 * b_tile * (lx_sub + n_filters * t_sub)  # dbl-buf in+out

    phys_vmem = _physical_vmem_bytes()
    tile_budget = min(int(phys_vmem * 0.6), 48 << 20) - weights_bytes - halo_bytes
    n_sub_cap = max(1, tile_budget // max(per_sub_bytes, 1))

    n_sub_total = _cdiv(t_out, t_sub)
    n_sub = int(min(n_sub_total, n_sub_cap, max(1, 4096 // t_sub)))
    if nb == 1 and n_sub_total > 1:
        # keep >= 2 time-grid steps so both v7x TensorCores get work
        n_sub = min(n_sub, _cdiv(n_sub_total, 2))
    n_sub = max(1, n_sub)

    t_tile = n_sub * t_sub
    lx = t_tile * stride
    nt = _cdiv(t_out, t_tile)
    t_out_pad = nt * t_tile
    tail_bps = lx // tailw                       # tail view block-index multiplier

    # --- single fused pad (replicate + batch + alignment) --------------------
    x_len = max(nt * lx + tailw, t_pad)
    xpad_p = jnp.pad(xb,
                     ((0, b_pad - batch), (pad_lo, x_len - pad_lo - seq_len)),
                     mode="edge")

    # --- weights --------------------------------------------------------------
    w_full_np = _build_weights(filters_np, stride, half_size, t_sub, tailw)
    w_full = jnp.asarray(w_full_np)              # (lx_sub+tailw, F*t_sub)
    w_head = jnp.asarray(w_full_np[:lx_sub])     # (lx_sub, F*t_sub)
    w_tail = jnp.asarray(w_full_np[lx_sub:])     # (tailw, F*t_sub)

    # --- VMEM limit from the actual footprint ---------------------------------
    footprint = (weights_bytes + halo_bytes
                 + 2 * bytes_f32 * b_tile * lx                       # xmain dbl-buf
                 + 2 * bytes_f32 * n_filters * b_tile * t_tile       # out dbl-buf
                 + bytes_f32 * b_tile * n_filters * t_sub)           # dot result
    vmem_limit = int(min(max(footprint + (8 << 20), 16 << 20),
                         int(phys_vmem * 0.85), 96 << 20))

    kernel = functools.partial(_highpass_kernel, n_sub=n_sub, t_sub=t_sub,
                               lx_sub=lx_sub, tailw=tailw, n_filters=n_filters)

    out = pl.pallas_call(
        kernel,
        out_shape=jax.ShapeDtypeStruct((n_filters, b_pad, t_out_pad), jnp.float32),
        grid=(nb, nt),
        in_specs=[
            # main input block covering xpad[:, j*lx : (j+1)*lx)
            pl.BlockSpec((b_tile, lx), lambda i, j: (i, j)),
            # narrow halo block covering xpad[:, (j+1)*lx : (j+1)*lx + tailw)
            pl.BlockSpec((b_tile, tailw), lambda i, j: (i, (j + 1) * tail_bps)),
            # shift-invariant weights (constant index -> resident in VMEM)
            pl.BlockSpec((lx_sub + tailw, n_filters * t_sub), lambda i, j: (0, 0)),
            pl.BlockSpec((lx_sub, n_filters * t_sub), lambda i, j: (0, 0)),
            pl.BlockSpec((tailw, n_filters * t_sub), lambda i, j: (0, 0)),
        ],
        out_specs=pl.BlockSpec((n_filters, b_tile, t_tile),
                               lambda i, j: (0, i, j)),
        compiler_params=pltpu.CompilerParams(
            dimension_semantics=("parallel", "parallel"),
            vmem_limit_bytes=vmem_limit),
    )(xpad_p, xpad_p, w_full, w_head, w_tail)

    out = out[:, :batch, :t_out]
    return out.reshape((n_filters,) + in_shape[:-1] + (t_out,))


# ----------------------------------------------------------------------------
# Pure-JAX reference (for correctness check)
# ----------------------------------------------------------------------------
def highpass_reference(x, cutoffs, stride=1, pad=True, zeros=8.0):
    x = jnp.asarray(x, jnp.float32)
    in_shape = x.shape
    seq_len = in_shape[-1]
    batch = int(np.prod(in_shape[:-1])) if len(in_shape) > 1 else 1
    xb = x.reshape(batch, 1, seq_len)

    filters_np, half_size = make_lowpass_filters(cutoffs, zeros)
    n_filters, n_taps = filters_np.shape
    filters = jnp.asarray(filters_np).reshape(n_filters, 1, n_taps)

    if pad:
        xb_p = jnp.pad(xb, ((0, 0), (0, 0), (half_size, half_size)), mode="edge")
        xdec = xb[:, 0, ::stride]
    else:
        xb_p = xb
        xdec = xb[:, 0, half_size:seq_len - half_size:stride]

    lows = jax.lax.conv_general_dilated(
        xb_p, filters, window_strides=(stride,), padding="VALID",
        dimension_numbers=("NCW", "OIW", "NCW"),
        precision=jax.lax.Precision.HIGHEST)          # (B, F, T')
    highs = xdec[:, None, :] - lows                   # (B, F, T')
    highs = jnp.transpose(highs, (1, 0, 2))           # (F, B, T')
    return highs.reshape((n_filters,) + in_shape[:-1] + (highs.shape[-1],))


if __name__ == "__main__":
    key = jax.random.PRNGKey(0)
    cutoffs = [1.0 / 4.0, 3.0 / 8.0]   # half_size = 16, K = 33

    # [*, T] input, small shape: leading dims (2, 3), T = 64
    x = jax.random.normal(key, (2, 3, 64), dtype=jnp.float32)

    # stride=1, pad=True (default path)
    out = highpass_filters(x, cutoffs, stride=1, pad=True, zeros=8.0)
    jax.block_until_ready(out)
    ref = highpass_reference(x, cutoffs, stride=1, pad=True, zeros=8.0)
    assert out.shape == (len(cutoffs), 2, 3, 64), out.shape
    np.testing.assert_allclose(np.asarray(out), np.asarray(ref),
                               rtol=1e-4, atol=1e-4)

    # stride=2, pad=True (decimation + identity fold inside the weights)
    out2 = highpass_filters(x, cutoffs, stride=2, pad=True, zeros=8.0)
    jax.block_until_ready(out2)
    ref2 = highpass_reference(x, cutoffs, stride=2, pad=True, zeros=8.0)
    assert out2.shape == ref2.shape, (out2.shape, ref2.shape)
    np.testing.assert_allclose(np.asarray(out2), np.asarray(ref2),
                               rtol=1e-4, atol=1e-4)

    # pad=False
    out3 = highpass_filters(x, cutoffs, stride=1, pad=False, zeros=8.0)
    jax.block_until_ready(out3)
    ref3 = highpass_reference(x, cutoffs, stride=1, pad=False, zeros=8.0)
    assert out3.shape == ref3.shape, (out3.shape, ref3.shape)
    np.testing.assert_allclose(np.asarray(out3), np.asarray(ref3),
                               rtol=1e-4, atol=1e-4)

    # longer T: exercises multi-sub-tile (wfull path) and multi-grid-step path
    x4 = jax.random.normal(jax.random.PRNGKey(1), (2, 3, 1536), dtype=jnp.float32)
    out4 = highpass_filters(x4, cutoffs, stride=1, pad=True, zeros=8.0)
    jax.block_until_ready(out4)
    ref4 = highpass_reference(x4, cutoffs, stride=1, pad=True, zeros=8.0)
    assert out4.shape == ref4.shape, (out4.shape, ref4.shape)
    np.testing.assert_allclose(np.asarray(out4), np.asarray(ref4),
                               rtol=1e-4, atol=1e-4)

    print("KERNEL_OK")
</pallas_src>

<mosaic_0001>
module attributes {stable_mosaic.version = 11 : i64} {
  func.func @_highpass_kernel(%arg0: i32, %arg1: i32, %arg2: memref<8x256xf32, #tpu.memory_space<vmem>>, %arg3: memref<8x128xf32, #tpu.memory_space<vmem>>, %arg4: memref<384x512xf32, #tpu.memory_space<vmem>>, %arg5: memref<256x512xf32, #tpu.memory_space<vmem>>, %arg6: memref<128x512xf32, #tpu.memory_space<vmem>>, %arg7: memref<2x8x256xf32, #tpu.memory_space<vmem>>) attributes {dimension_semantics = [#tpu.dimension_semantics<parallel>, #tpu.dimension_semantics<parallel>], iteration_bounds = array<i64: 1, 1>, scalar_prefetch = 0 : i64, scratch_operands = 0 : i64, tpu.core_type = #tpu.core_type<tc>, window_params = [{transform_indices = @transform_0, window_bounds = array<i64: 8, 256>}, {transform_indices = @transform_1, window_bounds = array<i64: 8, 128>}, {pipeline_mode = #tpu.pipeline_mode<synchronous>, transform_indices = @transform_2, window_bounds = array<i64: 384, 512>}, {pipeline_mode = #tpu.pipeline_mode<synchronous>, transform_indices = @transform_3, window_bounds = array<i64: 256, 512>}, {pipeline_mode = #tpu.pipeline_mode<synchronous>, transform_indices = @transform_4, window_bounds = array<i64: 128, 512>}, {transform_indices = @transform_5, window_bounds = array<i64: 2, 8, 256>}]} {
    %c0 = arith.constant 0 : index
    %c0_0 = arith.constant 0 : index
    %0 = vector.load %arg2[%c0, %c0_0] : memref<8x256xf32, #tpu.memory_space<vmem>>, vector<8x256xf32>
    %c0_1 = arith.constant 0 : index
    %c0_2 = arith.constant 0 : index
    %1 = vector.load %arg5[%c0_1, %c0_2] : memref<256x512xf32, #tpu.memory_space<vmem>>, vector<256x512xf32>
    %cst = arith.constant dense<0.000000e+00> : vector<8x512xf32>
    %2 = tpu.matmul %0, %1, %cst {dimension_numbers = #tpu.dot_dimension_numbers<[1], [0], [0], [1], [0, 0, 1, 1], [], []>, precision = #tpu.contract_precision<fp32>} : vector<8x256xf32>, vector<256x512xf32>, vector<8x512xf32> -> vector<8x512xf32>
    %c0_3 = arith.constant 0 : index
    %c0_4 = arith.constant 0 : index
    %3 = vector.load %arg3[%c0_3, %c0_4] : memref<8x128xf32, #tpu.memory_space<vmem>>, vector<8x128xf32>
    %c0_5 = arith.constant 0 : index
    %c0_6 = arith.constant 0 : index
    %4 = vector.load %arg6[%c0_5, %c0_6] : memref<128x512xf32, #tpu.memory_space<vmem>>, vector<128x512xf32>
    %cst_7 = arith.constant dense<0.000000e+00> : vector<8x512xf32>
    %5 = tpu.matmul %3, %4, %cst_7 {dimension_numbers = #tpu.dot_dimension_numbers<[1], [0], [0], [1], [0, 0, 1, 1], [], []>, precision = #tpu.contract_precision<fp32>} : vector<8x128xf32>, vector<128x512xf32>, vector<8x512xf32> -> vector<8x512xf32>
    %6 = arith.addf %2, %5 : vector<8x512xf32>
    %7 = vector.extract_strided_slice %6 {offsets = [0, 0], sizes = [8, 256], strides = [1, 1]} : vector<8x512xf32> to vector<8x256xf32>
    %c0_8 = arith.constant 0 : index
    %c0_9 = arith.constant 0 : index
    %c0_10 = arith.constant 0 : index
    %8 = vector.load %arg7[%c0_8, %c0_9, %c0_10] : memref<2x8x256xf32, #tpu.memory_space<vmem>>, vector<1x8x256xf32>
    %9 = vector.shape_cast %8 : vector<1x8x256xf32> to vector<8x256xf32>
    %10 = vector.shape_cast %7 : vector<8x256xf32> to vector<1x8x256xf32>
    tpu.vector_store %arg7[%c0_8, %c0_9, %c0_10], %10 {strides = array<i32>} : memref<2x8x256xf32, #tpu.memory_space<vmem>>, vector<1x8x256xf32>,
    %11 = vector.extract_strided_slice %6 {offsets = [0, 256], sizes = [8, 256], strides = [1, 1]} : vector<8x512xf32> to vector<8x256xf32>
    %c1 = arith.constant 1 : index
    %c0_11 = arith.constant 0 : index
    %c0_12 = arith.constant 0 : index
    %12 = vector.load %arg7[%c1, %c0_11, %c0_12] : memref<2x8x256xf32, #tpu.memory_space<vmem>>, vector<1x8x256xf32>
    %13 = vector.shape_cast %12 : vector<1x8x256xf32> to vector<8x256xf32>
    %14 = vector.shape_cast %11 : vector<8x256xf32> to vector<1x8x256xf32>
    tpu.vector_store %arg7[%c1, %c0_11, %c0_12], %14 {strides = array<i32>} : memref<2x8x256xf32, #tpu.memory_space<vmem>>, vector<1x8x256xf32>,
    return
  }
  func.func @transform_0(%arg0: i32, %arg1: i32) -> (i32, i32) {
    %c0_i32 = arith.constant 0 : i32
    return %arg0, %arg1 : i32, i32
  }
  func.func @transform_1(%arg0: i32, %arg1: i32) -> (i32, i32) {
    %c1_i32 = arith.constant 1 : i32
    %0 = arith.addi %arg1, %c1_i32 : i32
    %c2_i32 = arith.constant 2 : i32
    %1 = arith.muli %0, %c2_i32 : i32
    %c0_i32 = arith.constant 0 : i32
    return %arg0, %1 : i32, i32
  }
  func.func @transform_2(%arg0: i32, %arg1: i32) -> (i32, i32) {
    %c0_i32 = arith.constant 0 : i32
    %c0_i32_0 = arith.constant 0 : i32
    %c0_i32_1 = arith.constant 0 : i32
    return %c0_i32, %c0_i32_0 : i32, i32
  }
  func.func @transform_3(%arg0: i32, %arg1: i32) -> (i32, i32) {
    %c0_i32 = arith.constant 0 : i32
    %c0_i32_0 = arith.constant 0 : i32
    %c0_i32_1 = arith.constant 0 : i32
    return %c0_i32, %c0_i32_0 : i32, i32
  }
  func.func @transform_4(%arg0: i32, %arg1: i32) -> (i32, i32) {
    %c0_i32 = arith.constant 0 : i32
    %c0_i32_0 = arith.constant 0 : i32
    %c0_i32_1 = arith.constant 0 : i32
    return %c0_i32, %c0_i32_0 : i32, i32
  }
  func.func @transform_5(%arg0: i32, %arg1: i32) -> (i32, i32, i32) {
    %c0_i32 = arith.constant 0 : i32
    %c0_i32_0 = arith.constant 0 : i32
    return %c0_i32, %arg0, %arg1 : i32, i32, i32
  }
}

</mosaic_0001>

<bundles_post_ra>
// kernel: tpu_custom_call.1
= control target key start
LH: loop header
LB: loop body
LE: loop exit
PB: predicated region body
PF: predicated region fallthrough
CT: control target
= control target key end

     0   :  { %10 = vsyncpa [#allocation3], 0  ;;  %s8813_s0 = inlined_call_operand.hbm [shape: f32[8,384], index: 0, kind: input, shape index: {}]   ;;  %s8814_s1 = inlined_call_operand.hbm [shape: f32[8,384], index: 1, kind: input, shape index: {}]   ;;  %s8815_s2 = inlined_call_operand.hbm [shape: f32[384,512], index: 2, kind: input, shape index: {}]   ;;  %s8816_s3 = inlined_call_operand.hbm [shape: f32[256,512], index: 3, kind: input, shape index: {}]   ;;  %s8817_s4 = inlined_call_operand.hbm [shape: f32[128,512], index: 4, kind: input, shape index: {}]   ;;  %s8818_s5 = inlined_call_operand.hbm [shape: f32[2,8,256], index: 5, kind: output, shape index: {}]  }
   0x1   :  { %11 = vsyncpa [#allocation6], 0 }
   0x2   :  { %12 = vsyncpa [#allocation9], 0  ;;  %s4588_s20 = scalar_lea.hbm %s8814_s1, 256 }
   0x3   :  { %13 = vsyncpa [#allocation4], 0  ;;  %s5939_s21 = smov [#allocation5]   ;;  %s5820_s25 = scalar_lea.hbm %s8814_s1, 384 }
   0x4   :  { %s34_s22 = sshll.u32 %s5939_s21, 4  ;;  %p5797_p0 = scmp.ne.s32.totalorder %s4588_s20, %s5820_s25  ;;  %s35_s22 = int_to_ptr.vmem [resolvable:$true] %s34_s22 }
   0x5   :  { %p5799_p1 = scmp.lt.u32.totalorder %s4588_s20, %s8814_s1  ;;  %p5800_p2 = scmp.lt.u32.totalorder %s5820_s25, %s5820_s25 }
   0x6   :  { %p5802_p4 = scmp.lt.u32.totalorder %s5820_s25, %s4588_s20 }
   0x7   :  { %p5801_p3 = por %p5800_p2, %p5799_p1 }
   0x9   :  { %p5803_p5 = por %p5802_p4, %p5801_p3 }
   0xb   :  { %p5804_p6 = pnand %p5803_p5, %p5797_p0 }
   0xd   :  { %5807 = shalt.err (!%p5804_p6)
}
   0xe   :  { %s5808_s28 = scalar_lea.vmem %s35_s22, 128  ;;  %p5813_p8 = scmp.lt.s32.totalorder %s35_s22, %s35_s22 }
   0xf   :  { %p5809_p7 = scmp.ne.s32.totalorder %s35_s22, %s5808_s28  ;;  %p5814_p9 = scmp.lt.s32.totalorder %s5808_s28, %s5808_s28 }
  0x11   :  { %p5815_p10 = por %p5814_p9, %p5813_p8 }
  0x13   :  { %p5816_p11 = pnand %p5815_p10, %p5809_p7 }
  0x15   :  { %5819 = shalt.err (!%p5816_p11)
}
  0x16   :  { %37 = dma.hbm_to_vmem [thread:$0]  %s4588_s20, 128, %s35_s22, [#allocation6]  }
  0x17   :  { %s5940_s29 = smov [#allocation8]   ;;  %s5941_s6 = smov [#allocation2]  }
  0x18   :  { %s55_s30 = sshll.u32 %s5940_s29, 4  ;;  %s20_s7 = sshll.u32 %s5941_s6, 4  ;;  %s56_s30 = int_to_ptr.vmem [resolvable:$true] %s55_s30  ;;  %s5989_s7 = int_to_ptr.vmem [resolvable:$true] %s20_s7 }
  0x19   :  { %s5821_s9 = scalar_lea.hbm %s8816_s3, 16384 }
  0x1a   :  { %p5822_p12 = scmp.ne.s32.totalorder %s8816_s3, %s5821_s9  ;;  %p5825_p13 = scmp.lt.u32.totalorder %s5821_s9, %s8816_s3 }
  0x1c   :  { %p5827_p0 = pnand %p5825_p13, %p5822_p12 }
  0x1e   :  { %5830 = shalt.err (!%p5827_p0)
}
  0x1f   :  { %s5831_s14 = scalar_lea.vmem %s56_s30, 16384  ;;  %p5836_p2 = scmp.lt.s32.totalorder %s56_s30, %s56_s30 }
  0x20   :  { %p5832_p1 = scmp.ne.s32.totalorder %s56_s30, %s5831_s14  ;;  %p5837_p3 = scmp.lt.s32.totalorder %s5831_s14, %s5831_s14 }
  0x22   :  { %p5838_p4 = por %p5837_p3, %p5836_p2 }
  0x24   :  { %p5839_p5 = pnand %p5838_p4, %p5832_p1 }
  0x26   :  { %5842 = shalt.err (!%p5839_p5)
}
  0x27   :  { %s5942_s15 = smov 512   ;;  %s5943_s16 = smov 32  }
  0x28   :  { %61 = dma.hbm_to_vmem [thread:$0]  %s8816_s3, 16384, %s56_s30, [#allocation9], %s5942_s15, %s5942_s15, %s5943_s16  }
  0x29   :  { %s5843_s21 = scalar_lea.hbm %s8813_s0, 256  ;;  %s5845_s26 = scalar_lea.hbm %s8813_s0, 384 }
  0x2a   :  { %p5844_p6 = scmp.ne.s32.totalorder %s8813_s0, %s5843_s21  ;;  %p5846_p7 = scmp.lt.u32.totalorder %s5845_s26, %s5843_s21 }
  0x2b   :  { %p5847_p8 = scmp.lt.u32.totalorder %s5843_s21, %s8813_s0 }
  0x2d   :  { %p5848_p9 = por %p5847_p8, %p5846_p7 }
  0x2f   :  { %p5849_p10 = pnand %p5848_p9, %p5844_p6 }
  0x31   :  { %5852 = shalt.err (!%p5849_p10)
}
  0x32   :  { %s5853_s3 = scalar_lea.vmem %s5989_s7, 256  ;;  %p5858_p12 = scmp.lt.s32.totalorder %s5989_s7, %s5989_s7 }
  0x33   :  { %p5854_p11 = scmp.ne.s32.totalorder %s5989_s7, %s5853_s3  ;;  %p5859_p13 = scmp.lt.s32.totalorder %s5853_s3, %s5853_s3 }
  0x35   :  { %p5860_p0 = por %p5859_p13, %p5858_p12 }
  0x37   :  { %p5861_p1 = pnand %p5860_p0, %p5854_p11 }
  0x39   :  { %5864 = shalt.err (!%p5861_p1)
}
  0x3a   :  { %23 = dma.hbm_to_vmem [thread:$0]  %s8813_s0, 256, %s5989_s7, [#allocation3]  }
  0x3b   :  { %s5944_s6 = smov [#allocation7]   ;;  %s5945_s8 = smov [#allocation10]  }
  0x3c   :  { %s43_s1 = sshll.u32 %s5944_s6, 4  ;;  %s67_s9 = sshll.u32 %s5945_s8, 4  ;;  %s44_s1 = int_to_ptr.vmem [resolvable:$true] %s43_s1  ;;  %s6026_s9 = int_to_ptr.vmem [resolvable:$true] %s67_s9 }
  0x3d   :  { %s5865_s12 = scalar_lea.hbm %s8815_s2, 24576 }
  0x3e   :  { %p5866_p2 = scmp.ne.s32.totalorder %s8815_s2, %s5865_s12  ;;  %p5869_p3 = scmp.lt.u32.totalorder %s5865_s12, %s8815_s2 }
  0x40   :  { %p5871_p4 = pnand %p5869_p3, %p5866_p2 }
  0x42   :  { %5874 = shalt.err (!%p5871_p4)
}
  0x43   :  { %s5875_s0 = scalar_lea.vmem %s44_s1, 24576  ;;  %p5880_p6 = scmp.lt.s32.totalorder %s44_s1, %s44_s1 }
  0x44   :  { %p5876_p5 = scmp.ne.s32.totalorder %s44_s1, %s5875_s0  ;;  %p5881_p7 = scmp.lt.s32.totalorder %s5875_s0, %s5875_s0 }
  0x46   :  { %p5882_p8 = por %p5881_p7, %p5880_p6 }
  0x48   :  { %p5883_p9 = pnand %p5882_p8, %p5876_p5 }
  0x4a   :  { %5886 = shalt.err (!%p5883_p9)
}
  0x4b   :  { %49 = dma.hbm_to_vmem [thread:$0]  %s8815_s2, 24576, %s44_s1, [#allocation6], %s5942_s15, %s5942_s15, %s5943_s16  }
  0x4c   :  { %s5887_s22 = scalar_lea.hbm %s8817_s4, 8192 }
  0x4d   :  { %p5888_p10 = scmp.ne.s32.totalorder %s8817_s4, %s5887_s22  ;;  %p5891_p11 = scmp.lt.u32.totalorder %s5887_s22, %s8817_s4 }
  0x4f   :  { %p5893_p12 = pnand %p5891_p11, %p5888_p10 }
  0x51   :  { %5896 = shalt.err (!%p5893_p12)
}
  0x52   :  { %s5897_s27 = scalar_lea.vmem %s6026_s9, 8192  ;;  %p5902_p0 = scmp.lt.s32.totalorder %s6026_s9, %s6026_s9 }
  0x53   :  { %p5898_p13 = scmp.ne.s32.totalorder %s6026_s9, %s5897_s27  ;;  %p5903_p1 = scmp.lt.s32.totalorder %s5897_s27, %s5897_s27 }
  0x55   :  { %p5904_p2 = por %p5903_p1, %p5902_p0 }
  0x57   :  { %p5905_p3 = pnand %p5904_p2, %p5898_p13 }
  0x59   :  { %5908 = shalt.err (!%p5905_p3)
}
  0x5a   :  { %73 = dma.hbm_to_vmem [thread:$0]  %s8817_s4, 8192, %s6026_s9, [#allocation9], %s5942_s15, %s5942_s15, %s5943_s16  }
  0x5b   :  { %5931 = dma.done.wait [#allocation3], 256  }
  0x5c   :  { %5932 = vsyncadd [#allocation3], 4294967040 }
  0x5d   :  { %5933 = dma.done.wait [#allocation6], 24704  }
  0x5e   :  { %5934 = vsyncadd [#allocation6], 4294942592 }
  0x5f   :  { %5935 = dma.done.wait [#allocation9], 24576  }
  0x60   :  { %5936 = vsyncadd [#allocation9], 4294942720  ;;  %v8819_v0 = vmov 0.0   ;;  %v223_v1 = vld [vmem:[#allocation10 + $0x8] sm:$0xff]  ;;  %v225_v3 = vld [vmem:[#allocation10 + $0x18] sm:$0xff]  ;;  %s5947_s4 = smov [#allocation11]  }
  0x61   :  { %382 = vmatprep.mubr.f32.mxu0 %v8819_v0  ;;  %1237 = vmatprep.mubr.f32.mxu1 %v8819_v0  ;;  %v227_v2 = vld [vmem:[#allocation10 + $0x28] sm:$0xff]  ;;  %v286_v4 = vand.u32 4294901760, %v223_v1  ;;  %v229_v6 = vld [vmem:[#allocation10 + $0x38] sm:$0xff]  ;;  %v1141_v7 = vand.u32 4294901760, %v225_v3  ;;  %v222_v8 = vld [vmem:[#allocation10] sm:$0xff]  ;;  %s4574_s15 = sshll.u32 %s5947_s4, 4  ;;  %s4575_s15 = int_to_ptr.vmem [resolvable:$true] %s4574_s15 }
  0x62   :  { %v290_v5 = vand.u32 4294901760, %v227_v2  ;;  %v226_v9 = vld [vmem:[#allocation10 + $0x20] sm:$0xff]  ;;  %v1145_v10 = vand.u32 4294901760, %v229_v6  ;;  %v288_v11 = vand.u32 4294901760, %v222_v8  ;;  %v224_v13 = vld [vmem:[#allocation10 + $0x10] sm:$0xff]  ;;  %v231_v15 = vld [vmem:[#allocation10 + $0x48] sm:$0xff]  ;;  %p5914_p5 = scmp.lt.s32.totalorder %s4575_s15, %s4575_s15 }
  0x63   :  { %v292_v12 = vand.u32 4294901760, %v226_v9  ;;  %v228_v14 = vld [vmem:[#allocation10 + $0x30] sm:$0xff]  ;;  %v6067_v17 = vsub.f32 %v223_v1, %v286_v4  ;;  %v6071_v19 = vsub.f32 %v225_v3, %v1141_v7  ;;  %v235_v20 = vld [vmem:[#allocation10 + $0x68] sm:$0xff]  ;;  %v233_v21 = vld [vmem:[#allocation10 + $0x58] sm:$0xff]  ;;  %v1143_v29 = vand.u32 4294901760, %v224_v13  ;;  %s5909_s16 = scalar_lea.vmem %s4575_s15, 512 }
  0x64   :  { %v6065_v16 = vpack.c.bf16 %v290_v5, %v286_v4  ;;  %v6069_v18 = vsub.f32 %v227_v2, %v290_v5  ;;  %v237_v22 = vld [vmem:[#allocation10 + $0x78] sm:$0xff]  ;;  %v6073_v23 = vpack.c.bf16 %v1145_v10, %v1141_v7  ;;  %v6075_v24 = vsub.f32 %v229_v6, %v1145_v10  ;;  %v230_v27 = vld [vmem:[#allocation10 + $0x40] sm:$0xff]  ;;  %v232_v37 = vld [vmem:[#allocation10 + $0x50] sm:$0xff]  ;;  %p5910_p4 = scmp.ne.s32.totalorder %s4575_s15, %s5909_s16  ;;  %p5915_p6 = scmp.lt.s32.totalorder %s5909_s16, %s5909_s16 }
  0x65   :  { %9391 = vst [vmem:[#allocation17_spill] sm:$0xff] %v6067_v17  ;;  %9393 = vst [vmem:[#allocation19_spill] sm:$0xff] %v6071_v19  ;;  %v6077_v25 = vpack.c.bf16 %v292_v12, %v288_v11  ;;  %v6079_v26 = vsub.f32 %v222_v8, %v288_v11  ;;  %v6082_v28 = vsub.f32 %v226_v9, %v292_v12  ;;  %v1147_v30 = vand.u32 4294901760, %v228_v14  ;;  %v234_v32 = vld [vmem:[#allocation10 + $0x60] sm:$0xff]  ;;  %v236_v38 = vld [vmem:[#allocation10 + $0x70] sm:$0xff] }
  0x66   :  { %9390 = vst [vmem:[#allocation16_spill] sm:$0xff] %v6065_v16  ;;  %9392 = vst [vmem:[#allocation18_spill] sm:$0xff] %v6069_v18  ;;  %4590 = vmatprep.subr.bf16.mxu0 %v6065_v16  ;;  %v294_v31 = vand.u32 4294901760, %v231_v15  ;;  %4782 = vmatprep.subr.bf16.mxu1 %v6073_v23  ;;  %v298_v33 = vand.u32 4294901760, %v235_v20  ;;  %v1149_v34 = vand.u32 4294901760, %v233_v21  ;;  %v1153_v35 = vand.u32 4294901760, %v237_v22  ;;  %p5916_p7 = por %p5915_p6, %p5914_p5 }
  0x67   :  { %9394 = vst [vmem:[#allocation20_spill] sm:$0xff] %v6073_v23  ;;  %9395 = vst [vmem:[#allocation21_spill] sm:$0xff] %v6075_v24  ;;  %4592 = vmatpush1.bf16.msra.mxu0 %v6077_v25  ;;  %v296_v36 = vand.u32 4294901760, %v230_v27  ;;  %v6086_v39 = vpack.c.bf16 %v1147_v30, %v1143_v29  ;;  %v6088_v40 = vsub.f32 %v224_v13, %v1143_v29  ;;  %v239_v43 = vld [vmem:[#allocation10 + $0x88] sm:$0xff]  ;;  %v241_v45 = vld [vmem:[#allocation10 + $0x98] sm:$0xff]  ;;  %v300_v52 = vand.u32 4294901760, %v234_v32 }
  0x68   :  { %9396 = vst [vmem:[#allocation22_spill] sm:$0xff] %v6077_v25  ;;  %9397 = vst [vmem:[#allocation23_spill] sm:$0xff] %v6082_v28  ;;  %v6090_v41 = vsub.f32 %v228_v14, %v1147_v30  ;;  %v6092_v42 = vsub.f32 %v231_v15, %v294_v31  ;;  %v243_v44 = vld [vmem:[#allocation10 + $0xa8] sm:$0xff]  ;;  %v6094_v46 = vpack.c.bf16 %v298_v33, %v294_v31  ;;  %v245_v50 = vld [vmem:[#allocation10 + $0xb8] sm:$0xff]  ;;  %v1151_v54 = vand.u32 4294901760, %v232_v37  ;;  %p5917_p8 = pnand %p5916_p7, %p5910_p4 }
  0x69   :  { %9398 = vst [vmem:[#allocation24_spill] sm:$0xff] %v6086_v39  ;;  %v6096_v47 = vsub.f32 %v235_v20, %v298_v33  ;;  %v6098_v48 = vpack.c.bf16 %v1153_v35, %v1149_v34  ;;  %v6100_v49 = vsub.f32 %v233_v21, %v1149_v34  ;;  %4784 = vmatpush1.bf16.msra.mxu1 %v6086_v39  ;;  %v1155_v55 = vand.u32 4294901760, %v236_v38  ;;  %v238_v59 = vld [vmem:[#allocation10 + $0x80] sm:$0xff]  ;;  %v240_v2 = vld [vmem:[#allocation10 + $0x90] sm:$0xff]  ;;  %v247_v4 = vld [vmem:[#allocation10 + $0xc8] sm:$0xff] }
  0x6a   :  { %9399 = vst [vmem:[#allocation25_spill] sm:$0xff] %v6094_v46  ;;  %v6103_v51 = vsub.f32 %v237_v22, %v1153_v35  ;;  %v6105_v53 = vsub.f32 %v230_v27, %v296_v36  ;;  %4594 = vmatprep.subr.bf16.mxu0 %v6094_v46  ;;  %v302_v56 = vand.u32 4294901760, %v239_v43  ;;  %v306_v57 = vand.u32 4294901760, %v243_v44  ;;  %v242_v60 = vld [vmem:[#allocation10 + $0xa0] sm:$0xff]  ;;  %v244_v3 = vld [vmem:[#allocation10 + $0xb0] sm:$0xff]  ;;  %v251_v9 = vld [vmem:[#allocation10 + $0xe8] sm:$0xff] }
  0x6b   :  { %9400 = vst [vmem:[#allocation26_spill] sm:$0xff] %v6098_v48  ;;  %4786 = vmatprep.subr.bf16.mxu1 %v6098_v48  ;;  %v1157_v58 = vand.u32 4294901760, %v241_v45  ;;  %v6109_v61 = vpack.c.bf16 %v300_v52, %v296_v36  ;;  %v6111_v62 = vsub.f32 %v234_v32, %v300_v52  ;;  %v6113_v63 = vsub.f32 %v232_v37, %v1151_v54  ;;  %v249_v10 = vld [vmem:[#allocation10 + $0xd8] sm:$0xff]  ;;  %v246_v33 = vld [vmem:[#allocation10 + $0xc0] sm:$0xff]  ;;  %v264_v39 = vld [vmem:[#allocation10 + $0x150] sm:$0xff] }
  0x6c   :  { %v1161_v1 = vand.u32 4294901760, %v245_v50  ;;  %v6115_v5 = vpack.c.bf16 %v1155_v55, %v1151_v54  ;;  %v6117_v6 = vsub.f32 %v236_v38, %v1155_v55  ;;  %v6119_v7 = vpack.c.bf16 %v306_v57, %v302_v56  ;;  %v253_v11 = vld [vmem:[#allocation10 + $0xf8] sm:$0xff]  ;;  %v250_v38 = vld [vmem:[#allocation10 + $0xe0] sm:$0xff]  ;;  %v255_v55 = vld [vmem:[#allocation10 + $0x108] sm:$0xff] }
  0x6d   :  { %9401 = vst [vmem:[#allocation27_spill] sm:$0xff] %v6109_v61  ;;  %v6121_v8 = vsub.f32 %v239_v43, %v302_v56  ;;  %4596 = vmatpush1.bf16.msra.mxu0 %v6109_v61  ;;  %v6124_v12 = vsub.f32 %v243_v44, %v306_v57  ;;  %v6128_v14 = vsub.f32 %v241_v45, %v1157_v58  ;;  %v304_v20 = vand.u32 4294901760, %v238_v59  ;;  %v248_v43 = vld [vmem:[#allocation10 + $0xd0] sm:$0xff]  ;;  %v259_v56 = vld [vmem:[#allocation10 + $0x128] sm:$0xff]  ;;  %v257_v57 = vld [vmem:[#allocation10 + $0x118] sm:$0xff] }
  0x6e   :  { %9402 = vst [vmem:[#allocation28_spill] sm:$0xff] %v6115_v5  ;;  %9403 = vst [vmem:[#allocation29_spill] sm:$0xff] %v6119_v7  ;;  %v6126_v13 = vpack.c.bf16 %v1161_v1, %v1157_v58  ;;  %v6130_v15 = vsub.f32 %v245_v50, %v1161_v1  ;;  %4788 = vmatpush1.bf16.msra.mxu1 %v6115_v5  ;;  %4598 = vmatprep.subr.bf16.mxu0 %v6119_v7  ;;  %v308_v21 = vand.u32 4294901760, %v242_v60  ;;  %v252_v44 = vld [vmem:[#allocation10 + $0xf0] sm:$0xff]  ;;  %v258_v0 = vld [vmem:[#allocation10 + $0x120] sm:$0xff] }
  0x6f   :  { %v1159_v22 = vand.u32 4294901760, %v240_v2  ;;  %v1163_v27 = vand.u32 4294901760, %v244_v3  ;;  %v310_v29 = vand.u32 4294901760, %v247_v4  ;;  %v314_v30 = vand.u32 4294901760, %v251_v9  ;;  %v265_v48 = vld [vmem:[#allocation10 + $0x158] sm:$0xff]  ;;  %v268_v16 = vld [vmem:[#allocation10 + $0x170] sm:$0xff] }
  0x70   :  { %9404 = vst [vmem:[#allocation30_spill] sm:$0xff] %v6126_v13  ;;  %4790 = vmatprep.subr.bf16.mxu1 %v6126_v13  ;;  %v1165_v31 = vand.u32 4294901760, %v249_v10  ;;  %v1169_v32 = vand.u32 4294901760, %v253_v11  ;;  %v6135_v34 = vpack.c.bf16 %v308_v21, %v304_v20  ;;  %v6137_v35 = vsub.f32 %v238_v59, %v304_v20  ;;  %v267_v13 = vld [vmem:[#allocation10 + $0x168] sm:$0xff] }
  0x71   :  { %v6139_v36 = vsub.f32 %v242_v60, %v308_v21  ;;  %v6141_v37 = vpack.c.bf16 %v1163_v27, %v1159_v22  ;;  %v6143_v45 = vsub.f32 %v240_v2, %v1159_v22  ;;  %v6145_v50 = vsub.f32 %v244_v3, %v1163_v27  ;;  %v261_v21 = vld [vmem:[#allocation10 + $0x138] sm:$0xff] }
  0x72   :  { %9405 = vst [vmem:[#allocation31_spill] sm:$0xff] %v6135_v34  ;;  %v6147_v52 = vpack.c.bf16 %v314_v30, %v310_v29  ;;  %v6149_v54 = vsub.f32 %v247_v4, %v310_v29  ;;  %4600 = vmatpush1.bf16.msra.mxu0 %v6135_v34  ;;  %v6153_v58 = vsub.f32 %v251_v9, %v314_v30  ;;  %v312_v1 = vand.u32 4294901760, %v246_v33  ;;  %v254_v30 = vld [vmem:[#allocation10 + $0x100] sm:$0xff]  ;;  %v263_v34 = vld [vmem:[#allocation10 + $0x148] sm:$0xff] }
  0x73   :  { %9406 = vst [vmem:[#allocation32_spill] sm:$0xff] %v6141_v37  ;;  %4792 = vmatpush1.bf16.msra.mxu1 %v6141_v37  ;;  %v6155_v59 = vpack.c.bf16 %v1169_v32, %v1165_v31  ;;  %v6157_v60 = vsub.f32 %v249_v10, %v1165_v31  ;;  %v6160_v2 = vsub.f32 %v253_v11, %v1169_v32  ;;  %v316_v3 = vand.u32 4294901760, %v250_v38  ;;  %v256_v10 = vld [vmem:[#allocation10 + $0x110] sm:$0xff] }
  0x74   :  { %9407 = vst [vmem:[#allocation33_spill] sm:$0xff] %v6147_v52  ;;  %4602 = vmatprep.subr.bf16.mxu0 %v6147_v52  ;;  %v1167_v4 = vand.u32 4294901760, %v248_v43  ;;  %v1171_v20 = vand.u32 4294901760, %v252_v44  ;;  %v6163_v22 = vsub.f32 %v246_v33, %v312_v1  ;;  %v318_v27 = vand.u32 4294901760, %v255_v55  ;;  %v260_v52 = vld [vmem:[#allocation10 + $0x130] sm:$0xff] }
  0x75   :  { %9408 = vst [vmem:[#allocation34_spill] sm:$0xff] %v6155_v59  ;;  %4794 = vmatprep.subr.bf16.mxu1 %v6155_v59  ;;  %v322_v9 = vand.u32 4294901760, %v259_v56  ;;  %v1173_v29 = vand.u32 4294901760, %v257_v57  ;;  %v6165_v31 = vpack.c.bf16 %v316_v3, %v312_v1  ;;  %v6167_v37 = vsub.f32 %v250_v38, %v316_v3 }
  0x76   :  { %v6169_v11 = vpack.c.bf16 %v1171_v20, %v1167_v4  ;;  %v6171_v32 = vsub.f32 %v248_v43, %v1167_v4  ;;  %v6173_v59 = vsub.f32 %v252_v44, %v1171_v20  ;;  %v6177_v5 = vsub.f32 %v255_v55, %v318_v27  ;;  %v269_v55 = vld [vmem:[#allocation10 + $0x178] sm:$0xff] }
  0x77   :  { %9409 = vst [vmem:[#allocation35_spill] sm:$0xff] %v6165_v31  ;;  %v6175_v33 = vpack.c.bf16 %v322_v9, %v318_v27  ;;  %v6179_v7 = vsub.f32 %v259_v56, %v322_v9  ;;  %4604 = vmatpush1.bf16.msra.mxu0 %v6165_v31  ;;  %v1177_v38 = vand.u32 4294901760, %v261_v21  ;;  %v6183_v1 = vsub.f32 %v257_v57, %v1173_v29  ;;  %v262_v57 = vld [vmem:[#allocation10 + $0x140] sm:$0xff] }
  0x78   :  { %9410 = vst [vmem:[#allocation36_spill] sm:$0xff] %v6169_v11  ;;  %9411 = vst [vmem:[#allocation37_spill] sm:$0xff] %v6171_v32  ;;  %4796 = vmatpush1.bf16.msra.mxu1 %v6169_v11  ;;  %v320_v43 = vand.u32 4294901760, %v254_v30  ;;  %v324_v3 = vand.u32 4294901760, %v258_v0  ;;  %v1175_v4 = vand.u32 4294901760, %v256_v10  ;;  %v1179_v44 = vand.u32 4294901760, %v260_v52 }
  0x79   :  { %9412 = vst [vmem:[#allocation38_spill] sm:$0xff] %v6173_v59  ;;  %9413 = vst [vmem:[#allocation39_spill] sm:$0xff] %v6175_v33  ;;  %4606 = vmatprep.subr.bf16.mxu0 %v6175_v33  ;;  %v326_v20 = vand.u32 4294901760, %v263_v34  ;;  %v330_v61 = vand.u32 4294901760, %v267_v13  ;;  %v6186_v27 = vpack.c.bf16 %v1177_v38, %v1173_v29  ;;  %v6188_v56 = vsub.f32 %v261_v21, %v1177_v38  ;;  %v266_v31 = vld [vmem:[#allocation10 + $0x160] sm:$0xff]  ;;  %v271_v29 = vld [vmem:[#allocation10 + $0x188] sm:$0xff] }
  0x7a   :  { %9414 = vst [vmem:[#allocation40_spill] sm:$0xff] %v6177_v5  ;;  %9415 = vst [vmem:[#allocation41_spill] sm:$0xff] %v6179_v7  ;;  %v6190_v9 = vpack.c.bf16 %v324_v3, %v320_v43  ;;  %v6192_v11 = vsub.f32 %v254_v30, %v320_v43  ;;  %v6194_v46 = vsub.f32 %v258_v0, %v324_v3  ;;  %v1181_v0 = vand.u32 4294901760, %v265_v48 }
  0x7b   :  { %9416 = vst [vmem:[#allocation42_spill] sm:$0xff] %v6183_v1  ;;  %9417 = vst [vmem:[#allocation43_spill] sm:$0xff] %v6186_v27  ;;  %v6196_v33 = vpack.c.bf16 %v1179_v44, %v1175_v4  ;;  %v6198_v25 = vsub.f32 %v256_v10, %v1175_v4  ;;  %v6200_v23 = vsub.f32 %v260_v52, %v1179_v44  ;;  %v275_v1 = vld [vmem:[#allocation10 + $0x1a8] sm:$0xff]  ;;  %4798 = vmatprep.subr.bf16.mxu1 %v6186_v27 }
  0x7c   :  { %9418 = vst [vmem:[#allocation44_spill] sm:$0xff] %v6188_v56  ;;  %9419 = vst [vmem:[#allocation45_spill] sm:$0xff] %v6190_v9  ;;  %4608 = vmatpush1.bf16.msra.mxu0 %v6190_v9  ;;  %v6204_v21 = vpack.c.bf16 %v330_v61, %v326_v20  ;;  %v6206_v30 = vsub.f32 %v263_v34, %v326_v20  ;;  %v6208_v38 = vsub.f32 %v267_v13, %v330_v61  ;;  %v283_v56 = vld [vmem:[#allocation10 + $0x1e8] sm:$0xff] }
  0x7d   :  { %9420 = vst [vmem:[#allocation46_spill] sm:$0xff] %v6192_v11  ;;  %9421 = vst [vmem:[#allocation47_spill] sm:$0xff] %v6194_v46  ;;  %4800 = vmatpush1.bf16.msra.mxu1 %v6196_v33  ;;  %v1185_v10 = vand.u32 4294901760, %v269_v55  ;;  %v328_v43 = vand.u32 4294901760, %v262_v57  ;;  %v332_v52 = vand.u32 4294901760, %v266_v31  ;;  %v1183_v3 = vand.u32 4294901760, %v264_v39 }
  0x7e   :  { %9422 = vst [vmem:[#allocation48_spill] sm:$0xff] %v6196_v33  ;;  %9423 = vst [vmem:[#allocation49_spill] sm:$0xff] %v6198_v25  ;;  %4610 = vmatprep.subr.bf16.mxu0 %v6204_v21  ;;  %v6212_v4 = vsub.f32 %v265_v48, %v1181_v0  ;;  %v1187_v44 = vand.u32 4294901760, %v268_v16  ;;  %v334_v27 = vand.u32 4294901760, %v271_v29  ;;  %v338_v9 = vand.u32 4294901760, %v275_v1  ;;  %v277_v25 = vld [vmem:[#allocation10 + $0x1b8] sm:$0xff] }
  0x7f   :  { %9424 = vst [vmem:[#allocation50_spill] sm:$0xff] %v6200_v23  ;;  %9425 = vst [vmem:[#allocation51_spill] sm:$0xff] %v6204_v21  ;;  %v273_v23 = vld [vmem:[#allocation10 + $0x198] sm:$0xff]  ;;  %v6214_v34 = vpack.c.bf16 %v1185_v10, %v1181_v0  ;;  %v6216_v61 = vsub.f32 %v269_v55, %v1185_v10  ;;  %v6218_v13 = vpack.c.bf16 %v332_v52, %v328_v43  ;;  %v270_v33 = vld [vmem:[#allocation10 + $0x180] sm:$0xff] }
  0x80   :  { %9426 = vst [vmem:[#allocation52_spill] sm:$0xff] %v6206_v30  ;;  %9427 = vst [vmem:[#allocation53_spill] sm:$0xff] %v6208_v38  ;;  %v6220_v20 = vsub.f32 %v262_v57, %v328_v43  ;;  %v274_v38 = vld [vmem:[#allocation10 + $0x1a0] sm:$0xff]  ;;  %v272_v30 = vld [vmem:[#allocation10 + $0x190] sm:$0xff]  ;;  %v6222_v46 = vsub.f32 %v266_v31, %v332_v52  ;;  %v6224_v48 = vpack.c.bf16 %v1187_v44, %v1183_v3  ;;  %v1189_v31 = vand.u32 4294901760, %v273_v23 }
  0x81   :  { %9428 = vst [vmem:[#allocation54_spill] sm:$0xff] %v6212_v4  ;;  %9429 = vst [vmem:[#allocation55_spill] sm:$0xff] %v6214_v34  ;;  %v6226_v21 = vsub.f32 %v264_v39, %v1183_v3  ;;  %v6228_v4 = vsub.f32 %v268_v16, %v1187_v44  ;;  %v276_v11 = vld [vmem:[#allocation10 + $0x1b0] sm:$0xff]  ;;  %v279_v0 = vld [vmem:[#allocation10 + $0x1c8] sm:$0xff]  ;;  %4802 = vmatprep.subr.bf16.mxu1 %v6214_v34  ;;  %4612 = vmatpush1.bf16.msra.mxu0 %v6218_v13  ;;  %v1193_v39 = vand.u32 4294901760, %v277_v25 }
  0x82   :  { %9430 = vst [vmem:[#allocation56_spill] sm:$0xff] %v6216_v61  ;;  %9431 = vst [vmem:[#allocation57_spill] sm:$0xff] %v6218_v13  ;;  %v6232_v55 = vpack.c.bf16 %v338_v9, %v334_v27  ;;  %v6234_v57 = vsub.f32 %v271_v29, %v334_v27  ;;  %v6236_v10 = vsub.f32 %v275_v1, %v338_v9  ;;  %4804 = vmatpush1.bf16.msra.mxu1 %v6224_v48 }
  0x83   :  { %9432 = vst [vmem:[#allocation58_spill] sm:$0xff] %v6220_v20  ;;  %9433 = vst [vmem:[#allocation59_spill] sm:$0xff] %v6222_v46  ;;  %v336_v43 = vand.u32 4294901760, %v270_v33  ;;  %v340_v16 = vand.u32 4294901760, %v274_v38  ;;  %v1191_v52 = vand.u32 4294901760, %v272_v30  ;;  %v6240_v3 = vsub.f32 %v273_v23, %v1189_v31  ;;  %v284_v20 = vld [vmem:[#allocation10 + $0x1f0] sm:$0xff] }
  0x84   :  { %9434 = vst [vmem:[#allocation60_spill] sm:$0xff] %v6224_v48  ;;  %9435 = vst [vmem:[#allocation61_spill] sm:$0xff] %v6226_v21  ;;  %4614 = vmatprep.subr.bf16.mxu0 %v6232_v55  ;;  %v1195_v44 = vand.u32 4294901760, %v276_v11  ;;  %v342_v34 = vand.u32 4294901760, %v279_v0  ;;  %v346_v13 = vand.u32 4294901760, %v283_v56  ;;  %v285_v21 = vld [vmem:[#allocation10 + $0x1f8] sm:$0xff]  ;;  %v6242_v27 = vpack.c.bf16 %v1193_v39, %v1189_v31 }
  0x85   :  { %9436 = vst [vmem:[#allocation62_spill] sm:$0xff] %v6228_v4  ;;  %9437 = vst [vmem:[#allocation63_spill] sm:$0xff] %v6232_v55  ;;  %v281_v4 = vld [vmem:[#allocation10 + $0x1d8] sm:$0xff]  ;;  %v6244_v1 = vsub.f32 %v277_v25, %v1193_v39  ;;  %v6246_v9 = vpack.c.bf16 %v340_v16, %v336_v43  ;;  %v6248_v29 = vsub.f32 %v270_v33, %v336_v43  ;;  %v278_v48 = vld [vmem:[#allocation10 + $0x1c0] sm:$0xff] }
  0x86   :  { %9438 = vst [vmem:[#allocation64_spill] sm:$0xff] %v6234_v57  ;;  %9439 = vst [vmem:[#allocation65_spill] sm:$0xff] %v6236_v10  ;;  %v282_v10 = vld [vmem:[#allocation10 + $0x1e0] sm:$0xff]  ;;  %v280_v57 = vld [vmem:[#allocation10 + $0x1d0] sm:$0xff]  ;;  %v6250_v46 = vsub.f32 %v274_v38, %v340_v16  ;;  %v6252_v23 = vpack.c.bf16 %v1195_v44, %v1191_v52  ;;  %v6254_v55 = vsub.f32 %v272_v30, %v1191_v52  ;;  %4806 = vmatprep.subr.bf16.mxu1 %v6242_v27 }
  0x87   :  { %9440 = vst [vmem:[#allocation66_spill] sm:$0xff] %v6240_v3  ;;  %9441 = vst [vmem:[#allocation67_spill] sm:$0xff] %v6242_v27  ;;  %v6256_v3 = vsub.f32 %v276_v11, %v1195_v44  ;;  %4616 = vmatpush1.bf16.msra.mxu0 %v6246_v9  ;;  %v6260_v25 = vpack.c.bf16 %v346_v13, %v342_v34  ;;  %v6262_v33 = vsub.f32 %v279_v0, %v342_v34 }
  0x88   :  { %9442 = vst [vmem:[#allocation68_spill] sm:$0xff] %v6246_v9  ;;  %9443 = vst [vmem:[#allocation69_spill] sm:$0xff] %v6252_v23  ;;  %v6264_v31 = vsub.f32 %v283_v56, %v346_v13  ;;  %v1197_v39 = vand.u32 4294901760, %v281_v4  ;;  %4808 = vmatpush1.bf16.msra.mxu1 %v6252_v23  ;;  %v1201_v38 = vand.u32 4294901760, %v285_v21  ;;  %v344_v43 = vand.u32 4294901760, %v278_v48  ;;  %v221_v23 = vld [vmem:[#allocation5] sm:$0xff] }
  0x89   :  { %9444 = vst [vmem:[#allocation70_spill] sm:$0xff] %v6260_v25  ;;  %v348_v30 = vand.u32 4294901760, %v282_v10  ;;  %v1199_v16 = vand.u32 4294901760, %v280_v57  ;;  %4618 = vmatprep.subr.bf16.mxu0 %v6260_v25  ;;  %v1203_v52 = vand.u32 4294901760, %v284_v20  ;;  %v8897_v44 = vand.u32 4294901760, %v6067_v17 }
  0x8a   :  { %9445 = vst [vmem:[#allocation71_spill] sm:$0xff] %v6264_v31  ;;  %v6268_v11 = vsub.f32 %v281_v4, %v1197_v39  ;;  %v8896_v9 = vand.u32 4294901760, %v6069_v18  ;;  %v6272_v34 = vpack.c.bf16 %v1201_v38, %v1197_v39  ;;  %v6274_v56 = vsub.f32 %v285_v21, %v1201_v38 }
  0x8b   :  { %v6276_v13 = vpack.c.bf16 %v348_v30, %v344_v43  ;;  %v6278_v0 = vsub.f32 %v278_v48, %v344_v43  ;;  %v6280_v27 = vsub.f32 %v282_v10, %v348_v30  ;;  %v6282_v31 = vpack.c.bf16 %v1203_v52, %v1199_v16 }
  0x8c   :  { %9446 = vst [vmem:[#allocation72_spill] sm:$0xff] %v6268_v11  ;;  %9447 = vst [vmem:[#allocation73_spill] sm:$0xff] %v6272_v34  ;;  %v6284_v4 = vsub.f32 %v280_v57, %v1199_v16  ;;  %v6286_v25 = vsub.f32 %v284_v20, %v1203_v52  ;;  %4810 = vmatprep.subr.bf16.mxu1 %v6272_v34  ;;  %v397_v21 = vsub.f32 %v6067_v17, %v8897_v44 }
  0x8d   :  { %9448 = vst [vmem:[#allocation74_spill] sm:$0xff] %v6274_v56  ;;  %9449 = vst [vmem:[#allocation75_spill] sm:$0xff] %v6276_v13  ;;  %4620 = vmatpush1.bf16.msra.mxu0 %v6276_v13  ;;  %v409_v48 = vsub.f32 %v6069_v18, %v8896_v9  ;;  %v8900_v10 = vand.u32 4294901760, %v6071_v19  ;;  %v8905_v39 = vand.u32 4294901760, %v6075_v24  ;;  %4812 = vmatpush1.bf16.msra.mxu1 %v6282_v31  ;;  %v6299_v20 = vand.u32 4294901760, %v221_v23 }
  0x8e   :  { %9450 = vst [vmem:[#allocation76_spill] sm:$0xff] %v6278_v0  ;;  %9451 = vst [vmem:[#allocation77_spill] sm:$0xff] %v6280_v27  ;;  %v8912_v57 = vand.u32 4294901760, %v6079_v26  ;;  %v8913_v38 = vand.u32 4294901760, %v6082_v28  ;;  %v8919_v43 = vand.u32 4294901760, %v6088_v40  ;;  %v398_v30 = vand.u32 4294901760, %v397_v21 }
  0x8f   :  { %9452 = vst [vmem:[#allocation78_spill] sm:$0xff] %v6282_v31  ;;  %9453 = vst [vmem:[#allocation79_spill] sm:$0xff] %v6284_v4  ;;  %v410_v16 = vand.u32 4294901760, %v409_v48  ;;  %v1252_v52 = vsub.f32 %v6071_v19, %v8900_v10  ;;  %v1264_v9 = vsub.f32 %v6075_v24, %v8905_v39  ;;  %v6311_v44 = vsub.f32 %v221_v23, %v6299_v20 }
  0x90   :  { %9454 = vst [vmem:[#allocation80_spill] sm:$0xff] %v6286_v25  ;;  %9455 = vst [vmem:[#allocation81_spill] sm:$0xff] %v6299_v20  ;;  %v403_v31 = vsub.f32 %v6079_v26, %v8912_v57  ;;  %v415_v21 = vsub.f32 %v6082_v28, %v8913_v38  ;;  %v1258_v48 = vsub.f32 %v6088_v40, %v8919_v43  ;;  %v8916_v39 = vand.u32 4294901760, %v6090_v41 }
  0x91   :  { %9456 = vst [vmem:[#allocation82_spill] sm:$0xff] %v6311_v44  ;;  %v4621_v10 = vpack.c.bf16 %v410_v16, %v398_v30  ;;  %v1253_v13 = vand.u32 4294901760, %v1252_v52  ;;  %v1265_v34 = vand.u32 4294901760, %v1264_v9  ;;  %v6324_v23 = vand.u32 4294901760, %v6311_v44 }
  0x92   :  { %v404_v20 = vand.u32 4294901760, %v403_v31  ;;  %v416_v24 = vand.u32 4294901760, %v415_v21  ;;  %v1259_v19 = vand.u32 4294901760, %v1258_v48  ;;  %v1270_v38 = vsub.f32 %v6090_v41, %v8916_v39 }
  0x93   :  { %9457 = vst [vmem:[#allocation83_spill] sm:$0xff] %v6324_v23  ;;  %4622 = vmatprep.subr.bf16.mxu0 %v4621_v10  ;;  %v4813_v57 = vpack.c.bf16 %v1265_v34, %v1253_v13  ;;  %v8917_v28 = vand.u32 4294901760, %v6092_v42  ;;  %v8918_v30 = vand.u32 4294901760, %v6096_v47  ;;  %v386_v9 = vsub.f32 %v6311_v44, %v6324_v23 }
  0x94   :  { %v4623_v16 = vpack.c.bf16 %v416_v24, %v404_v20  ;;  %v8920_v52 = vand.u32 4294901760, %v6100_v49  ;;  %v8923_v31 = vand.u32 4294901760, %v6103_v51  ;;  %v1271_v21 = vand.u32 4294901760, %v1270_v38 }
  0x95   :  { %4814 = vmatprep.subr.bf16.mxu1 %v4813_v57  ;;  %v421_v34 = vsub.f32 %v6092_v42, %v8917_v28  ;;  %v433_v13 = vsub.f32 %v6096_v47, %v8918_v30  ;;  %v8924_v10 = vand.u32 4294901760, %v6105_v53  ;;  %v387_v48 = vand.u32 4294901760, %v386_v9 }
  0x96   :  { %v1276_v24 = vsub.f32 %v6100_v49, %v8920_v52  ;;  %v1288_v20 = vsub.f32 %v6103_v51, %v8923_v31  ;;  %v8929_v57 = vand.u32 4294901760, %v6111_v62  ;;  %v4815_v38 = vpack.c.bf16 %v1271_v21, %v1259_v19 }
  0x97   :  { %v422_v39 = vand.u32 4294901760, %v421_v34  ;;  %v434_v28 = vand.u32 4294901760, %v433_v13  ;;  %v427_v30 = vsub.f32 %v6105_v53, %v8924_v10  ;;  %388 = vmatmul.mubr.f32.vlgmr.msra.gmra.mrb[0].mxu0 %v387_v48  ;;  %1243 = vmatmul.mubr.f32.vlgmr.msra.gmra.mrb[0].mxu1 %v387_v48  ;;  %v8925_v23 = vand.u32 4294901760, %v6113_v63 }
  0x98   :  { %v1277_v9 = vand.u32 4294901760, %v1276_v24  ;;  %v1289_v43 = vand.u32 4294901760, %v1288_v20  ;;  %v439_v52 = vsub.f32 %v6111_v62, %v8929_v57  ;;  %4624 = vmatpush1.bf16.msra.mxu0 %v4623_v16  ;;  %4816 = vmatpush1.bf16.msra.mxu1 %v4815_v38  ;;  %v8926_v21 = vand.u32 4294901760, %v6117_v6 }
  0x99   :  { %v4625_v31 = vpack.c.bf16 %v434_v28, %v422_v39  ;;  %v428_v19 = vand.u32 4294901760, %v427_v30  ;;  %v8927_v34 = vand.u32 4294901760, %v6121_v8  ;;  %v1282_v48 = vsub.f32 %v6113_v63, %v8925_v23 }
  0x9a   :  { %v4817_v13 = vpack.c.bf16 %v1289_v43, %v1277_v9  ;;  %v440_v10 = vand.u32 4294901760, %v439_v52  ;;  %v8928_v24 = vand.u32 4294901760, %v6124_v12  ;;  %v9458_v20 = vmov 0.0  }
  0x9b   :  { %618 = vmatprep.mubr.f32.mxu0 %v9458_v20  ;;  %1473 = vmatprep.mubr.f32.mxu1 %v9458_v20  ;;  %v1294_v28 = vsub.f32 %v6117_v6, %v8926_v21  ;;  %v445_v39 = vsub.f32 %v6121_v8, %v8927_v34  ;;  %v8930_v43 = vand.u32 4294901760, %v6128_v14  ;;  %v8941_v30 = vand.u32 4294901760, %v6130_v15 }
  0x9c   :  { %4626 = vmatprep.subr.bf16.mxu0 %v4625_v31  ;;  %4818 = vmatprep.subr.bf16.mxu1 %v4817_v13  ;;  %v4627_v16 = vpack.c.bf16 %v440_v10, %v428_v19  ;;  %v1283_v52 = vand.u32 4294901760, %v1282_v48  ;;  %v457_v38 = vsub.f32 %v6124_v12, %v8928_v24  ;;  %v8933_v31 = vand.u32 4294901760, %v6137_v35 }
  0x9d   :  { %v1295_v9 = vand.u32 4294901760, %v1294_v28  ;;  %v446_v23 = vand.u32 4294901760, %v445_v39  ;;  %v1300_v21 = vsub.f32 %v6128_v14, %v8930_v43  ;;  %v1312_v34 = vsub.f32 %v6130_v15, %v8941_v30 }
  0x9e   :  { %4628 = vmatpush1.bf16.msra.mxu0 %v4627_v16  ;;  %v458_v13 = vand.u32 4294901760, %v457_v38  ;;  %v451_v10 = vsub.f32 %v6137_v35, %v8933_v31  ;;  %v8934_v19 = vand.u32 4294901760, %v6139_v36  ;;  %v8938_v48 = vand.u32 4294901760, %v6143_v45 }
  0x9f   :  { %v4819_v28 = vpack.c.bf16 %v1295_v9, %v1283_v52  ;;  %v1301_v39 = vand.u32 4294901760, %v1300_v21  ;;  %v1313_v24 = vand.u32 4294901760, %v1312_v34  ;;  %v8935_v57 = vand.u32 4294901760, %v6145_v50 }
  0xa0   :  { %v4629_v43 = vpack.c.bf16 %v458_v13, %v446_v23  ;;  %v452_v44 = vand.u32 4294901760, %v451_v10  ;;  %v463_v16 = vsub.f32 %v6139_v36, %v8934_v19  ;;  %v1306_v38 = vsub.f32 %v6143_v45, %v8938_v48 }
  0xa1   :  { %4820 = vmatpush1.bf16.msra.mxu1 %v4819_v28  ;;  %v4821_v31 = vpack.c.bf16 %v1313_v24, %v1301_v39  ;;  %v1318_v52 = vsub.f32 %v6145_v50, %v8935_v57  ;;  %v8936_v21 = vand.u32 4294901760, %v6149_v54  ;;  %v8937_v34 = vand.u32 4294901760, %v6153_v58 }
  0xa2   :  { %4630 = vmatprep.subr.bf16.mxu0 %v4629_v43  ;;  %v464_v23 = vand.u32 4294901760, %v463_v16  ;;  %v1307_v9 = vand.u32 4294901760, %v1306_v38  ;;  %v8939_v13 = vand.u32 4294901760, %v6157_v60  ;;  %v8940_v10 = vand.u32 4294901760, %v6160_v2 }
  0xa3   :  { %4822 = vmatprep.subr.bf16.mxu1 %v4821_v31  ;;  %v1319_v19 = vand.u32 4294901760, %v1318_v52  ;;  %v469_v24 = vsub.f32 %v6149_v54, %v8936_v21  ;;  %v481_v28 = vsub.f32 %v6153_v58, %v8937_v34  ;;  %v8944_v39 = vand.u32 4294901760, %v6163_v22 }
  0xa4   :  { %v4631_v57 = vpack.c.bf16 %v464_v23, %v452_v44  ;;  %v1324_v43 = vsub.f32 %v6157_v60, %v8939_v13  ;;  %v1336_v31 = vsub.f32 %v6160_v2, %v8940_v10  ;;  %v8943_v16 = vand.u32 4294901760, %v6167_v37 }
  0xa5   :  { %v4823_v38 = vpack.c.bf16 %v1319_v19, %v1307_v9  ;;  %v470_v52 = vand.u32 4294901760, %v469_v24  ;;  %v482_v21 = vand.u32 4294901760, %v481_v28  ;;  %v475_v34 = vsub.f32 %v6163_v22, %v8944_v39 }
  0xa6   :  { %4632 = vmatpush1.bf16.msra.mxu0 %v4631_v57  ;;  %v1325_v48 = vand.u32 4294901760, %v1324_v43  ;;  %v1337_v44 = vand.u32 4294901760, %v1336_v31  ;;  %v487_v23 = vsub.f32 %v6167_v37, %v8943_v16  ;;  %v8942_v13 = vand.u32 4294901760, %v6171_v32 }
  0xa7   :  { %4824 = vmatpush1.bf16.msra.mxu1 %v4823_v38  ;;  %v4633_v10 = vpack.c.bf16 %v482_v21, %v470_v52  ;;  %v476_v30 = vand.u32 4294901760, %v475_v34  ;;  %v8947_v19 = vand.u32 4294901760, %v6173_v59  ;;  %v8948_v9 = vand.u32 4294901760, %v6177_v5  ;;  %v9459_v34 = vld [vmem:[#allocation42_spill] sm:$0xff]  ;;  %v9460_v52 = vld [vmem:[#allocation44_spill] sm:$0xff] }
  0xa8   :  { %v4825_v24 = vpack.c.bf16 %v1337_v44, %v1325_v48  ;;  %v488_v28 = vand.u32 4294901760, %v487_v23  ;;  %v1330_v57 = vsub.f32 %v6171_v32, %v8942_v13  ;;  %v8949_v43 = vand.u32 4294901760, %v6179_v7 }
  0xa9   :  { %4634 = vmatprep.subr.bf16.mxu0 %v4633_v10  ;;  %v1342_v31 = vsub.f32 %v6173_v59, %v8947_v19  ;;  %v493_v21 = vsub.f32 %v6177_v5, %v8948_v9  ;;  %v8957_v38 = vand.u32 4294901760, %v9459_v34  ;;  %v8960_v48 = vand.u32 4294901760, %v9460_v52  ;;  %v9461_v10 = vld [vmem:[#allocation46_spill] sm:$0xff] }
  0xaa   :  { %4826 = vmatprep.subr.bf16.mxu1 %v4825_v24  ;;  %v4635_v44 = vpack.c.bf16 %v488_v28, %v476_v30  ;;  %v1331_v23 = vand.u32 4294901760, %v1330_v57  ;;  %v505_v13 = vsub.f32 %v6179_v7, %v8949_v43  ;;  %v8959_v16 = vand.u32 4294901760, %v9461_v10  ;;  %v9462_v28 = vld [vmem:[#allocation47_spill] sm:$0xff]  ;;  %v9463_v43 = vld [vmem:[#allocation49_spill] sm:$0xff]  ;;  %v9464_v7 = vld [vmem:[#allocation50_spill] sm:$0xff] }
  0xab   :  { %v1343_v39 = vand.u32 4294901760, %v1342_v31  ;;  %v494_v32 = vand.u32 4294901760, %v493_v21  ;;  %v1348_v19 = vsub.f32 %v9459_v34, %v8957_v38  ;;  %v1360_v9 = vsub.f32 %v9460_v52, %v8960_v48 }
  0xac   :  { %4636 = vmatpush1.bf16.msra.mxu0 %v4635_v44  ;;  %v506_v24 = vand.u32 4294901760, %v505_v13  ;;  %v499_v30 = vsub.f32 %v9461_v10, %v8959_v16  ;;  %v8962_v57 = vand.u32 4294901760, %v9462_v28  ;;  %v8965_v59 = vand.u32 4294901760, %v9463_v43 }
  0xad   :  { %v4827_v31 = vpack.c.bf16 %v1343_v39, %v1331_v23  ;;  %v1349_v21 = vand.u32 4294901760, %v1348_v19  ;;  %v1361_v20 = vand.u32 4294901760, %v1360_v9  ;;  %v8964_v5 = vand.u32 4294901760, %v9464_v7  ;;  %v9465_v19 = vld [vmem:[#allocation52_spill] sm:$0xff]  ;;  %v9466_v23 = vld [vmem:[#allocation53_spill] sm:$0xff] }
  0xae   :  { %v4637_v38 = vpack.c.bf16 %v506_v24, %v494_v32  ;;  %v500_v34 = vand.u32 4294901760, %v499_v30  ;;  %v511_v44 = vsub.f32 %v9462_v28, %v8962_v57  ;;  %v1354_v13 = vsub.f32 %v9463_v43, %v8965_v59  ;;  %v9467_v30 = vld [vmem:[#allocation54_spill] sm:$0xff] }
  0xaf   :  { %4828 = vmatpush1.bf16.msra.mxu1 %v4827_v31  ;;  %v4829_v16 = vpack.c.bf16 %v1361_v20, %v1349_v21  ;;  %v1366_v39 = vsub.f32 %v9464_v7, %v8964_v5  ;;  %v8967_v9 = vand.u32 4294901760, %v9465_v19  ;;  %v8968_v48 = vand.u32 4294901760, %v9466_v23  ;;  %v9468_v21 = vld [vmem:[#allocation58_spill] sm:$0xff] }
  0xb0   :  { %4638 = vmatprep.subr.bf16.mxu0 %v4637_v38  ;;  %v512_v32 = vand.u32 4294901760, %v511_v44  ;;  %v1355_v24 = vand.u32 4294901760, %v1354_v13  ;;  %v8970_v10 = vand.u32 4294901760, %v9467_v30  ;;  %v8972_v57 = vand.u32 4294901760, %v6216_v61  ;;  %v9469_v44 = vld [vmem:[#allocation59_spill] sm:$0xff] }
  0xb1   :  { %4830 = vmatprep.subr.bf16.mxu1 %v4829_v16  ;;  %v1367_v28 = vand.u32 4294901760, %v1366_v39  ;;  %v517_v20 = vsub.f32 %v9465_v19, %v8967_v9  ;;  %v529_v31 = vsub.f32 %v9466_v23, %v8968_v48  ;;  %v8979_v5 = vand.u32 4294901760, %v9468_v21  ;;  %v9471_v19 = vld [vmem:[#allocation62_spill] sm:$0xff] }
  0xb2   :  { %v4639_v59 = vpack.c.bf16 %v512_v32, %v500_v34  ;;  %v1372_v38 = vsub.f32 %v9467_v30, %v8970_v10  ;;  %v1384_v16 = vsub.f32 %v6216_v61, %v8972_v57  ;;  %v8977_v13 = vand.u32 4294901760, %v9469_v44  ;;  %v9470_v10 = vld [vmem:[#allocation61_spill] sm:$0xff] }
  0xb3   :  { %v4831_v39 = vpack.c.bf16 %v1367_v28, %v1355_v24  ;;  %v518_v7 = vand.u32 4294901760, %v517_v20  ;;  %v530_v9 = vand.u32 4294901760, %v529_v31  ;;  %v523_v48 = vsub.f32 %v9468_v21, %v8979_v5  ;;  %v9472_v24 = vld [vmem:[#allocation64_spill] sm:$0xff] }
  0xb4   :  { %4640 = vmatpush1.bf16.msra.mxu0 %v4639_v59  ;;  %v1373_v23 = vand.u32 4294901760, %v1372_v38  ;;  %v1385_v34 = vand.u32 4294901760, %v1384_v16  ;;  %v535_v32 = vsub.f32 %v9469_v44, %v8977_v13  ;;  %v8978_v30 = vand.u32 4294901760, %v9470_v10  ;;  %v9473_v38 = vld [vmem:[#allocation65_spill] sm:$0xff] }
  0xb5   :  { %4832 = vmatpush1.bf16.msra.mxu1 %v4831_v39  ;;  %v4641_v57 = vpack.c.bf16 %v530_v9, %v518_v7  ;;  %v524_v61 = vand.u32 4294901760, %v523_v48  ;;  %v8980_v28 = vand.u32 4294901760, %v9471_v19  ;;  %v8981_v20 = vand.u32 4294901760, %v9472_v24  ;;  %v9474_v48 = vld [vmem:[#allocation66_spill] sm:$0xff] }
  0xb6   :  { %v4833_v31 = vpack.c.bf16 %v1385_v34, %v1373_v23  ;;  %v536_v43 = vand.u32 4294901760, %v535_v32  ;;  %v1378_v59 = vsub.f32 %v9470_v10, %v8978_v30  ;;  %v8982_v16 = vand.u32 4294901760, %v9473_v38 }
  0xb7   :  { %4642 = vmatprep.subr.bf16.mxu0 %v4641_v57  ;;  %v1390_v13 = vsub.f32 %v9471_v19, %v8980_v28  ;;  %v541_v7 = vsub.f32 %v9472_v24, %v8981_v20  ;;  %v8984_v9 = vand.u32 4294901760, %v9474_v48  ;;  %v8988_v23 = vand.u32 4294901760, %v6244_v1 }
  0xb8   :  { %4834 = vmatprep.subr.bf16.mxu1 %v4833_v31  ;;  %v4643_v39 = vpack.c.bf16 %v536_v43, %v524_v61  ;;  %v1379_v34 = vand.u32 4294901760, %v1378_v59  ;;  %v553_v32 = vsub.f32 %v9473_v38, %v8982_v16  ;;  %v8986_v57 = vand.u32 4294901760, %v6248_v29 }
  0xb9   :  { %v1391_v30 = vand.u32 4294901760, %v1390_v13  ;;  %v542_v5 = vand.u32 4294901760, %v541_v7  ;;  %v1396_v28 = vsub.f32 %v9474_v48, %v8984_v9  ;;  %v1408_v20 = vsub.f32 %v6244_v1, %v8988_v23 }
  0xba   :  { %4644 = vmatpush1.bf16.msra.mxu0 %v4643_v39  ;;  %v554_v31 = vand.u32 4294901760, %v553_v32  ;;  %v547_v61 = vsub.f32 %v6248_v29, %v8986_v57  ;;  %v8987_v43 = vand.u32 4294901760, %v6250_v46  ;;  %v8992_v59 = vand.u32 4294901760, %v6254_v55 }
  0xbb   :  { %v4835_v13 = vpack.c.bf16 %v1391_v30, %v1379_v34  ;;  %v1397_v7 = vand.u32 4294901760, %v1396_v28  ;;  %v1409_v16 = vand.u32 4294901760, %v1408_v20  ;;  %v8989_v38 = vand.u32 4294901760, %v6256_v3  ;;  %v9475_v20 = vld [vmem:[#allocation71_spill] sm:$0xff] }
  0xbc   :  { %v4645_v9 = vpack.c.bf16 %v554_v31, %v542_v5  ;;  %v548_v48 = vand.u32 4294901760, %v547_v61  ;;  %v559_v39 = vsub.f32 %v6250_v46, %v8987_v43  ;;  %v1402_v32 = vsub.f32 %v6254_v55, %v8992_v59 }
  0xbd   :  { %4836 = vmatpush1.bf16.msra.mxu1 %v4835_v13  ;;  %v4837_v57 = vpack.c.bf16 %v1409_v16, %v1397_v7  ;;  %v1414_v30 = vsub.f32 %v6256_v3, %v8989_v38  ;;  %v8990_v28 = vand.u32 4294901760, %v6262_v33  ;;  %v8991_v34 = vand.u32 4294901760, %v9475_v20 }
  0xbe   :  { %4646 = vmatprep.subr.bf16.mxu0 %v4645_v9  ;;  %v560_v5 = vand.u32 4294901760, %v559_v39  ;;  %v1403_v31 = vand.u32 4294901760, %v1402_v32  ;;  %v8993_v61 = vand.u32 4294901760, %v6268_v11  ;;  %v8994_v43 = vand.u32 4294901760, %v6274_v56 }
  0xbf   :  { %4838 = vmatprep.subr.bf16.mxu1 %v4837_v57  ;;  %v1415_v23 = vand.u32 4294901760, %v1414_v30  ;;  %v565_v16 = vsub.f32 %v6262_v33, %v8990_v28  ;;  %v577_v13 = vsub.f32 %v9475_v20, %v8991_v34  ;;  %v9000_v7 = vand.u32 4294901760, %v6278_v0 }
  0xc0   :  { %v4647_v38 = vpack.c.bf16 %v560_v5, %v548_v48  ;;  %v1420_v9 = vsub.f32 %v6268_v11, %v8993_v61  ;;  %v1432_v57 = vsub.f32 %v6274_v56, %v8994_v43  ;;  %v8999_v39 = vand.u32 4294901760, %v6280_v27 }
  0xc1   :  { %v4839_v32 = vpack.c.bf16 %v1415_v23, %v1403_v31  ;;  %v566_v30 = vand.u32 4294901760, %v565_v16  ;;  %v578_v28 = vand.u32 4294901760, %v577_v13  ;;  %v571_v34 = vsub.f32 %v6278_v0, %v9000_v7 }
  0xc2   :  { %4648 = vmatpush1.bf16.msra.mxu0 %v4647_v38  ;;  %v1421_v59 = vand.u32 4294901760, %v1420_v9  ;;  %v1433_v48 = vand.u32 4294901760, %v1432_v57  ;;  %v583_v5 = vsub.f32 %v6280_v27, %v8999_v39  ;;  %v8997_v61 = vand.u32 4294901760, %v6284_v4  ;;  %v9481_v39 = vld [vmem:[#allocation41_spill] sm:$0xff] }
  0xc3   :  { %4840 = vmatpush1.bf16.msra.mxu1 %v4839_v32  ;;  %v4649_v43 = vpack.c.bf16 %v578_v28, %v566_v30  ;;  %v572_v56 = vand.u32 4294901760, %v571_v34  ;;  %v8998_v23 = vand.u32 4294901760, %v6286_v25  ;;  %v4653_v9 = vpack.c.bf16 %v6069_v18, %v6067_v17  ;;  %v9476_v32 = vld [vmem:[#allocation19_spill] sm:$0xff] }
  0xc4   :  { %v4841_v31 = vpack.c.bf16 %v1433_v48, %v1421_v59  ;;  %v584_v16 = vand.u32 4294901760, %v583_v5  ;;  %v1426_v13 = vsub.f32 %v6284_v4, %v8997_v61  ;;  %v9477_v59 = vld [vmem:[#allocation21_spill] sm:$0xff]  ;;  %v9478_v48 = vld [vmem:[#allocation23_spill] sm:$0xff]  ;;  %v9482_v7 = vmov 0.0  }
  0xc5   :  { %4650 = vmatprep.subr.bf16.mxu0 %v4649_v43  ;;  %v1438_v38 = vsub.f32 %v6286_v25, %v8998_v23  ;;  %v4845_v30 = vpack.c.bf16 %v9477_v59, %v9476_v32  ;;  %v4655_v5 = vpack.c.bf16 %v9478_v48, %v6079_v26  ;;  %v4657_v43 = vpack.c.bf16 %v6096_v47, %v6092_v42  ;;  %v9479_v23 = vld [vmem:[#allocation81_spill] sm:$0xff] }
  0xc6   :  { %4842 = vmatprep.subr.bf16.mxu1 %v4841_v31  ;;  %v4651_v57 = vpack.c.bf16 %v584_v16, %v572_v56  ;;  %v1427_v28 = vand.u32 4294901760, %v1426_v13  ;;  %v4847_v56 = vpack.c.bf16 %v6090_v41, %v6088_v40  ;;  %v4849_v31 = vpack.c.bf16 %v6103_v51, %v6100_v49 }
  0xc7   :  { %v1439_v34 = vand.u32 4294901760, %v1438_v38  ;;  %v4659_v16 = vpack.c.bf16 %v6111_v62, %v6105_v53  ;;  %v4851_v13 = vpack.c.bf16 %v6117_v6, %v6113_v63  ;;  %v4661_v38 = vpack.c.bf16 %v6124_v12, %v6121_v8 }
  0xc8   :  { %4652 = vmatpush1.bf16.msra.mxu0 %v4651_v57  ;;  %v4855_v57 = vpack.c.bf16 %v6145_v50, %v6143_v45  ;;  %v9483_v18 = vand.u32 4294901760, %v9476_v32  ;;  %v9484_v17 = vand.u32 4294901760, %v9477_v59  ;;  %v9485_v4 = vand.u32 4294901760, %v6079_v26 }
  0xc9   :  { %v4843_v61 = vpack.c.bf16 %v1439_v34, %v1427_v28  ;;  %4654 = vmatprep.subr.bf16.mxu0 %v4653_v9  ;;  %v4663_v9 = vpack.c.bf16 %v6139_v36, %v6137_v35  ;;  %v4665_v28 = vpack.c.bf16 %v6153_v58, %v6149_v54  ;;  %v4857_v34 = vpack.c.bf16 %v6160_v2, %v6157_v60 }
  0xca   :  { %v6596_v25 = vpack.c.bf16 %v9484_v17, %v9483_v18  ;;  %v9487_v0 = vand.u32 4294901760, %v6088_v40  ;;  %v9488_v11 = vand.u32 4294901760, %v6090_v41  ;;  %v9489_v32 = vand.u32 4294901760, %v6092_v42 }
  0xcb   :  { %4844 = vmatpush1.bf16.msra.mxu1 %v4843_v61  ;;  %620 = vmatmul.mubr.f32.vlgmr.msra.gmra.mrb[0].mxu0 %v9479_v23  ;;  %v4853_v61 = vpack.c.bf16 %v6130_v15, %v6128_v14  ;;  %v9490_v17 = vand.u32 4294901760, %v6096_v47  ;;  %v9491_v26 = vand.u32 4294901760, %v6100_v49  ;;  %v9492_v59 = vand.u32 4294901760, %v6103_v51 }
  0xcc   :  { %4846 = vmatprep.subr.bf16.mxu1 %v4845_v30  ;;  %4656 = vmatpush1.bf16.msra.mxu0 %v4655_v5  ;;  %v4667_v30 = vpack.c.bf16 %v6167_v37, %v6163_v22  ;;  %v9480_v5 = vld [vmem:[#allocation40_spill] sm:$0xff]  ;;  %v6609_v20 = vpack.c.bf16 %v9488_v11, %v9487_v0  ;;  %v9493_v40 = vand.u32 4294901760, %v6105_v53  ;;  %v9494_v41 = vand.u32 4294901760, %v6111_v62 }
  0xcd   :  { %4658 = vmatprep.subr.bf16.mxu0 %v4657_v43  ;;  %v4669_v43 = vpack.c.bf16 %v9481_v39, %v9480_v5  ;;  %754 = vmatprep.mubr.f32.mxu0 %v9482_v7  ;;  %v6615_v18 = vpack.c.bf16 %v9490_v17, %v9489_v32  ;;  %v9495_v42 = vand.u32 4294901760, %v6113_v63  ;;  %v9496_v47 = vand.u32 4294901760, %v6117_v6 }
  0xce   :  { %1475 = vmatmul.mubr.f32.vlgmr.msra.gmra.mrb[0].mxu1 %v9479_v23  ;;  %v9486_v23 = vand.u32 4294901760, %v9478_v48  ;;  %v6627_v11 = vpack.c.bf16 %v9494_v41, %v9493_v40  ;;  %v9498_v49 = vand.u32 4294901760, %v6124_v12  ;;  %v9499_v48 = vand.u32 4294901760, %v6128_v14  ;;  %v9517_v41 = vld [vmem:[#allocation42_spill] sm:$0xff] }
  0xcf   :  { %4848 = vmatpush1.bf16.msra.mxu1 %v4847_v56  ;;  %1609 = vmatprep.mubr.f32.mxu1 %v9482_v7  ;;  %v6633_v0 = vpack.c.bf16 %v9496_v47, %v9495_v42  ;;  %v9500_v53 = vand.u32 4294901760, %v6130_v15  ;;  %v9501_v56 = vand.u32 4294901760, %v6137_v35  ;;  %v9502_v63 = vand.u32 4294901760, %v6139_v36  ;;  %v9520_v47 = vld [vmem:[#allocation46_spill] sm:$0xff] }
  0xd0   :  { %v6603_v27 = vpack.c.bf16 %v9486_v23, %v9485_v4  ;;  %4850 = vmatprep.subr.bf16.mxu1 %v4849_v31  ;;  %4660 = vmatpush1.bf16.msra.mxu0 %v4659_v16  ;;  %v6621_v4 = vpack.c.bf16 %v9492_v59, %v9491_v26  ;;  %v9497_v23 = vand.u32 4294901760, %v6121_v8  ;;  %v9503_v31 = vand.u32 4294901760, %v6143_v45  ;;  %v9513_v59 = vld [vmem:[#allocation38_spill] sm:$0xff] }
  0xd1   :  { %4662 = vmatprep.subr.bf16.mxu0 %v4661_v38  ;;  %v6645_v62 = vpack.c.bf16 %v9500_v53, %v9499_v48  ;;  %v6651_v6 = vpack.c.bf16 %v9502_v63, %v9501_v56  ;;  %v9504_v8 = vand.u32 4294901760, %v6145_v50  ;;  %v9505_v12 = vand.u32 4294901760, %v6149_v54  ;;  %v9511_v50 = vld [vmem:[#allocation37_spill] sm:$0xff]  ;;  %v9527_v63 = vld [vmem:[#allocation50_spill] sm:$0xff] }
  0xd2   :  { %v6639_v51 = vpack.c.bf16 %v9498_v49, %v9497_v23  ;;  %v9506_v14 = vand.u32 4294901760, %v6153_v58  ;;  %v9507_v15 = vand.u32 4294901760, %v6157_v60  ;;  %v9508_v35 = vand.u32 4294901760, %v6160_v2  ;;  %v9522_v49 = vld [vmem:[#allocation47_spill] sm:$0xff]  ;;  %v9525_v56 = vld [vmem:[#allocation49_spill] sm:$0xff] }
  0xd3   :  { %v6657_v16 = vpack.c.bf16 %v9504_v8, %v9503_v31  ;;  %v9509_v36 = vand.u32 4294901760, %v6163_v22  ;;  %v9510_v45 = vand.u32 4294901760, %v6167_v37  ;;  %v9512_v26 = vand.u32 4294901760, %v9511_v50  ;;  %4852 = vmatpush1.bf16.msra.mxu1 %v4851_v13 }
  0xd4   :  { %v6663_v38 = vpack.c.bf16 %v9506_v14, %v9505_v12  ;;  %v6669_v32 = vpack.c.bf16 %v9508_v35, %v9507_v15  ;;  %v9514_v54 = vand.u32 4294901760, %v9513_v59  ;;  %v9515_v58 = vand.u32 4294901760, %v9480_v5  ;;  %4854 = vmatprep.subr.bf16.mxu1 %v4853_v61  ;;  %4664 = vmatpush1.bf16.msra.mxu0 %v4663_v9  ;;  %v9532_v12 = vld [vmem:[#allocation53_spill] sm:$0xff]  ;;  %v9535_v35 = vld [vmem:[#allocation54_spill] sm:$0xff] }
  0xd5   :  { %v6675_v17 = vpack.c.bf16 %v9510_v45, %v9509_v36  ;;  %v9516_v60 = vand.u32 4294901760, %v9481_v39  ;;  %v9518_v42 = vand.u32 4294901760, %v9517_v41  ;;  %v9519_v22 = vand.u32 4294901760, %v9460_v52  ;;  %v9530_v39 = vld [vmem:[#allocation52_spill] sm:$0xff]  ;;  %4666 = vmatprep.subr.bf16.mxu0 %v4665_v28 }
  0xd6   :  { %v6681_v40 = vpack.c.bf16 %v9514_v54, %v9512_v26  ;;  %v9521_v23 = vand.u32 4294901760, %v9520_v47  ;;  %v9523_v48 = vand.u32 4294901760, %v9522_v49  ;;  %v9526_v13 = vand.u32 4294901760, %v9525_v56  ;;  %v9537_v45 = vld [vmem:[#allocation56_spill] sm:$0xff] }
  0xd7   :  { %v6687_v2 = vpack.c.bf16 %v9516_v60, %v9515_v58  ;;  %v6693_v37 = vpack.c.bf16 %v9519_v22, %v9518_v42  ;;  %v9528_v5 = vand.u32 4294901760, %v9527_v63  ;;  %v9531_v8 = vand.u32 4294901760, %v9530_v39  ;;  %4856 = vmatpush1.bf16.msra.mxu1 %v4855_v57 }
  0xd8   :  { %v6699_v53 = vpack.c.bf16 %v9523_v48, %v9521_v23  ;;  %v9533_v14 = vand.u32 4294901760, %v9532_v12  ;;  %v9536_v36 = vand.u32 4294901760, %v9535_v35  ;;  %v9538_v26 = vand.u32 4294901760, %v9537_v45  ;;  %v9547_v48 = vld [vmem:[#allocation65_spill] sm:$0xff]  ;;  %4858 = vmatprep.subr.bf16.mxu1 %v4857_v34  ;;  %4668 = vmatpush1.bf16.msra.mxu0 %v4667_v30 }
  0xd9   :  { %v6705_v31 = vpack.c.bf16 %v9528_v5, %v9526_v13  ;;  %v9540_v58 = vand.u32 4294901760, %v9468_v21  ;;  %v9541_v60 = vand.u32 4294901760, %v9469_v44  ;;  %v9543_v61 = vand.u32 4294901760, %v9470_v10  ;;  %4670 = vmatprep.subr.bf16.mxu0 %v4669_v43 }
  0xda   :  { %9524 = vst [vmem:[#allocation44_spill] sm:$0xff] %v6699_v53  ;;  %v6711_v15 = vpack.c.bf16 %v9533_v14, %v9531_v8  ;;  %v6717_v54 = vpack.c.bf16 %v9538_v26, %v9536_v36  ;;  %v9544_v9 = vand.u32 4294901760, %v9471_v19  ;;  %v9546_v23 = vand.u32 4294901760, %v9472_v24  ;;  %v9550_v8 = vld [vmem:[#allocation66_spill] sm:$0xff] }
  0xdb   :  { %9529 = vst [vmem:[#allocation58_spill] sm:$0xff] %v6705_v31  ;;  %v6723_v42 = vpack.c.bf16 %v9541_v60, %v9540_v58  ;;  %v9548_v13 = vand.u32 4294901760, %v9547_v48  ;;  %v9551_v14 = vand.u32 4294901760, %v9550_v8  ;;  %v9552_v36 = vand.u32 4294901760, %v6244_v1 }
  0xdc   :  { %9534 = vst [vmem:[#allocation59_spill] sm:$0xff] %v6711_v15  ;;  %9539 = vst [vmem:[#allocation61_spill] sm:$0xff] %v6717_v54  ;;  %v6729_v22 = vpack.c.bf16 %v9544_v9, %v9543_v61  ;;  %v9554_v28 = vand.u32 4294901760, %v6248_v29  ;;  %v9555_v58 = vand.u32 4294901760, %v6250_v46  ;;  %v9557_v61 = vand.u32 4294901760, %v6254_v55 }
  0xdd   :  { %9542 = vst [vmem:[#allocation62_spill] sm:$0xff] %v6723_v42  ;;  %v6735_v5 = vpack.c.bf16 %v9548_v13, %v9546_v23  ;;  %v6741_v26 = vpack.c.bf16 %v9552_v36, %v9551_v14  ;;  %v9558_v9 = vand.u32 4294901760, %v6256_v3  ;;  %v9560_v23 = vand.u32 4294901760, %v6262_v33  ;;  %v9561_v13 = vld [vmem:[#allocation71_spill] sm:$0xff]  ;;  %v9564_v14 = vld [vmem:[#allocation72_spill] sm:$0xff] }
  0xde   :  { %9545 = vst [vmem:[#allocation64_spill] sm:$0xff] %v6729_v22  ;;  %v6747_v60 = vpack.c.bf16 %v9555_v58, %v9554_v28  ;;  %v9565_v36 = vand.u32 4294901760, %v9564_v14  ;;  %v9568_v28 = vld [vmem:[#allocation76_spill] sm:$0xff]  ;;  %v4673_v57 = vpack.c.bf16 %v9532_v12, %v9530_v39  ;;  %v4865_v34 = vpack.c.bf16 %v9537_v45, %v9535_v35  ;;  %v9584_v39 = vld [vmem:[#allocation29_spill] sm:$0xff]  ;;  %v96_v12 = vld [vmem:[#allocation8 + $0x18] sm:$0xff] }
  0xdf   :  { %9549 = vst [vmem:[#allocation19_spill] sm:$0xff] %v6735_v5  ;;  %9553 = vst [vmem:[#allocation21_spill] sm:$0xff] %v6741_v26  ;;  %v6753_v22 = vpack.c.bf16 %v9558_v9, %v9557_v61  ;;  %v9562_v5 = vand.u32 4294901760, %v9561_v13  ;;  %v9566_v26 = vld [vmem:[#allocation74_spill] sm:$0xff]  ;;  %v9569_v58 = vand.u32 4294901760, %v9568_v28  ;;  %v4859_v61 = vpack.c.bf16 %v9513_v59, %v9511_v50  ;;  %v9572_v9 = vld [vmem:[#allocation79_spill] sm:$0xff] }
  0xe0   :  { %9556 = vst [vmem:[#allocation23_spill] sm:$0xff] %v6747_v60  ;;  %v9567_v54 = vand.u32 4294901760, %v9566_v26  ;;  %v9570_v60 = vld [vmem:[#allocation77_spill] sm:$0xff]  ;;  %v4863_v50 = vpack.c.bf16 %v9527_v63, %v9525_v56  ;;  %v4675_v30 = vpack.c.bf16 %v9469_v44, %v9468_v21  ;;  %v4867_v43 = vpack.c.bf16 %v9471_v19, %v9470_v10  ;;  %v93_v35 = vld [vmem:[#allocation8] sm:$0xff] }
  0xe1   :  { %9559 = vst [vmem:[#allocation40_spill] sm:$0xff] %v6753_v22  ;;  %v6759_v42 = vpack.c.bf16 %v9562_v5, %v9560_v23  ;;  %v9571_v15 = vand.u32 4294901760, %v9570_v60  ;;  %v9573_v22 = vand.u32 4294901760, %v9572_v9  ;;  %v9574_v5 = vld [vmem:[#allocation80_spill] sm:$0xff]  ;;  %4860 = vmatpush1.bf16.msra.mxu1 %v4859_v61  ;;  %v4869_v59 = vpack.c.bf16 %v6244_v1, %v9550_v8  ;;  %v94_v56 = vld [vmem:[#allocation8 + $0x8] sm:$0xff] }
  0xe2   :  { %v6765_v31 = vpack.c.bf16 %v9567_v54, %v9565_v36  ;;  %v9575_v23 = vand.u32 4294901760, %v9574_v5  ;;  %v4861_v54 = vpack.c.bf16 %v9460_v52, %v9517_v41  ;;  %v4671_v36 = vpack.c.bf16 %v9522_v49, %v9520_v47  ;;  %v9576_v1 = vld [vmem:[#allocation16_spill] sm:$0xff]  ;;  %v9582_v47 = vld [vmem:[#allocation26_spill] sm:$0xff]  ;;  %v9583_v49 = vld [vmem:[#allocation27_spill] sm:$0xff] }
  0xe3   :  { %9563 = vst [vmem:[#allocation41_spill] sm:$0xff] %v6759_v42  ;;  %v6771_v53 = vpack.c.bf16 %v9571_v15, %v9569_v58  ;;  %v4677_v52 = vpack.c.bf16 %v9547_v48, %v9472_v24  ;;  %v4679_v41 = vpack.c.bf16 %v6250_v46, %v6248_v29  ;;  %v4681_v21 = vpack.c.bf16 %v9561_v13, %v6262_v33  ;;  %v9577_v29 = vld [vmem:[#allocation82_spill] sm:$0xff]  ;;  %v9580_v33 = vld [vmem:[#allocation25_spill] sm:$0xff]  ;;  %v9581_v24 = vld [vmem:[#allocation24_spill] sm:$0xff] }
  0xe4   :  { %v6779_v42 = vpack.c.bf16 %v9575_v23, %v9573_v22  ;;  %4862 = vmatprep.subr.bf16.mxu1 %v4861_v54  ;;  %4672 = vmatpush1.bf16.msra.mxu0 %v4671_v36  ;;  %v4871_v44 = vpack.c.bf16 %v6256_v3, %v6254_v55  ;;  %v4873_v10 = vpack.c.bf16 %v9566_v26, %v9564_v14  ;;  %v9578_v55 = vld [vmem:[#allocation20_spill] sm:$0xff]  ;;  %v9579_v3 = vld [vmem:[#allocation22_spill] sm:$0xff]  ;;  %v98_v63 = vld [vmem:[#allocation8 + $0x28] sm:$0xff]  ;;  %v1996_v48 = vand.u32 4294901760, %v94_v56 }
  0xe5   :  { %4674 = vmatprep.subr.bf16.mxu0 %v4673_v57  ;;  %4864 = vmatpush1.bf16.msra.mxu1 %v4863_v50  ;;  %v4683_v19 = vpack.c.bf16 %v9570_v60, %v9568_v28  ;;  %v4875_v46 = vpack.c.bf16 %v9574_v5, %v9572_v9  ;;  %v100_v15 = vld [vmem:[#allocation8 + $0x38] sm:$0xff]  ;;  %v97_v45 = vld [vmem:[#allocation8 + $0x20] sm:$0xff]  ;;  %v2000_v8 = vand.u32 4294901760, %v98_v63  ;;  %v9586_v26 = vld [vmem:[#allocation30_spill] sm:$0xff]  ;;  %v3280_v58 = vand.u32 4294901760, %v96_v12 }
  0xe6   :  { %4866 = vmatprep.subr.bf16.mxu1 %v4865_v34  ;;  %v9585_v22 = vld [vmem:[#allocation28_spill] sm:$0xff]  ;;  %v9587_v60 = vld [vmem:[#allocation31_spill] sm:$0xff]  ;;  %v95_v13 = vld [vmem:[#allocation8 + $0x10] sm:$0xff]  ;;  %v3284_v61 = vand.u32 4294901760, %v100_v15  ;;  %v1998_v9 = vand.u32 4294901760, %v93_v35  ;;  %v2002_v5 = vand.u32 4294901760, %v97_v45 }
  0xe7   :  { %v99_v14 = vld [vmem:[#allocation8 + $0x30] sm:$0xff]  ;;  %v9588_v28 = vld [vmem:[#allocation33_spill] sm:$0xff]  ;;  %v9589_v36 = vld [vmem:[#allocation32_spill] sm:$0xff] }
  0xe8   :  { %4676 = vmatpush1.bf16.msra.mxu0 %v4675_v30  ;;  %v102_v23 = vld [vmem:[#allocation8 + $0x48] sm:$0xff]  ;;  %v9592_v34 = vld [vmem:[#allocation18_spill] sm:$0xff] }
  0xe9   :  { %4678 = vmatprep.subr.bf16.mxu0 %v4677_v52  ;;  %4868 = vmatpush1.bf16.msra.mxu1 %v4867_v43  ;;  %v106_v54 = vld [vmem:[#allocation8 + $0x68] sm:$0xff]  ;;  %v9593_v30 = vand.u32 4294901760, %v9592_v34  ;;  %v6834_v43 = vpack.c.bf16 %v2000_v8, %v1996_v48  ;;  %v105_v34 = vld [vmem:[#allocation8 + $0x60] sm:$0xff] }
  0xea   :  { %4870 = vmatprep.subr.bf16.mxu1 %v4869_v59  ;;  %v9590_v57 = vld [vmem:[#allocation17_spill] sm:$0xff]  ;;  %v3282_v59 = vand.u32 4294901760, %v95_v13 }
  0xeb   :  { %v9591_v50 = vand.u32 4294901760, %v9590_v57  ;;  %9594 = vst [vmem:[#allocation37_spill] sm:$0xff] %v6834_v43  ;;  %v2008_v57 = vand.u32 4294901760, %v106_v54  ;;  %v6845_v43 = vsub.f32 %v96_v12, %v3280_v58 }
  0xec   :  { %4680 = vmatpush1.bf16.msra.mxu0 %v4679_v41  ;;  %v3286_v41 = vand.u32 4294901760, %v99_v14  ;;  %v6858_v12 = vsub.f32 %v95_v13, %v3282_v59 }
  0xed   :  { %4682 = vmatprep.subr.bf16.mxu0 %v4681_v21  ;;  %4872 = vmatpush1.bf16.msra.mxu1 %v4871_v44  ;;  %v6832_v52 = vpack.c.bf16 %v9593_v30, %v9591_v50  ;;  %v104_v21 = vld [vmem:[#allocation8 + $0x58] sm:$0xff]  ;;  %v6843_v30 = vpack.c.bf16 %v3284_v61, %v3280_v58  ;;  %9601 = vst [vmem:[#allocation47_spill] sm:$0xff] %v6845_v43  ;;  %v2010_v58 = vand.u32 4294901760, %v105_v34  ;;  %v113_v43 = vld [vmem:[#allocation8 + $0xa0] sm:$0xff] }
  0xee   :  { %4874 = vmatprep.subr.bf16.mxu1 %v4873_v10  ;;  %v108_v44 = vld [vmem:[#allocation8 + $0x78] sm:$0xff]  ;;  %v9595_v10 = vld [vmem:[#allocation34_spill] sm:$0xff]  ;;  %9608 = vst [vmem:[#allocation56_spill] sm:$0xff] %v6858_v12  ;;  %v6869_v13 = vsub.f32 %v106_v54, %v2008_v57  ;;  %v109_v12 = vld [vmem:[#allocation8 + $0x80] sm:$0xff] }
  0xef   :  { %v9599_v50 = vld [vmem:[#allocation39_spill] sm:$0xff]  ;;  %9600 = vst [vmem:[#allocation46_spill] sm:$0xff] %v6843_v30  ;;  %v6882_v54 = vsub.f32 %v105_v34, %v2010_v58 }
  0xf0   :  { %4684 = vmatpush1.bf16.msra.mxu0 %v4683_v19  ;;  %v9596_v19 = vld [vmem:[#allocation35_spill] sm:$0xff]  ;;  %9615 = vst [vmem:[#allocation72_spill] sm:$0xff] %v6869_v13  ;;  %v118_v13 = vld [vmem:[#allocation8 + $0xc8] sm:$0xff] }
  0xf1   :  { %4686 = vmatprep.subr.bf16.mxu0 %v9576_v1  ;;  %4876 = vmatpush1.bf16.msra.mxu1 %v4875_v46  ;;  %v6838_v46 = vsub.f32 %v94_v56, %v1996_v48  ;;  %v6851_v56 = vsub.f32 %v93_v35, %v1998_v9  ;;  %v3288_v48 = vand.u32 4294901760, %v104_v21  ;;  %v6862_v35 = vsub.f32 %v99_v14, %v3286_v41  ;;  %v112_v30 = vld [vmem:[#allocation8 + $0x98] sm:$0xff] }
  0xf2   :  { %4878 = vmatprep.subr.bf16.mxu1 %v9578_v55  ;;  %9622 = vst [vmem:[#allocation16_spill] sm:$0xff] %v6882_v54  ;;  %v120_v54 = vld [vmem:[#allocation8 + $0xd8] sm:$0xff] }
  0xf3   :  { %757 = vmatmul.mubr.f32.vlgmr.msra.gmra.mrb[0].mxu0 %v9577_v29  ;;  %9597 = vst [vmem:[#allocation38_spill] sm:$0xff] %v6838_v46  ;;  %9604 = vst [vmem:[#allocation52_spill] sm:$0xff] %v6851_v56  ;;  %v114_v46 = vld [vmem:[#allocation8 + $0xa8] sm:$0xff]  ;;  %v9613_v56 = vld [vmem:[#allocation51_spill] sm:$0xff]  ;;  %v6873_v14 = vsub.f32 %v104_v21, %v3288_v48 }
  0xf4   :  { %4688 = vmatpush1.bf16.msra.mxu0 %v9579_v3  ;;  %859 = vmatprep.mubr.f32.mxu0 %v9482_v7  ;;  %9611 = vst [vmem:[#allocation65_spill] sm:$0xff] %v6862_v35  ;;  %v111_v35 = vld [vmem:[#allocation8 + $0x90] sm:$0xff]  ;;  %v9624_v21 = vld [vmem:[#allocation57_spill] sm:$0xff] }
  0xf5   :  { %4690 = vmatprep.subr.bf16.mxu0 %v9580_v33  ;;  %1612 = vmatmul.mubr.f32.vlgmr.msra.gmra.mrb[0].mxu1 %v9577_v29  ;;  %v6840_v29 = vsub.f32 %v98_v63, %v2000_v8  ;;  %v6853_v63 = vsub.f32 %v97_v45, %v2002_v5  ;;  %v3292_v8 = vand.u32 4294901760, %v108_v44  ;;  %9617 = vst [vmem:[#allocation76_spill] sm:$0xff] %v6873_v14 }
  0xf6   :  { %4880 = vmatpush1.bf16.msra.mxu1 %v9581_v24  ;;  %1714 = vmatprep.mubr.f32.mxu1 %v9482_v7 }
  0xf7   :  { %4882 = vmatprep.subr.bf16.mxu1 %v9582_v47  ;;  %9598 = vst [vmem:[#allocation42_spill] sm:$0xff] %v6840_v29  ;;  %9605 = vst [vmem:[#allocation53_spill] sm:$0xff] %v6853_v63  ;;  %v110_v29 = vld [vmem:[#allocation8 + $0x88] sm:$0xff]  ;;  %v116_v63 = vld [vmem:[#allocation8 + $0xb8] sm:$0xff] }
  0xf8   :  { %4692 = vmatpush1.bf16.msra.mxu0 %v9583_v49 }
  0xf9   :  { %4694 = vmatprep.subr.bf16.mxu0 %v9584_v39 }
  0xfa   :  { %4884 = vmatpush1.bf16.msra.mxu1 %v9585_v22  ;;  %v9606_v22 = vld [vmem:[#allocation36_spill] sm:$0xff] }
  0xfb   :  { %4886 = vmatprep.subr.bf16.mxu1 %v9586_v26  ;;  %v6849_v26 = vpack.c.bf16 %v2002_v5, %v1998_v9 }
  0xfc   :  { %4696 = vmatpush1.bf16.msra.mxu0 %v9587_v60  ;;  %v6847_v60 = vsub.f32 %v100_v15, %v3284_v61  ;;  %v9609_v61 = vld [vmem:[#allocation43_spill] sm:$0xff] }
  0xfd   :  { %4698 = vmatprep.subr.bf16.mxu0 %v9588_v28  ;;  %v101_v28 = vld [vmem:[#allocation8 + $0x40] sm:$0xff]  ;;  %9603 = vst [vmem:[#allocation50_spill] sm:$0xff] %v6849_v26  ;;  %v9610_v26 = vld [vmem:[#allocation45_spill] sm:$0xff] }
  0xfe   :  { %4888 = vmatpush1.bf16.msra.mxu1 %v9589_v36  ;;  %v2004_v36 = vand.u32 4294901760, %v102_v23  ;;  %9602 = vst [vmem:[#allocation49_spill] sm:$0xff] %v6847_v60  ;;  %v2006_v15 = vand.u32 4294901760, %v101_v28 }
  0xff   :  { %4890 = vmatprep.subr.bf16.mxu1 %v9595_v10  ;;  %v103_v10 = vld [vmem:[#allocation8 + $0x50] sm:$0xff] }
 0x100   :  { %4700 = vmatpush1.bf16.msra.mxu0 %v9596_v19  ;;  %v107_v19 = vld [vmem:[#allocation8 + $0x70] sm:$0xff]  ;;  %v6864_v45 = vpack.c.bf16 %v2008_v57, %v2004_v36  ;;  %v3290_v9 = vand.u32 4294901760, %v103_v10  ;;  %v6867_v60 = vsub.f32 %v102_v23, %v2004_v36  ;;  %v6880_v23 = vpack.c.bf16 %v2010_v58, %v2006_v15 }
 0x101   :  { %4702 = vmatprep.subr.bf16.mxu0 %v9599_v50  ;;  %v6856_v50 = vpack.c.bf16 %v3286_v41, %v3282_v59  ;;  %v3294_v5 = vand.u32 4294901760, %v107_v19  ;;  %v2012_v59 = vand.u32 4294901760, %v110_v29  ;;  %v6875_v41 = vsub.f32 %v108_v44, %v3292_v8 }
 0x102   :  { %4892 = vmatpush1.bf16.msra.mxu1 %v9606_v22  ;;  %9612 = vst [vmem:[#allocation66_spill] sm:$0xff] %v6864_v45  ;;  %9614 = vst [vmem:[#allocation71_spill] sm:$0xff] %v6867_v60  ;;  %v6877_v45 = vsub.f32 %v101_v28, %v2006_v15  ;;  %v9620_v22 = vld [vmem:[#allocation48_spill] sm:$0xff]  ;;  %v3296_v36 = vand.u32 4294901760, %v112_v30  ;;  %v3300_v57 = vand.u32 4294901760, %v116_v63  ;;  %v122_v60 = vld [vmem:[#allocation8 + $0xe8] sm:$0xff]  ;;  %v6888_v28 = vsub.f32 %v103_v10, %v3290_v9 }
 0x103   :  { %9607 = vst [vmem:[#allocation54_spill] sm:$0xff] %v6856_v50  ;;  %4894 = vmatprep.subr.bf16.mxu1 %v9609_v61  ;;  %v2016_v50 = vand.u32 4294901760, %v114_v46  ;;  %v6871_v61 = vpack.c.bf16 %v3292_v8, %v3288_v48  ;;  %9618 = vst [vmem:[#allocation77_spill] sm:$0xff] %v6875_v41  ;;  %v6886_v44 = vpack.c.bf16 %v3294_v5, %v3290_v9  ;;  %v2014_v48 = vand.u32 4294901760, %v109_v12  ;;  %v117_v10 = vld [vmem:[#allocation8 + $0xc0] sm:$0xff] }
 0x104   :  { %4704 = vmatpush1.bf16.msra.mxu0 %v9610_v26  ;;  %9619 = vst [vmem:[#allocation79_spill] sm:$0xff] %v6877_v45  ;;  %v115_v26 = vld [vmem:[#allocation8 + $0xb0] sm:$0xff]  ;;  %9621 = vst [vmem:[#allocation80_spill] sm:$0xff] %v6880_v23  ;;  %v2018_v8 = vand.u32 4294901760, %v113_v43  ;;  %v6891_v15 = vsub.f32 %v107_v19, %v3294_v5  ;;  %v3298_v58 = vand.u32 4294901760, %v111_v35  ;;  %v124_v45 = vld [vmem:[#allocation8 + $0xf8] sm:$0xff]  ;;  %v6895_v41 = vsub.f32 %v110_v29, %v2012_v59 }
 0x105   :  { %4706 = vmatprep.subr.bf16.mxu0 %v9613_v56  ;;  %9616 = vst [vmem:[#allocation74_spill] sm:$0xff] %v6871_v61  ;;  %v9623_v56 = vld [vmem:[#allocation55_spill] sm:$0xff]  ;;  %9625 = vst [vmem:[#allocation82_spill] sm:$0xff] %v6886_v44  ;;  %v6893_v34 = vpack.c.bf16 %v2016_v50, %v2012_v59  ;;  %v3302_v23 = vand.u32 4294901760, %v115_v26  ;;  %v6897_v14 = vsub.f32 %v114_v46, %v2016_v50  ;;  %v2024_v44 = vand.u32 4294901760, %v122_v60  ;;  %v121_v9 = vld [vmem:[#allocation8 + $0xe0] sm:$0xff] }
 0x106   :  { %4896 = vmatpush1.bf16.msra.mxu1 %v9620_v22  ;;  %9626 = vst [vmem:[#allocation20_spill] sm:$0xff] %v6888_v28  ;;  %v9627_v61 = vld [vmem:[#allocation63_spill] sm:$0xff]  ;;  %9628 = vst [vmem:[#allocation22_spill] sm:$0xff] %v6891_v15  ;;  %v9632_v28 = vld [vmem:[#allocation60_spill] sm:$0xff]  ;;  %v6902_v19 = vsub.f32 %v112_v30, %v3296_v36  ;;  %v6904_v5 = vsub.f32 %v116_v63, %v3300_v57  ;;  %v6910_v50 = vpack.c.bf16 %v2018_v8, %v2014_v48 }
 0x107   :  { %4898 = vmatprep.subr.bf16.mxu1 %v9623_v56  ;;  %9629 = vst [vmem:[#allocation25_spill] sm:$0xff] %v6893_v34  ;;  %9630 = vst [vmem:[#allocation24_spill] sm:$0xff] %v6895_v41  ;;  %v6900_v56 = vpack.c.bf16 %v3300_v57, %v3296_v36  ;;  %v6906_v34 = vsub.f32 %v109_v12, %v2014_v48  ;;  %v119_v15 = vld [vmem:[#allocation8 + $0xd0] sm:$0xff]  ;;  %v9637_v29 = vld [vmem:[#allocation67_spill] sm:$0xff]  ;;  %v6912_v59 = vsub.f32 %v113_v43, %v2018_v8 }
 0x108   :  { %4708 = vmatpush1.bf16.msra.mxu0 %v9624_v21  ;;  %9631 = vst [vmem:[#allocation26_spill] sm:$0xff] %v6897_v14  ;;  %v2020_v21 = vand.u32 4294901760, %v118_v13  ;;  %9634 = vst [vmem:[#allocation29_spill] sm:$0xff] %v6902_v19  ;;  %v9638_v46 = vld [vmem:[#allocation68_spill] sm:$0xff]  ;;  %v3304_v14 = vand.u32 4294901760, %v120_v54  ;;  %v3308_v41 = vand.u32 4294901760, %v124_v45  ;;  %v6915_v63 = vpack.c.bf16 %v3302_v23, %v3298_v58 }
 0x109   :  { %4710 = vmatprep.subr.bf16.mxu0 %v9627_v61  ;;  %9633 = vst [vmem:[#allocation27_spill] sm:$0xff] %v6900_v56  ;;  %9635 = vst [vmem:[#allocation17_spill] sm:$0xff] %v6904_v5  ;;  %v123_v61 = vld [vmem:[#allocation8 + $0xf0] sm:$0xff]  ;;  %v130_v56 = vld [vmem:[#allocation8 + $0x128] sm:$0xff]  ;;  %v6917_v12 = vsub.f32 %v111_v35, %v3298_v58  ;;  %v2022_v36 = vand.u32 4294901760, %v117_v10  ;;  %v2026_v57 = vand.u32 4294901760, %v121_v9  ;;  %v6919_v5 = vsub.f32 %v115_v26, %v3302_v23 }
 0x10a   :  { %4900 = vmatpush1.bf16.msra.mxu1 %v9632_v28  ;;  %9636 = vst [vmem:[#allocation18_spill] sm:$0xff] %v6906_v34  ;;  %9639 = vst [vmem:[#allocation48_spill] sm:$0xff] %v6910_v50  ;;  %v126_v28 = vld [vmem:[#allocation8 + $0x108] sm:$0xff]  ;;  %v9641_v30 = vld [vmem:[#allocation70_spill] sm:$0xff]  ;;  %v6921_v19 = vpack.c.bf16 %v2024_v44, %v2020_v21  ;;  %v3306_v48 = vand.u32 4294901760, %v119_v15  ;;  %v3310_v43 = vand.u32 4294901760, %v123_v61  ;;  %v6924_v50 = vsub.f32 %v118_v13, %v2020_v21 }
 0x10b   :  { %4902 = vmatprep.subr.bf16.mxu1 %v9637_v29  ;;  %9640 = vst [vmem:[#allocation84_spill] sm:$0xff] %v6912_v59  ;;  %9642 = vst [vmem:[#allocation85_spill] sm:$0xff] %v6915_v63  ;;  %v128_v34 = vld [vmem:[#allocation8 + $0x118] sm:$0xff]  ;;  %v9646_v59 = vld [vmem:[#allocation69_spill] sm:$0xff]  ;;  %v2032_v63 = vand.u32 4294901760, %v130_v56  ;;  %v6930_v26 = vpack.c.bf16 %v3308_v41, %v3304_v14  ;;  %v6932_v23 = vsub.f32 %v120_v54, %v3304_v14 }
 0x10c   :  { %4712 = vmatpush1.bf16.msra.mxu0 %v9638_v46  ;;  %9643 = vst [vmem:[#allocation86_spill] sm:$0xff] %v6917_v12  ;;  %9644 = vst [vmem:[#allocation87_spill] sm:$0xff] %v6919_v5  ;;  %v132_v8 = vld [vmem:[#allocation8 + $0x138] sm:$0xff]  ;;  %v6926_v46 = vsub.f32 %v122_v60, %v2024_v44  ;;  %v125_v35 = vld [vmem:[#allocation8 + $0x100] sm:$0xff]  ;;  %v6934_v5 = vsub.f32 %v124_v45, %v3308_v41  ;;  %v6937_v60 = vpack.c.bf16 %v2026_v57, %v2022_v36 }
 0x10d   :  { %4714 = vmatprep.subr.bf16.mxu0 %v9641_v30  ;;  %9645 = vst [vmem:[#allocation88_spill] sm:$0xff] %v6921_v19  ;;  %9647 = vst [vmem:[#allocation89_spill] sm:$0xff] %v6924_v50  ;;  %v2028_v30 = vand.u32 4294901760, %v126_v28  ;;  %v129_v58 = vld [vmem:[#allocation8 + $0x120] sm:$0xff]  ;;  %v9649_v12 = vld [vmem:[#allocation73_spill] sm:$0xff]  ;;  %v3312_v19 = vand.u32 4294901760, %v128_v34  ;;  %v6939_v21 = vsub.f32 %v117_v10, %v2022_v36  ;;  %v6941_v44 = vsub.f32 %v121_v9, %v2026_v57 }
 0x10e   :  { %4904 = vmatpush1.bf16.msra.mxu1 %v9646_v59  ;;  %9648 = vst [vmem:[#allocation90_spill] sm:$0xff] %v6926_v46  ;;  %v9650_v29 = vld [vmem:[#allocation75_spill] sm:$0xff]  ;;  %9651 = vst [vmem:[#allocation91_spill] sm:$0xff] %v6930_v26  ;;  %v127_v59 = vld [vmem:[#allocation8 + $0x110] sm:$0xff]  ;;  %v3316_v46 = vand.u32 4294901760, %v132_v8  ;;  %v6945_v14 = vsub.f32 %v119_v15, %v3306_v48  ;;  %v2030_v45 = vand.u32 4294901760, %v125_v35 }
 0x10f   :  { %4906 = vmatprep.subr.bf16.mxu1 %v9649_v12  ;;  %9652 = vst [vmem:[#allocation92_spill] sm:$0xff] %v6932_v23  ;;  %9653 = vst [vmem:[#allocation93_spill] sm:$0xff] %v6934_v5  ;;  %v131_v13 = vld [vmem:[#allocation8 + $0x130] sm:$0xff]  ;;  %v134_v50 = vld [vmem:[#allocation8 + $0x148] sm:$0xff]  ;;  %v6943_v12 = vpack.c.bf16 %v3310_v43, %v3306_v48  ;;  %v2034_v41 = vand.u32 4294901760, %v129_v58  ;;  %v6951_v23 = vpack.c.bf16 %v2032_v63, %v2028_v30  ;;  %v3314_v10 = vand.u32 4294901760, %v127_v59 }
 0x110   :  { %4716 = vmatpush1.bf16.msra.mxu0 %v9650_v29  ;;  %9654 = vst [vmem:[#allocation94_spill] sm:$0xff] %v6937_v60  ;;  %9655 = vst [vmem:[#allocation95_spill] sm:$0xff] %v6939_v21  ;;  %v138_v29 = vld [vmem:[#allocation8 + $0x168] sm:$0xff]  ;;  %v9659_v54 = vld [vmem:[#allocation78_spill] sm:$0xff]  ;;  %v3318_v9 = vand.u32 4294901760, %v131_v13  ;;  %v6955_v15 = vsub.f32 %v126_v28, %v2028_v30  ;;  %v6957_v48 = vsub.f32 %v130_v56, %v2032_v63 }
 0x111   :  { %4718 = vmatprep.subr.bf16.mxu0 %v6832_v52  ;;  %9656 = vst [vmem:[#allocation96_spill] sm:$0xff] %v6941_v44  ;;  %9657 = vst [vmem:[#allocation97_spill] sm:$0xff] %v6943_v12  ;;  %v9660_v5 = vld [vmem:[#allocation83_spill] sm:$0xff]  ;;  %v6949_v52 = vsub.f32 %v123_v61, %v3310_v43  ;;  %v2040_v44 = vand.u32 4294901760, %v138_v29  ;;  %v133_v21 = vld [vmem:[#allocation8 + $0x140] sm:$0xff]  ;;  %v6961_v61 = vpack.c.bf16 %v3316_v46, %v3312_v19 }
 0x112   :  { %9658 = vst [vmem:[#allocation98_spill] sm:$0xff] %v6945_v14  ;;  %4908 = vmatpush1.bf16.msra.mxu1 %v9659_v54  ;;  %9662 = vst [vmem:[#allocation83_spill] sm:$0xff] %v6951_v23  ;;  %v136_v36 = vld [vmem:[#allocation8 + $0x158] sm:$0xff]  ;;  %v2036_v14 = vand.u32 4294901760, %v134_v50  ;;  %v137_v12 = vld [vmem:[#allocation8 + $0x160] sm:$0xff]  ;;  %v6963_v43 = vsub.f32 %v128_v34, %v3312_v19  ;;  %v6976_v34 = vpack.c.bf16 %v3318_v9, %v3314_v10  ;;  %v2038_v19 = vand.u32 4294901760, %v133_v21 }
 0x113   :  { %863 = vmatmul.mubr.f32.vlgmr.msra.gmra.mrb[0].mxu0 %v9660_v5  ;;  %9661 = vst [vmem:[#allocation78_spill] sm:$0xff] %v6949_v52  ;;  %v140_v57 = vld [vmem:[#allocation8 + $0x178] sm:$0xff]  ;;  %4910 = vmatprep.subr.bf16.mxu1 %v6596_v25  ;;  %9663 = vst [vmem:[#allocation99_spill] sm:$0xff] %v6955_v15  ;;  %v6965_v52 = vsub.f32 %v132_v8, %v3316_v46  ;;  %v6970_v25 = vsub.f32 %v125_v35, %v2030_v45  ;;  %v3320_v56 = vand.u32 4294901760, %v136_v36  ;;  %v135_v30 = vld [vmem:[#allocation8 + $0x150] sm:$0xff] }
 0x114   :  { %4720 = vmatpush1.bf16.msra.mxu0 %v6603_v27  ;;  %9664 = vst [vmem:[#allocation100_spill] sm:$0xff] %v6957_v48  ;;  %1029 = vmatprep.mubr.f32.mxu0 %v9482_v7  ;;  %9665 = vst [vmem:[#allocation101_spill] sm:$0xff] %v6961_v61  ;;  %v6968_v27 = vpack.c.bf16 %v2034_v41, %v2030_v45  ;;  %v3324_v28 = vand.u32 4294901760, %v140_v57  ;;  %v139_v63 = vld [vmem:[#allocation8 + $0x170] sm:$0xff]  ;;  %v2042_v46 = vand.u32 4294901760, %v137_v12  ;;  %v142_v8 = vld [vmem:[#allocation8 + $0x188] sm:$0xff] }
 0x115   :  { %4722 = vmatprep.subr.bf16.mxu0 %v6615_v18  ;;  %9666 = vst [vmem:[#allocation102_spill] sm:$0xff] %v6963_v43  ;;  %9667 = vst [vmem:[#allocation103_spill] sm:$0xff] %v6965_v52  ;;  %1718 = vmatmul.mubr.f32.vlgmr.msra.gmra.mrb[0].mxu1 %v9660_v5  ;;  %v6974_v18 = vsub.f32 %v129_v58, %v2034_v41  ;;  %v146_v5 = vld [vmem:[#allocation8 + $0x1a8] sm:$0xff]  ;;  %v6980_v35 = vsub.f32 %v127_v59, %v3314_v10  ;;  %v148_v52 = vld [vmem:[#allocation8 + $0x1b8] sm:$0xff]  ;;  %v3326_v43 = vand.u32 4294901760, %v139_v63 }
 0x116   :  { %9668 = vst [vmem:[#allocation104_spill] sm:$0xff] %v6968_v27  ;;  %9669 = vst [vmem:[#allocation105_spill] sm:$0xff] %v6970_v25  ;;  %4912 = vmatpush1.bf16.msra.mxu1 %v6609_v20  ;;  %1884 = vmatprep.mubr.f32.mxu1 %v9482_v7  ;;  %v6982_v45 = vsub.f32 %v131_v13, %v3318_v9  ;;  %v6984_v25 = vpack.c.bf16 %v2040_v44, %v2036_v14  ;;  %v144_v20 = vld [vmem:[#allocation8 + $0x198] sm:$0xff]  ;;  %v141_v48 = vld [vmem:[#allocation8 + $0x180] sm:$0xff]  ;;  %v2044_v59 = vand.u32 4294901760, %v142_v8 }
 0x117   :  { %9670 = vst [vmem:[#allocation106_spill] sm:$0xff] %v6974_v18  ;;  %9671 = vst [vmem:[#allocation107_spill] sm:$0xff] %v6976_v34  ;;  %4914 = vmatprep.subr.bf16.mxu1 %v6621_v4  ;;  %v6987_v58 = vsub.f32 %v134_v50, %v2036_v14  ;;  %v6989_v41 = vsub.f32 %v138_v29, %v2040_v44  ;;  %v3322_v18 = vand.u32 4294901760, %v135_v30  ;;  %v145_v4 = vld [vmem:[#allocation8 + $0x1a0] sm:$0xff]  ;;  %v2048_v13 = vand.u32 4294901760, %v146_v5  ;;  %v143_v29 = vld [vmem:[#allocation8 + $0x190] sm:$0xff] }
 0x118   :  { %4724 = vmatpush1.bf16.msra.mxu0 %v6627_v11  ;;  %9672 = vst [vmem:[#allocation108_spill] sm:$0xff] %v6980_v35  ;;  %9673 = vst [vmem:[#allocation109_spill] sm:$0xff] %v6982_v45  ;;  %v6991_v15 = vpack.c.bf16 %v3324_v28, %v3320_v56  ;;  %v6993_v11 = vsub.f32 %v136_v36, %v3320_v56  ;;  %v6996_v10 = vsub.f32 %v140_v57, %v3324_v28  ;;  %v147_v44 = vld [vmem:[#allocation8 + $0x1b0] sm:$0xff] }
 0x119   :  { %9674 = vst [vmem:[#allocation110_spill] sm:$0xff] %v6984_v25  ;;  %4726 = vmatprep.subr.bf16.mxu0 %v6639_v51  ;;  %9675 = vst [vmem:[#allocation111_spill] sm:$0xff] %v6987_v58  ;;  %v6998_v9 = vpack.c.bf16 %v2042_v46, %v2038_v19  ;;  %v3328_v51 = vand.u32 4294901760, %v144_v20  ;;  %v3332_v50 = vand.u32 4294901760, %v148_v52  ;;  %v7002_v14 = vsub.f32 %v133_v21, %v2038_v19 }
 0x11a   :  { %9676 = vst [vmem:[#allocation112_spill] sm:$0xff] %v6989_v41  ;;  %9677 = vst [vmem:[#allocation113_spill] sm:$0xff] %v6991_v15  ;;  %4916 = vmatpush1.bf16.msra.mxu1 %v6633_v0  ;;  %v7004_v36 = vsub.f32 %v137_v12, %v2042_v46  ;;  %v2046_v56 = vand.u32 4294901760, %v141_v48  ;;  %v150_v41 = vld [vmem:[#allocation8 + $0x1c8] sm:$0xff]  ;;  %v7007_v57 = vpack.c.bf16 %v3326_v43, %v3322_v18  ;;  %v3330_v19 = vand.u32 4294901760, %v143_v29 }
 0x11b   :  { %9678 = vst [vmem:[#allocation114_spill] sm:$0xff] %v6993_v11  ;;  %9679 = vst [vmem:[#allocation115_spill] sm:$0xff] %v6996_v10  ;;  %4918 = vmatprep.subr.bf16.mxu1 %v6645_v62  ;;  %v2050_v11 = vand.u32 4294901760, %v145_v4  ;;  %v154_v0 = vld [vmem:[#allocation8 + $0x1e8] sm:$0xff]  ;;  %v7009_v28 = vsub.f32 %v135_v30, %v3322_v18  ;;  %v7011_v10 = vsub.f32 %v139_v63, %v3326_v43  ;;  %v152_v62 = vld [vmem:[#allocation8 + $0x1d8] sm:$0xff]  ;;  %v3334_v46 = vand.u32 4294901760, %v147_v44 }
 0x11c   :  { %9680 = vst [vmem:[#allocation116_spill] sm:$0xff] %v6998_v9  ;;  %4728 = vmatpush1.bf16.msra.mxu0 %v6651_v6  ;;  %9681 = vst [vmem:[#allocation117_spill] sm:$0xff] %v7002_v14  ;;  %v7013_v58 = vsub.f32 %v142_v8, %v2044_v59  ;;  %v156_v6 = vld [vmem:[#allocation8 + $0x1f8] sm:$0xff]  ;;  %v7015_v21 = vpack.c.bf16 %v2048_v13, %v2044_v59  ;;  %v7017_v12 = vsub.f32 %v146_v5, %v2048_v13  ;;  %v153_v14 = vld [vmem:[#allocation8 + $0x1e0] sm:$0xff] }
 0x11d   :  { %9682 = vst [vmem:[#allocation118_spill] sm:$0xff] %v7004_v36  ;;  %4730 = vmatprep.subr.bf16.mxu0 %v6663_v38  ;;  %9683 = vst [vmem:[#allocation119_spill] sm:$0xff] %v7007_v57  ;;  %v149_v36 = vld [vmem:[#allocation8 + $0x1c0] sm:$0xff]  ;;  %v7020_v38 = vpack.c.bf16 %v3332_v50, %v3328_v51  ;;  %v7022_v30 = vsub.f32 %v144_v20, %v3328_v51  ;;  %v2052_v43 = vand.u32 4294901760, %v150_v41  ;;  %v2056_v63 = vand.u32 4294901760, %v154_v0  ;;  %v151_v13 = vld [vmem:[#allocation8 + $0x1d0] sm:$0xff] }
 0x11e   :  { %9684 = vst [vmem:[#allocation120_spill] sm:$0xff] %v7009_v28  ;;  %9685 = vst [vmem:[#allocation121_spill] sm:$0xff] %v7011_v10  ;;  %4920 = vmatpush1.bf16.msra.mxu1 %v6657_v16  ;;  %v7026_v18 = vsub.f32 %v148_v52, %v3332_v50  ;;  %v7028_v8 = vpack.c.bf16 %v2050_v11, %v2046_v56  ;;  %v3336_v5 = vand.u32 4294901760, %v152_v62  ;;  %v3340_v59 = vand.u32 4294901760, %v156_v6  ;;  %v164_v28 = vld [vmem:[#allocation8 + $0x238] sm:$0xff] }
 0x11f   :  { %9686 = vst [vmem:[#allocation122_spill] sm:$0xff] %v7013_v58  ;;  %9687 = vst [vmem:[#allocation123_spill] sm:$0xff] %v7015_v21  ;;  %4922 = vmatprep.subr.bf16.mxu1 %v6669_v32  ;;  %v7031_v16 = vsub.f32 %v141_v48, %v2046_v56  ;;  %v7033_v20 = vsub.f32 %v145_v4, %v2050_v11  ;;  %v2054_v51 = vand.u32 4294901760, %v149_v36  ;;  %v158_v58 = vld [vmem:[#allocation8 + $0x208] sm:$0xff]  ;;  %v3338_v4 = vand.u32 4294901760, %v151_v13  ;;  %v157_v56 = vld [vmem:[#allocation8 + $0x200] sm:$0xff] }
 0x120   :  { %9688 = vst [vmem:[#allocation124_spill] sm:$0xff] %v7017_v12  ;;  %9689 = vst [vmem:[#allocation125_spill] sm:$0xff] %v7020_v38  ;;  %4732 = vmatpush1.bf16.msra.mxu0 %v6675_v17  ;;  %v155_v12 = vld [vmem:[#allocation8 + $0x1f0] sm:$0xff]  ;;  %v162_v32 = vld [vmem:[#allocation8 + $0x228] sm:$0xff]  ;;  %v7035_v10 = vpack.c.bf16 %v3334_v46, %v3330_v19  ;;  %v7037_v17 = vsub.f32 %v143_v29, %v3330_v19  ;;  %v7039_v52 = vsub.f32 %v147_v44, %v3334_v46 }
 0x121   :  { %9690 = vst [vmem:[#allocation126_spill] sm:$0xff] %v7022_v30  ;;  %9691 = vst [vmem:[#allocation127_spill] sm:$0xff] %v7026_v18  ;;  %4734 = vmatprep.subr.bf16.mxu0 %v6687_v2  ;;  %v2058_v30 = vand.u32 4294901760, %v153_v14  ;;  %v7041_v50 = vsub.f32 %v150_v41, %v2052_v43  ;;  %v160_v18 = vld [vmem:[#allocation8 + $0x218] sm:$0xff]  ;;  %v7044_v2 = vpack.c.bf16 %v2056_v63, %v2052_v43  ;;  %v3342_v11 = vand.u32 4294901760, %v155_v12  ;;  %v9701_v29 = vld [vmem:[#allocation44_spill] sm:$0xff] }
 0x122   :  { %9692 = vst [vmem:[#allocation128_spill] sm:$0xff] %v7028_v8  ;;  %9693 = vst [vmem:[#allocation129_spill] sm:$0xff] %v7031_v16  ;;  %4924 = vmatpush1.bf16.msra.mxu1 %v6681_v40  ;;  %v7046_v48 = vsub.f32 %v154_v0, %v2056_v63  ;;  %v7050_v44 = vpack.c.bf16 %v3340_v59, %v3336_v5  ;;  %v7052_v41 = vsub.f32 %v152_v62, %v3336_v5  ;;  %v166_v62 = vld [vmem:[#allocation8 + $0x248] sm:$0xff] }
 0x123   :  { %9694 = vst [vmem:[#allocation130_spill] sm:$0xff] %v7033_v20  ;;  %9695 = vst [vmem:[#allocation131_spill] sm:$0xff] %v7035_v10  ;;  %v161_v20 = vld [vmem:[#allocation8 + $0x220] sm:$0xff]  ;;  %4926 = vmatprep.subr.bf16.mxu1 %v6693_v37  ;;  %v2060_v19 = vand.u32 4294901760, %v158_v58  ;;  %v2064_v46 = vand.u32 4294901760, %v162_v32  ;;  %v7055_v40 = vsub.f32 %v156_v6, %v3340_v59  ;;  %v7057_v0 = vpack.c.bf16 %v2058_v30, %v2054_v51  ;;  %v170_v5 = vld [vmem:[#allocation8 + $0x268] sm:$0xff] }
 0x124   :  { %9696 = vst [vmem:[#allocation132_spill] sm:$0xff] %v7037_v17  ;;  %9697 = vst [vmem:[#allocation133_spill] sm:$0xff] %v7039_v52  ;;  %4736 = vmatpush1.bf16.msra.mxu0 %v9701_v29  ;;  %v3344_v43 = vand.u32 4294901760, %v160_v18  ;;  %v3348_v63 = vand.u32 4294901760, %v164_v28  ;;  %v163_v52 = vld [vmem:[#allocation8 + $0x230] sm:$0xff]  ;;  %v7059_v17 = vsub.f32 %v149_v36, %v2054_v51  ;;  %v7061_v37 = vsub.f32 %v153_v14, %v2058_v30  ;;  %v9714_v36 = vld [vmem:[#allocation61_spill] sm:$0xff] }
 0x125   :  { %9698 = vst [vmem:[#allocation134_spill] sm:$0xff] %v7041_v50  ;;  %9699 = vst [vmem:[#allocation135_spill] sm:$0xff] %v7044_v2  ;;  %v9704_v50 = vld [vmem:[#allocation59_spill] sm:$0xff]  ;;  %v2062_v29 = vand.u32 4294901760, %v157_v56  ;;  %v2066_v16 = vand.u32 4294901760, %v161_v20  ;;  %v7064_v45 = vpack.c.bf16 %v3342_v11, %v3338_v4  ;;  %v7066_v6 = vsub.f32 %v151_v13, %v3338_v4  ;;  %v9715_v14 = vld [vmem:[#allocation62_spill] sm:$0xff] }
 0x126   :  { %9700 = vst [vmem:[#allocation136_spill] sm:$0xff] %v7046_v48  ;;  %9702 = vst [vmem:[#allocation44_spill] sm:$0xff] %v7050_v44  ;;  %4738 = vmatprep.subr.bf16.mxu0 %v9704_v50  ;;  %v159_v48 = vld [vmem:[#allocation8 + $0x210] sm:$0xff]  ;;  %v7068_v59 = vsub.f32 %v155_v12, %v3342_v11  ;;  %v7070_v50 = vsub.f32 %v158_v58, %v2060_v19  ;;  %v7074_v30 = vpack.c.bf16 %v2064_v46, %v2060_v19  ;;  %v9718_v13 = vld [vmem:[#allocation19_spill] sm:$0xff] }
 0x127   :  { %9703 = vst [vmem:[#allocation137_spill] sm:$0xff] %v7052_v41  ;;  %9705 = vst [vmem:[#allocation59_spill] sm:$0xff] %v7055_v40  ;;  %v9709_v41 = vld [vmem:[#allocation58_spill] sm:$0xff]  ;;  %v168_v40 = vld [vmem:[#allocation8 + $0x258] sm:$0xff]  ;;  %v7076_v51 = vsub.f32 %v162_v32, %v2064_v46  ;;  %v7079_v12 = vpack.c.bf16 %v3348_v63, %v3344_v43  ;;  %v7081_v58 = vsub.f32 %v160_v18, %v3344_v43  ;;  %v2068_v4 = vand.u32 4294901760, %v166_v62 }
 0x128   :  { %9706 = vst [vmem:[#allocation138_spill] sm:$0xff] %v7057_v0  ;;  %9707 = vst [vmem:[#allocation139_spill] sm:$0xff] %v7059_v17  ;;  %4928 = vmatpush1.bf16.msra.mxu1 %v9709_v41  ;;  %v172_v0 = vld [vmem:[#allocation8 + $0x278] sm:$0xff]  ;;  %4740 = vmatpush1.bf16.msra.mxu0 %v9715_v14  ;;  %v3350_v41 = vand.u32 4294901760, %v163_v52  ;;  %v165_v17 = vld [vmem:[#allocation8 + $0x240] sm:$0xff]  ;;  %v2072_v11 = vand.u32 4294901760, %v170_v5  ;;  %v7085_v19 = vpack.c.bf16 %v2066_v16, %v2062_v29 }
 0x129   :  { %9708 = vst [vmem:[#allocation140_spill] sm:$0xff] %v7061_v37  ;;  %9710 = vst [vmem:[#allocation58_spill] sm:$0xff] %v7064_v45  ;;  %4930 = vmatprep.subr.bf16.mxu1 %v9714_v36  ;;  %v3346_v37 = vand.u32 4294901760, %v159_v48  ;;  %v169_v45 = vld [vmem:[#allocation8 + $0x260] sm:$0xff]  ;;  %4742 = vmatprep.subr.bf16.mxu0 %v9718_v13  ;;  %v171_v36 = vld [vmem:[#allocation8 + $0x270] sm:$0xff]  ;;  %v3352_v32 = vand.u32 4294901760, %v168_v40 }
 0x12a   :  { %9711 = vst [vmem:[#allocation141_spill] sm:$0xff] %v7066_v6  ;;  %9712 = vst [vmem:[#allocation142_spill] sm:$0xff] %v7068_v59  ;;  %v7083_v59 = vsub.f32 %v164_v28, %v3348_v63  ;;  %v3356_v46 = vand.u32 4294901760, %v172_v0  ;;  %v9723_v14 = vld [vmem:[#allocation64_spill] sm:$0xff]  ;;  %v7090_v6 = vsub.f32 %v161_v20, %v2066_v16  ;;  %v2070_v13 = vand.u32 4294901760, %v165_v17  ;;  %v174_v18 = vld [vmem:[#allocation8 + $0x288] sm:$0xff] }
 0x12b   :  { %9713 = vst [vmem:[#allocation143_spill] sm:$0xff] %v7070_v50  ;;  %9716 = vst [vmem:[#allocation61_spill] sm:$0xff] %v7074_v30  ;;  %v167_v50 = vld [vmem:[#allocation8 + $0x250] sm:$0xff]  ;;  %v178_v43 = vld [vmem:[#allocation8 + $0x2a8] sm:$0xff]  ;;  %v7094_v28 = vpack.c.bf16 %v3350_v41, %v3346_v37  ;;  %v7096_v63 = vsub.f32 %v159_v48, %v3346_v37  ;;  %v7099_v16 = vsub.f32 %v163_v52, %v3350_v41  ;;  %v2076_v48 = vand.u32 4294901760, %v174_v18 }
 0x12c   :  { %9717 = vst [vmem:[#allocation62_spill] sm:$0xff] %v7076_v51  ;;  %9719 = vst [vmem:[#allocation19_spill] sm:$0xff] %v7079_v12  ;;  %4932 = vmatpush1.bf16.msra.mxu1 %v9723_v14  ;;  %v7088_v51 = vsub.f32 %v157_v56, %v2062_v29  ;;  %v2074_v12 = vand.u32 4294901760, %v169_v45  ;;  %v9727_v30 = vld [vmem:[#allocation23_spill] sm:$0xff]  ;;  %v9730_v56 = vld [vmem:[#allocation41_spill] sm:$0xff]  ;;  %v7101_v20 = vpack.c.bf16 %v2072_v11, %v2068_v4  ;;  %v2080_v37 = vand.u32 4294901760, %v178_v43 }
 0x12d   :  { %9720 = vst [vmem:[#allocation144_spill] sm:$0xff] %v7081_v58  ;;  %9721 = vst [vmem:[#allocation145_spill] sm:$0xff] %v7083_v59  ;;  %v9726_v58 = vld [vmem:[#allocation21_spill] sm:$0xff]  ;;  %4744 = vmatpush1.bf16.msra.mxu0 %v9727_v30  ;;  %v3354_v59 = vand.u32 4294901760, %v167_v50  ;;  %v176_v44 = vld [vmem:[#allocation8 + $0x298] sm:$0xff]  ;;  %v7103_v29 = vsub.f32 %v166_v62, %v2068_v4  ;;  %v7109_v30 = vsub.f32 %v168_v40, %v3352_v32 }
 0x12e   :  { %9722 = vst [vmem:[#allocation146_spill] sm:$0xff] %v7085_v19  ;;  %9724 = vst [vmem:[#allocation64_spill] sm:$0xff] %v7088_v51  ;;  %4934 = vmatprep.subr.bf16.mxu1 %v9726_v58  ;;  %v3358_v19 = vand.u32 4294901760, %v171_v36  ;;  %v180_v14 = vld [vmem:[#allocation8 + $0x2b8] sm:$0xff]  ;;  %4746 = vmatprep.subr.bf16.mxu0 %v9730_v56  ;;  %v7107_v58 = vpack.c.bf16 %v3356_v46, %v3352_v32  ;;  %v177_v51 = vld [vmem:[#allocation8 + $0x2a0] sm:$0xff]  ;;  %v7112_v10 = vsub.f32 %v172_v0, %v3356_v46 }
 0x12f   :  { %9725 = vst [vmem:[#allocation147_spill] sm:$0xff] %v7090_v6  ;;  %9728 = vst [vmem:[#allocation21_spill] sm:$0xff] %v7094_v28  ;;  %v7105_v6 = vsub.f32 %v170_v5, %v2072_v11  ;;  %v9737_v28 = vld [vmem:[#allocation40_spill] sm:$0xff]  ;;  %v7114_v52 = vpack.c.bf16 %v2074_v12, %v2070_v13  ;;  %v3360_v41 = vand.u32 4294901760, %v176_v44  ;;  %v3364_v56 = vand.u32 4294901760, %v180_v14  ;;  %v175_v62 = vld [vmem:[#allocation8 + $0x290] sm:$0xff] }
 0x130   :  { %9729 = vst [vmem:[#allocation23_spill] sm:$0xff] %v7096_v63  ;;  %9731 = vst [vmem:[#allocation41_spill] sm:$0xff] %v7099_v16  ;;  %v173_v63 = vld [vmem:[#allocation8 + $0x280] sm:$0xff]  ;;  %4936 = vmatpush1.bf16.msra.mxu1 %v9737_v28  ;;  %v179_v4 = vld [vmem:[#allocation8 + $0x2b0] sm:$0xff]  ;;  %v7118_v40 = vsub.f32 %v165_v17, %v2070_v13  ;;  %v7120_v5 = vsub.f32 %v169_v45, %v2074_v12  ;;  %v7122_v11 = vpack.c.bf16 %v3358_v19, %v3354_v59 }
 0x131   :  { %9732 = vst [vmem:[#allocation148_spill] sm:$0xff] %v7101_v20  ;;  %9733 = vst [vmem:[#allocation149_spill] sm:$0xff] %v7103_v29  ;;  %4938 = vmatprep.subr.bf16.mxu1 %v6765_v31  ;;  %4748 = vmatpush1.bf16.msra.mxu0 %v6771_v53  ;;  %v182_v32 = vld [vmem:[#allocation8 + $0x2c8] sm:$0xff]  ;;  %v7125_v0 = vsub.f32 %v167_v50, %v3354_v59  ;;  %v7127_v46 = vsub.f32 %v171_v36, %v3358_v19  ;;  %v2078_v28 = vand.u32 4294901760, %v173_v63  ;;  %v188_v31 = vld [vmem:[#allocation8 + $0x2f8] sm:$0xff] }
 0x132   :  { %9734 = vst [vmem:[#allocation150_spill] sm:$0xff] %v7105_v6  ;;  %9735 = vst [vmem:[#allocation151_spill] sm:$0xff] %v7107_v58  ;;  %4750 = vmatprep.subr.bf16.mxu0 %v9576_v1  ;;  %v184_v6 = vld [vmem:[#allocation8 + $0x2d8] sm:$0xff]  ;;  %v7129_v29 = vpack.c.bf16 %v2080_v37, %v2076_v48  ;;  %v7131_v53 = vsub.f32 %v174_v18, %v2076_v48  ;;  %v3362_v45 = vand.u32 4294901760, %v175_v62  ;;  %v3366_v17 = vand.u32 4294901760, %v179_v4  ;;  %v9747_v12 = vld [vmem:[#allocation81_spill] sm:$0xff] }
 0x133   :  { %9736 = vst [vmem:[#allocation152_spill] sm:$0xff] %v7109_v30  ;;  %9738 = vst [vmem:[#allocation40_spill] sm:$0xff] %v7112_v10  ;;  %v2082_v10 = vand.u32 4294901760, %v177_v51  ;;  %v186_v30 = vld [vmem:[#allocation8 + $0x2e8] sm:$0xff]  ;;  %v7135_v1 = vsub.f32 %v178_v43, %v2080_v37  ;;  %v7137_v59 = vpack.c.bf16 %v3364_v56, %v3360_v41  ;;  %v7139_v50 = vsub.f32 %v176_v44, %v3360_v41  ;;  %v181_v36 = vld [vmem:[#allocation8 + $0x2c0] sm:$0xff] }
 0x134   :  { %9739 = vst [vmem:[#allocation153_spill] sm:$0xff] %v7114_v52  ;;  %9740 = vst [vmem:[#allocation154_spill] sm:$0xff] %v7118_v40  ;;  %4940 = vmatpush1.bf16.msra.mxu1 %v6779_v42  ;;  %1031 = vmatmul.mubr.f32.vlgmr.msra.gmra.mrb[0].mxu0 %v9747_v12  ;;  %v185_v19 = vld [vmem:[#allocation8 + $0x2e0] sm:$0xff]  ;;  %v2084_v13 = vand.u32 4294901760, %v182_v32  ;;  %v2088_v18 = vand.u32 4294901760, %v186_v30  ;;  %v3368_v48 = vand.u32 4294901760, %v184_v6  ;;  %v7145_v42 = vsub.f32 %v180_v14, %v3364_v56 }
 0x135   :  { %9741 = vst [vmem:[#allocation155_spill] sm:$0xff] %v7120_v5  ;;  %9742 = vst [vmem:[#allocation156_spill] sm:$0xff] %v7122_v11  ;;  %4942 = vmatprep.subr.bf16.mxu1 %v9578_v55  ;;  %4752 = vmatpush1.bf16.msra.mxu0 %v9579_v3  ;;  %v7147_v43 = vpack.c.bf16 %v2082_v10, %v2078_v28  ;;  %v7149_v44 = vsub.f32 %v173_v63, %v2078_v28  ;;  %v183_v37 = vld [vmem:[#allocation8 + $0x2d0] sm:$0xff]  ;;  %v2086_v41 = vand.u32 4294901760, %v181_v36  ;;  %v192_v28 = vld [vmem:[#allocation8 + $0x318] sm:$0xff] }
 0x136   :  { %9743 = vst [vmem:[#allocation157_spill] sm:$0xff] %v7125_v0  ;;  %9744 = vst [vmem:[#allocation158_spill] sm:$0xff] %v7127_v46  ;;  %4754 = vmatprep.subr.bf16.mxu0 %v9580_v33  ;;  %1133 = vmatprep.mubr.f32.mxu0 %v9482_v7  ;;  %v7152_v55 = vsub.f32 %v177_v51, %v2082_v10  ;;  %v7154_v3 = vpack.c.bf16 %v3366_v17, %v3362_v45  ;;  %v190_v46 = vld [vmem:[#allocation8 + $0x308] sm:$0xff]  ;;  %v9767_v5 = vld [vmem:[#allocation30_spill] sm:$0xff] }
 0x137   :  { %9745 = vst [vmem:[#allocation159_spill] sm:$0xff] %v7129_v29  ;;  %9746 = vst [vmem:[#allocation160_spill] sm:$0xff] %v7131_v53  ;;  %v3372_v53 = vand.u32 4294901760, %v188_v31  ;;  %1886 = vmatmul.mubr.f32.vlgmr.msra.gmra.mrb[0].mxu1 %v9747_v12  ;;  %v194_v33 = vld [vmem:[#allocation8 + $0x328] sm:$0xff]  ;;  %v7158_v14 = vsub.f32 %v175_v62, %v3362_v45  ;;  %v7160_v63 = vsub.f32 %v179_v4, %v3366_v17  ;;  %v3370_v62 = vand.u32 4294901760, %v183_v37  ;;  %v191_v17 = vld [vmem:[#allocation8 + $0x310] sm:$0xff] }
 0x138   :  { %9748 = vst [vmem:[#allocation81_spill] sm:$0xff] %v7135_v1  ;;  %9749 = vst [vmem:[#allocation161_spill] sm:$0xff] %v7137_v59  ;;  %v187_v1 = vld [vmem:[#allocation8 + $0x2f0] sm:$0xff]  ;;  %4944 = vmatpush1.bf16.msra.mxu1 %v9581_v24  ;;  %1988 = vmatprep.mubr.f32.mxu1 %v9482_v7  ;;  %v7162_v56 = vsub.f32 %v182_v32, %v2084_v13  ;;  %v7166_v10 = vpack.c.bf16 %v2088_v18, %v2084_v13  ;;  %v196_v24 = vld [vmem:[#allocation8 + $0x338] sm:$0xff]  ;;  %v2092_v32 = vand.u32 4294901760, %v190_v46 }
 0x139   :  { %9750 = vst [vmem:[#allocation162_spill] sm:$0xff] %v7139_v50  ;;  %9751 = vst [vmem:[#allocation163_spill] sm:$0xff] %v7145_v42  ;;  %v2090_v50 = vand.u32 4294901760, %v185_v19  ;;  %4946 = vmatprep.subr.bf16.mxu1 %v9582_v47  ;;  %4756 = vmatpush1.bf16.msra.mxu0 %v9583_v49  ;;  %v7168_v51 = vsub.f32 %v186_v30, %v2088_v18  ;;  %v193_v7 = vld [vmem:[#allocation8 + $0x320] sm:$0xff]  ;;  %v3374_v4 = vand.u32 4294901760, %v187_v1  ;;  %v2096_v45 = vand.u32 4294901760, %v194_v33 }
 0x13a   :  { %9752 = vst [vmem:[#allocation164_spill] sm:$0xff] %v7147_v43  ;;  %9753 = vst [vmem:[#allocation165_spill] sm:$0xff] %v7149_v44  ;;  %v189_v44 = vld [vmem:[#allocation8 + $0x300] sm:$0xff]  ;;  %4758 = vmatprep.subr.bf16.mxu0 %v9584_v39  ;;  %v7173_v47 = vsub.f32 %v184_v6, %v3368_v48  ;;  %v7175_v49 = vsub.f32 %v188_v31, %v3372_v53  ;;  %v7179_v30 = vsub.f32 %v181_v36, %v2086_v41  ;;  %v198_v42 = vld [vmem:[#allocation8 + $0x348] sm:$0xff] }
 0x13b   :  { %9754 = vst [vmem:[#allocation166_spill] sm:$0xff] %v7152_v55  ;;  %9755 = vst [vmem:[#allocation167_spill] sm:$0xff] %v7154_v3  ;;  %v7170_v55 = vpack.c.bf16 %v3372_v53, %v3368_v48  ;;  %v7177_v13 = vpack.c.bf16 %v2090_v50, %v2086_v41  ;;  %v9766_v18 = vld [vmem:[#allocation28_spill] sm:$0xff]  ;;  %v2098_v39 = vand.u32 4294901760, %v193_v7  ;;  %v202_v0 = vld [vmem:[#allocation8 + $0x368] sm:$0xff]  ;;  %v7184_v6 = vsub.f32 %v185_v19, %v2090_v50 }
 0x13c   :  { %9756 = vst [vmem:[#allocation168_spill] sm:$0xff] %v7158_v14  ;;  %9757 = vst [vmem:[#allocation169_spill] sm:$0xff] %v7160_v63  ;;  %4948 = vmatpush1.bf16.msra.mxu1 %v9766_v18  ;;  %v3380_v63 = vand.u32 4294901760, %v196_v24  ;;  %v2094_v14 = vand.u32 4294901760, %v189_v44  ;;  %v9768_v40 = vld [vmem:[#allocation31_spill] sm:$0xff]  ;;  %v7186_v31 = vsub.f32 %v183_v37, %v3370_v62  ;;  %v3378_v53 = vand.u32 4294901760, %v191_v17 }
 0x13d   :  { %9758 = vst [vmem:[#allocation170_spill] sm:$0xff] %v7162_v56  ;;  %9759 = vst [vmem:[#allocation171_spill] sm:$0xff] %v7166_v10  ;;  %v195_v56 = vld [vmem:[#allocation8 + $0x330] sm:$0xff]  ;;  %4950 = vmatprep.subr.bf16.mxu1 %v9767_v5  ;;  %4760 = vmatpush1.bf16.msra.mxu0 %v9768_v40  ;;  %v9771_v36 = vld [vmem:[#allocation33_spill] sm:$0xff]  ;;  %v7189_v41 = vpack.c.bf16 %v3374_v4, %v3370_v62  ;;  %v7191_v18 = vsub.f32 %v187_v1, %v3374_v4  ;;  %v2100_v50 = vand.u32 4294901760, %v198_v42 }
 0x13e   :  { %9760 = vst [vmem:[#allocation172_spill] sm:$0xff] %v7168_v51  ;;  %9761 = vst [vmem:[#allocation173_spill] sm:$0xff] %v7170_v55  ;;  %v3376_v51 = vand.u32 4294901760, %v192_v28  ;;  %v3382_v48 = vand.u32 4294901760, %v195_v56  ;;  %4762 = vmatprep.subr.bf16.mxu0 %v9771_v36  ;;  %v204_v5 = vld [vmem:[#allocation8 + $0x378] sm:$0xff]  ;;  %v7197_v16 = vsub.f32 %v194_v33, %v2096_v45  ;;  %v2104_v19 = vand.u32 4294901760, %v202_v0 }
 0x13f   :  { %9762 = vst [vmem:[#allocation174_spill] sm:$0xff] %v7173_v47  ;;  %9763 = vst [vmem:[#allocation175_spill] sm:$0xff] %v7175_v49  ;;  %v7195_v49 = vsub.f32 %v190_v46, %v2092_v32  ;;  %v200_v47 = vld [vmem:[#allocation8 + $0x358] sm:$0xff]  ;;  %v197_v37 = vld [vmem:[#allocation8 + $0x340] sm:$0xff]  ;;  %v7204_v1 = vsub.f32 %v196_v24, %v3380_v63  ;;  %v7206_v4 = vpack.c.bf16 %v2098_v39, %v2094_v14 }
 0x140   :  { %9764 = vst [vmem:[#allocation176_spill] sm:$0xff] %v7177_v13  ;;  %9765 = vst [vmem:[#allocation177_spill] sm:$0xff] %v7179_v30  ;;  %v7193_v30 = vpack.c.bf16 %v2096_v45, %v2092_v32  ;;  %v7199_v40 = vsub.f32 %v192_v28, %v3376_v51  ;;  %v9778_v36 = vld [vmem:[#allocation32_spill] sm:$0xff]  ;;  %v7202_v62 = vpack.c.bf16 %v3380_v63, %v3376_v51  ;;  %v199_v32 = vld [vmem:[#allocation8 + $0x350] sm:$0xff] }
 0x141   :  { %9769 = vst [vmem:[#allocation28_spill] sm:$0xff] %v7184_v6  ;;  %9770 = vst [vmem:[#allocation30_spill] sm:$0xff] %v7186_v31  ;;  %v201_v31 = vld [vmem:[#allocation8 + $0x360] sm:$0xff]  ;;  %v92_v6 = vld [vmem:[#allocation2 + $0x8] sm:$0xff]  ;;  %4952 = vmatpush1.bf16.msra.mxu1 %v9778_v36  ;;  %v7208_v46 = vsub.f32 %v189_v44, %v2094_v14  ;;  %v7212_v45 = vsub.f32 %v193_v7, %v2098_v39  ;;  %v7217_v24 = vsub.f32 %v191_v17, %v3378_v53 }
 0x142   :  { %9772 = vst [vmem:[#allocation31_spill] sm:$0xff] %v7189_v41  ;;  %9773 = vst [vmem:[#allocation33_spill] sm:$0xff] %v7191_v18  ;;  %v9783_v33 = vld [vmem:[#allocation34_spill] sm:$0xff]  ;;  %v9784_v28 = vld [vmem:[#allocation35_spill] sm:$0xff]  ;;  %v2102_v44 = vand.u32 4294901760, %v197_v37  ;;  %v2106_v14 = vand.u32 4294901760, %v201_v31  ;;  %v7225_v7 = vsub.f32 %v198_v42, %v2100_v50  ;;  %v7227_v39 = vsub.f32 %v202_v0, %v2104_v19 }
 0x143   :  { %9774 = vst [vmem:[#allocation178_spill] sm:$0xff] %v7193_v30  ;;  %9775 = vst [vmem:[#allocation179_spill] sm:$0xff] %v7195_v49  ;;  %4954 = vmatprep.subr.bf16.mxu1 %v9783_v33  ;;  %4764 = vmatpush1.bf16.msra.mxu0 %v9784_v28  ;;  %v3388_v49 = vand.u32 4294901760, %v204_v5  ;;  %v203_v36 = vld [vmem:[#allocation8 + $0x370] sm:$0xff]  ;;  %v206_v51 = vld [vmem:[#allocation8 + $0x388] sm:$0xff]  ;;  %v7221_v33 = vsub.f32 %v195_v56, %v3382_v48  ;;  %v7223_v28 = vpack.c.bf16 %v2104_v19, %v2100_v50 }
 0x144   :  { %9776 = vst [vmem:[#allocation180_spill] sm:$0xff] %v7197_v16  ;;  %9777 = vst [vmem:[#allocation181_spill] sm:$0xff] %v7199_v40  ;;  %v7214_v40 = vpack.c.bf16 %v3382_v48, %v3378_v53  ;;  %v3384_v16 = vand.u32 4294901760, %v200_v47  ;;  %v210_v18 = vld [vmem:[#allocation8 + $0x3a8] sm:$0xff]  ;;  %v9787_v63 = vld [vmem:[#allocation39_spill] sm:$0xff]  ;;  %v2108_v17 = vand.u32 4294901760, %v206_v51 }
 0x145   :  { %9779 = vst [vmem:[#allocation32_spill] sm:$0xff] %v7202_v62  ;;  %9780 = vst [vmem:[#allocation182_spill] sm:$0xff] %v7204_v1  ;;  %4766 = vmatprep.subr.bf16.mxu0 %v9787_v63  ;;  %v212_v1 = vld [vmem:[#allocation8 + $0x3b8] sm:$0xff]  ;;  %v3390_v63 = vand.u32 4294901760, %v203_v36  ;;  %v2112_v53 = vand.u32 4294901760, %v210_v18  ;;  %v209_v62 = vld [vmem:[#allocation8 + $0x3a0] sm:$0xff]  ;;  %v7236_v0 = vsub.f32 %v204_v5, %v3388_v49 }
 0x146   :  { %9781 = vst [vmem:[#allocation183_spill] sm:$0xff] %v7206_v4  ;;  %9782 = vst [vmem:[#allocation184_spill] sm:$0xff] %v7208_v46  ;;  %v7219_v46 = vand.u32 4294901760, %v92_v6  ;;  %v3386_v4 = vand.u32 4294901760, %v199_v32  ;;  %v9795_v41 = vld [vmem:[#allocation43_spill] sm:$0xff]  ;;  %v9796_v56 = vld [vmem:[#allocation45_spill] sm:$0xff]  ;;  %v7232_v48 = vpack.c.bf16 %v3388_v49, %v3384_v16  ;;  %v7234_v42 = vsub.f32 %v200_v47, %v3384_v16 }
 0x147   :  { %9785 = vst [vmem:[#allocation34_spill] sm:$0xff] %v7212_v45  ;;  %9786 = vst [vmem:[#allocation35_spill] sm:$0xff] %v7214_v40  ;;  %v208_v45 = vld [vmem:[#allocation8 + $0x398] sm:$0xff]  ;;  %v9794_v40 = vld [vmem:[#allocation36_spill] sm:$0xff]  ;;  %4768 = vmatpush1.bf16.msra.mxu0 %v9796_v56  ;;  %v3396_v16 = vand.u32 4294901760, %v212_v1  ;;  %v2114_v49 = vand.u32 4294901760, %v209_v62 }
 0x148   :  { %9788 = vst [vmem:[#allocation39_spill] sm:$0xff] %v7217_v24  ;;  %9789 = vst [vmem:[#allocation185_spill] sm:$0xff] %v7219_v46  ;;  %4956 = vmatpush1.bf16.msra.mxu1 %v9794_v40  ;;  %v205_v24 = vld [vmem:[#allocation8 + $0x380] sm:$0xff]  ;;  %v207_v50 = vld [vmem:[#allocation8 + $0x390] sm:$0xff]  ;;  %v7239_v40 = vpack.c.bf16 %v2106_v14, %v2102_v44  ;;  %v7246_v56 = vsub.f32 %v92_v6, %v7219_v46  ;;  %v7249_v5 = vpack.c.bf16 %v3390_v63, %v3386_v4 }
 0x149   :  { %9790 = vst [vmem:[#allocation186_spill] sm:$0xff] %v7221_v33  ;;  %9791 = vst [vmem:[#allocation187_spill] sm:$0xff] %v7223_v28  ;;  %4958 = vmatprep.subr.bf16.mxu1 %v9795_v41  ;;  %v9800_v19 = vld [vmem:[#allocation51_spill] sm:$0xff]  ;;  %v211_v33 = vld [vmem:[#allocation8 + $0x3b0] sm:$0xff]  ;;  %v2110_v47 = vand.u32 4294901760, %v205_v24  ;;  %v3394_v6 = vand.u32 4294901760, %v207_v50 }
 0x14a   :  { %9792 = vst [vmem:[#allocation188_spill] sm:$0xff] %v7225_v7  ;;  %9793 = vst [vmem:[#allocation189_spill] sm:$0xff] %v7227_v39  ;;  %4770 = vmatprep.subr.bf16.mxu0 %v9800_v19  ;;  %v7241_v39 = vsub.f32 %v197_v37, %v2102_v44  ;;  %v7243_v7 = vsub.f32 %v201_v31, %v2106_v14  ;;  %v214_v28 = vld [vmem:[#allocation8 + $0x3c8] sm:$0xff]  ;;  %v7251_v19 = vsub.f32 %v199_v32, %v3386_v4  ;;  %v9809_v44 = vld [vmem:[#allocation55_spill] sm:$0xff] }
 0x14b   :  { %9797 = vst [vmem:[#allocation36_spill] sm:$0xff] %v7232_v48  ;;  %9798 = vst [vmem:[#allocation43_spill] sm:$0xff] %v7234_v42  ;;  %v218_v41 = vld [vmem:[#allocation8 + $0x3e8] sm:$0xff]  ;;  %v3392_v48 = vand.u32 4294901760, %v208_v45  ;;  %v7253_v37 = vsub.f32 %v203_v36, %v3390_v63  ;;  %v7255_v31 = vpack.c.bf16 %v2112_v53, %v2108_v17  ;;  %v216_v42 = vld [vmem:[#allocation8 + $0x3d8] sm:$0xff]  ;;  %v7267_v36 = vand.u32 4294901760, %v7246_v56 }
 0x14c   :  { %9799 = vst [vmem:[#allocation45_spill] sm:$0xff] %v7236_v0  ;;  %9801 = vst [vmem:[#allocation51_spill] sm:$0xff] %v7239_v40  ;;  %4960 = vmatpush1.bf16.msra.mxu1 %v9620_v22  ;;  %v9810_v14 = vld [vmem:[#allocation57_spill] sm:$0xff]  ;;  %v2120_v0 = vand.u32 4294901760, %v218_v41  ;;  %v9811_v46 = vld [vmem:[#allocation63_spill] sm:$0xff]  ;;  %v7260_v22 = vsub.f32 %v206_v51, %v2108_v17  ;;  %v3400_v17 = vand.u32 4294901760, %v216_v42 }
 0x14d   :  { %9802 = vst [vmem:[#allocation190_spill] sm:$0xff] %v7241_v39  ;;  %9803 = vst [vmem:[#allocation191_spill] sm:$0xff] %v7243_v7  ;;  %4962 = vmatprep.subr.bf16.mxu1 %v9809_v44  ;;  %4772 = vmatpush1.bf16.msra.mxu0 %v9810_v14  ;;  %v3398_v7 = vand.u32 4294901760, %v211_v33  ;;  %v2116_v39 = vand.u32 4294901760, %v214_v28  ;;  %v7264_v4 = vsub.f32 %v208_v45, %v3392_v48  ;;  %v220_v32 = vld [vmem:[#allocation8 + $0x3f8] sm:$0xff]  ;;  %v9820_v51 = vld [vmem:[#allocation60_spill] sm:$0xff] }
 0x14e   :  { %9804 = vst [vmem:[#allocation192_spill] sm:$0xff] %v7246_v56  ;;  %9805 = vst [vmem:[#allocation193_spill] sm:$0xff] %v7249_v5  ;;  %4774 = vmatprep.subr.bf16.mxu0 %v9811_v46  ;;  %v7262_v5 = vsub.f32 %v210_v18, %v2112_v53  ;;  %v7269_v63 = vpack.c.bf16 %v3396_v16, %v3392_v48  ;;  %v7271_v44 = vsub.f32 %v212_v1, %v3396_v16  ;;  %v217_v46 = vld [vmem:[#allocation8 + $0x3e0] sm:$0xff]  ;;  %v215_v53 = vld [vmem:[#allocation8 + $0x3d0] sm:$0xff] }
 0x14f   :  { %9806 = vst [vmem:[#allocation194_spill] sm:$0xff] %v7251_v19  ;;  %9807 = vst [vmem:[#allocation195_spill] sm:$0xff] %v7253_v37  ;;  %v7273_v14 = vpack.c.bf16 %v2114_v49, %v2110_v47  ;;  %v7275_v37 = vsub.f32 %v205_v24, %v2110_v47  ;;  %v213_v19 = vld [vmem:[#allocation8 + $0x3c0] sm:$0xff]  ;;  %v7278_v18 = vsub.f32 %v209_v62, %v2114_v49  ;;  %v91_v62 = vld [vmem:[#allocation2] sm:$0xff] }
 0x150   :  { %9808 = vst [vmem:[#allocation196_spill] sm:$0xff] %v7255_v31  ;;  %9812 = vst [vmem:[#allocation55_spill] sm:$0xff] %v7260_v22  ;;  %4964 = vmatpush1.bf16.msra.mxu1 %v9820_v51  ;;  %v7280_v45 = vsub.f32 %v207_v50, %v3394_v6  ;;  %v9824_v22 = vld [vmem:[#allocation67_spill] sm:$0xff]  ;;  %v9825_v1 = vld [vmem:[#allocation68_spill] sm:$0xff]  ;;  %v7285_v16 = vpack.c.bf16 %v3398_v7, %v3394_v6  ;;  %v7287_v24 = vsub.f32 %v211_v33, %v3398_v7 }
 0x151   :  { %9813 = vst [vmem:[#allocation57_spill] sm:$0xff] %v7262_v5  ;;  %9814 = vst [vmem:[#allocation63_spill] sm:$0xff] %v7264_v4  ;;  %v219_v4 = vld [vmem:[#allocation8 + $0x3f0] sm:$0xff]  ;;  %4966 = vmatprep.subr.bf16.mxu1 %v9824_v22  ;;  %4776 = vmatpush1.bf16.msra.mxu0 %v9825_v1  ;;  %v7289_v47 = vpack.c.bf16 %v2120_v0, %v2116_v39  ;;  %v3404_v51 = vand.u32 4294901760, %v220_v32  ;;  %v7292_v50 = vsub.f32 %v214_v28, %v2116_v39  ;;  %v9833_v7 = vld [vmem:[#allocation69_spill] sm:$0xff] }
 0x152   :  { %9815 = vst [vmem:[#allocation197_spill] sm:$0xff] %v7267_v36  ;;  %9816 = vst [vmem:[#allocation198_spill] sm:$0xff] %v7269_v63  ;;  %v9823_v5 = vld [vmem:[#allocation38_spill] sm:$0xff]  ;;  %v2127_v48 = vsub.f32 %v7246_v56, %v7267_v36  ;;  %v7296_v22 = vsub.f32 %v218_v41, %v2120_v0  ;;  %v3402_v1 = vand.u32 4294901760, %v215_v53  ;;  %v3406_v6 = vand.u32 4294901760, %v219_v4  ;;  %v9836_v39 = vld [vmem:[#allocation47_spill] sm:$0xff] }
 0x153   :  { %9817 = vst [vmem:[#allocation199_spill] sm:$0xff] %v7271_v44  ;;  %9818 = vst [vmem:[#allocation200_spill] sm:$0xff] %v7273_v14  ;;  %v9829_v49 = vld [vmem:[#allocation70_spill] sm:$0xff]  ;;  %v9835_v44 = vand.u32 4294901760, %v9823_v5  ;;  %v9838_v36 = vld [vmem:[#allocation73_spill] sm:$0xff]  ;;  %v7312_v41 = vpack.c.bf16 %v3404_v51, %v3400_v17  ;;  %v7314_v33 = vsub.f32 %v220_v32, %v3404_v51 }
 0x154   :  { %9819 = vst [vmem:[#allocation201_spill] sm:$0xff] %v7275_v37  ;;  %9821 = vst [vmem:[#allocation60_spill] sm:$0xff] %v7278_v18  ;;  %4778 = vmatprep.subr.bf16.mxu0 %v9829_v49  ;;  %v2122_v18 = vand.u32 4294901760, %v217_v46  ;;  %v9832_v37 = vld [vmem:[#allocation42_spill] sm:$0xff]  ;;  %4968 = vmatpush1.bf16.msra.mxu1 %v9833_v7  ;;  %v9839_v0 = vld [vmem:[#allocation75_spill] sm:$0xff] }
 0x155   :  { %9822 = vst [vmem:[#allocation202_spill] sm:$0xff] %v7280_v45  ;;  %9826 = vst [vmem:[#allocation67_spill] sm:$0xff] %v7285_v16  ;;  %v2118_v45 = vand.u32 4294901760, %v213_v19  ;;  %v7305_v28 = vsub.f32 %v9823_v5, %v9835_v44  ;;  %4970 = vmatprep.subr.bf16.mxu1 %v9838_v36  ;;  %4780 = vmatpush1.bf16.msra.mxu0 %v9839_v0  ;;  %v9842_v7 = vld [vmem:[#allocation49_spill] sm:$0xff]  ;;  %v9843_v56 = vld [vmem:[#allocation52_spill] sm:$0xff]  ;;  %v2128_v16 = vand.u32 4294901760, %v2127_v48 }
 0x156   :  { %9827 = vst [vmem:[#allocation68_spill] sm:$0xff] %v7287_v24  ;;  %9828 = vst [vmem:[#allocation203_spill] sm:$0xff] %v7289_v47  ;;  %v7300_v24 = vsub.f32 %v216_v42, %v3400_v17  ;;  %v9178_v42 = vand.u32 4294901760, %v9842_v7  ;;  %v7323_v49 = vsub.f32 %v217_v46, %v2122_v18  ;;  %v7325_v36 = vpack.c.bf16 %v3406_v6, %v3402_v1  ;;  %v9855_v48 = vld [vmem:[#allocation46_spill] sm:$0xff]  ;;  %v9890_v47 = vld [vmem:[#allocation17_spill] sm:$0xff] }
 0x157   :  { %9830 = vst [vmem:[#allocation70_spill] sm:$0xff] %v7292_v50  ;;  %9831 = vst [vmem:[#allocation204_spill] sm:$0xff] %v7296_v22  ;;  %v7308_v50 = vand.u32 4294901760, %v91_v62  ;;  %v9844_v22 = vld [vmem:[#allocation37_spill] sm:$0xff]  ;;  %v7319_v44 = vpack.c.bf16 %v2122_v18, %v2118_v45  ;;  %v7321_v5 = vsub.f32 %v213_v19, %v2118_v45  ;;  %v7327_v0 = vsub.f32 %v215_v53, %v3402_v1  ;;  %v9856_v1 = vld [vmem:[#allocation50_spill] sm:$0xff] }
 0x158   :  { %9834 = vst [vmem:[#allocation69_spill] sm:$0xff] %v7300_v24  ;;  %9840 = vst [vmem:[#allocation73_spill] sm:$0xff] %v7312_v41  ;;  %v9180_v24 = vand.u32 4294901760, %v9843_v56  ;;  %4974 = vmatprep.subr.bf16.mxu0 %v9844_v22  ;;  %v7329_v17 = vsub.f32 %v219_v4, %v3406_v6  ;;  %v9851_v32 = vand.u32 4294901760, %v9832_v37  ;;  %4972 = vmatpush1.bf16.msra.mxu1 %v9659_v54  ;;  %v9852_v46 = vand.u32 4294901760, %v9836_v39  ;;  %v9854_v4 = vld [vmem:[#allocation53_spill] sm:$0xff] }
 0x159   :  { %9837 = vst [vmem:[#allocation205_spill] sm:$0xff] %v7308_v50  ;;  %9841 = vst [vmem:[#allocation75_spill] sm:$0xff] %v7314_v33  ;;  %1135 = vmatmul.mubr.f32.vlgmr.msra.gmra.mrb[0].mxu0 %v9747_v12  ;;  %v7345_v45 = vsub.f32 %v91_v62, %v7308_v50  ;;  %5358 = vmatprep.subr.bf16.mxu1 %v9855_v48  ;;  %v7353_v54 = vsub.f32 %v9842_v7, %v9178_v42  ;;  %v9858_v62 = vld [vmem:[#allocation65_spill] sm:$0xff]  ;;  %v9859_v22 = vld [vmem:[#allocation66_spill] sm:$0xff]  ;;  %v9869_v7 = vand.u32 4294901760, %v9854_v4 }
 0x15a   :  { %9845 = vst [vmem:[#allocation206_spill] sm:$0xff] %v7319_v44  ;;  %9846 = vst [vmem:[#allocation207_spill] sm:$0xff] %v7321_v5  ;;  %v7334_v51 = vsub.f32 %v9832_v37, %v9851_v32  ;;  %v7342_v18 = vsub.f32 %v9836_v39, %v9852_v46  ;;  %4976 = vmatpush1.bf16.msra.mxu0 %v9856_v1  ;;  %v7358_v6 = vsub.f32 %v9843_v56, %v9180_v24  ;;  %v9857_v32 = vld [vmem:[#allocation56_spill] sm:$0xff]  ;;  %v9860_v53 = vld [vmem:[#allocation71_spill] sm:$0xff] }
 0x15b   :  { %9847 = vst [vmem:[#allocation208_spill] sm:$0xff] %v7323_v49  ;;  %9848 = vst [vmem:[#allocation209_spill] sm:$0xff] %v7325_v36  ;;  %4978 = vmatprep.subr.bf16.mxu0 %v9859_v22  ;;  %2129 = vmatprep.mubr.f32.mxu0 %v2128_v16  ;;  %v9861_v1 = vld [vmem:[#allocation72_spill] sm:$0xff]  ;;  %v9863_v42 = vld [vmem:[#allocation77_spill] sm:$0xff]  ;;  %v7375_v50 = vand.u32 4294901760, %v7345_v45  ;;  %v3441_v49 = vand.u32 4294901760, %v7353_v54 }
 0x15c   :  { %9849 = vst [vmem:[#allocation210_spill] sm:$0xff] %v7327_v0  ;;  %9850 = vst [vmem:[#allocation211_spill] sm:$0xff] %v7329_v17  ;;  %v9862_v39 = vld [vmem:[#allocation76_spill] sm:$0xff]  ;;  %1990 = vmatmul.mubr.f32.vlgmr.msra.gmra.mrb[0].mxu1 %v9747_v12  ;;  %v2157_v24 = vand.u32 4294901760, %v7334_v51  ;;  %v9864_v56 = vld [vmem:[#allocation79_spill] sm:$0xff]  ;;  %v3429_v48 = vand.u32 4294901760, %v7342_v18  ;;  %v2162_v12 = vsub.f32 %v9854_v4, %v9869_v7 }
 0x15d   :  { %9853 = vst [vmem:[#allocation212_spill] sm:$0xff] %v7345_v45  ;;  %v9865_v46 = vld [vmem:[#allocation16_spill] sm:$0xff]  ;;  %v9867_v22 = vld [vmem:[#allocation54_spill] sm:$0xff]  ;;  %3413 = vmatprep.mubr.f32.mxu1 %v2128_v16  ;;  %9868 = vst [vmem:[#allocation213_spill] sm:$0xff] %v7375_v50  ;;  %v2151_v0 = vand.u32 4294901760, %v7358_v6  ;;  %v9873_v16 = vand.u32 4294901760, %v9857_v32 }
 0x15e   :  { %v9866_v19 = vld [vmem:[#allocation20_spill] sm:$0xff]  ;;  %5360 = vmatpush1.bf16.msra.mxu1 %v9867_v22  ;;  %v9870_v37 = vld [vmem:[#allocation22_spill] sm:$0xff]  ;;  %v9874_v22 = vand.u32 4294901760, %v9858_v62  ;;  %v9875_v36 = vld [vmem:[#allocation25_spill] sm:$0xff]  ;;  %v9876_v7 = vand.u32 4294901760, %v9860_v53  ;;  %v9878_v6 = vand.u32 4294901760, %v9862_v39 }
 0x15f   :  { %v9871_v5 = vld [vmem:[#allocation74_spill] sm:$0xff]  ;;  %v9872_v17 = vld [vmem:[#allocation80_spill] sm:$0xff]  ;;  %v3434_v18 = vsub.f32 %v9857_v32, %v9873_v16  ;;  %v9879_v16 = vand.u32 4294901760, %v9863_v42  ;;  %v9887_v41 = vld [vmem:[#allocation27_spill] sm:$0xff] }
 0x160   :  { %5362 = vmatprep.subr.bf16.mxu1 %v9871_v5  ;;  %4980 = vmatpush1.bf16.msra.mxu0 %v9872_v17  ;;  %v3446_v33 = vsub.f32 %v9858_v62, %v9874_v22  ;;  %v2168_v51 = vsub.f32 %v9860_v53, %v9876_v7  ;;  %v9877_v17 = vand.u32 4294901760, %v9861_v1  ;;  %v3452_v5 = vsub.f32 %v9862_v39, %v9878_v6  ;;  %v9884_v44 = vld [vmem:[#allocation82_spill] sm:$0xff]  ;;  %v9891_v14 = vld [vmem:[#allocation88_spill] sm:$0xff] }
 0x161   :  { %4982 = vmatprep.subr.bf16.mxu0 %v9875_v36  ;;  %v3464_v32 = vsub.f32 %v9863_v42, %v9879_v16  ;;  %v9880_v22 = vand.u32 4294901760, %v9864_v56  ;;  %v9881_v62 = vand.u32 4294901760, %v9865_v46  ;;  %v9882_v53 = vand.u32 4294901760, %v9866_v19 }
 0x162   :  { %v2180_v54 = vsub.f32 %v9861_v1, %v9877_v17  ;;  %v9883_v1 = vld [vmem:[#allocation24_spill] sm:$0xff]  ;;  %5364 = vmatpush1.bf16.msra.mxu1 %v9884_v44  ;;  %v2133_v6 = vsub.f32 %v7345_v45, %v7375_v50  ;;  %v2163_v16 = vand.u32 4294901760, %v2162_v12  ;;  %v9885_v42 = vand.u32 4294901760, %v9870_v37 }
 0x163   :  { %v2174_v36 = vsub.f32 %v9864_v56, %v9880_v22  ;;  %v2186_v7 = vsub.f32 %v9865_v46, %v9881_v62  ;;  %v3458_v17 = vsub.f32 %v9866_v19, %v9882_v53  ;;  %v9886_v56 = vld [vmem:[#allocation26_spill] sm:$0xff]  ;;  %5366 = vmatprep.subr.bf16.mxu1 %v9887_v41  ;;  %v9888_v62 = vld [vmem:[#allocation48_spill] sm:$0xff]  ;;  %v3435_v46 = vand.u32 4294901760, %v3434_v18  ;;  %v9889_v19 = vld [vmem:[#allocation29_spill] sm:$0xff] }
 0x164   :  { %v3470_v22 = vsub.f32 %v9870_v37, %v9885_v42  ;;  %4984 = vmatpush1.bf16.msra.mxu0 %v9888_v62  ;;  %v3447_v53 = vand.u32 4294901760, %v3446_v33  ;;  %v2169_v50 = vand.u32 4294901760, %v2168_v51  ;;  %v2181_v12 = vand.u32 4294901760, %v2180_v54  ;;  %v9893_v18 = vld [vmem:[#allocation85_spill] sm:$0xff]  ;;  %v9895_v51 = vld [vmem:[#allocation18_spill] sm:$0xff] }
 0x165   :  { %4986 = vmatprep.subr.bf16.mxu0 %v9891_v14  ;;  %v3453_v45 = vand.u32 4294901760, %v3452_v5  ;;  %v3465_v63 = vand.u32 4294901760, %v3464_v32  ;;  %v2175_v31 = vand.u32 4294901760, %v2174_v36  ;;  %v2187_v42 = vand.u32 4294901760, %v2186_v7  ;;  %v9896_v5 = vld [vmem:[#allocation84_spill] sm:$0xff]  ;;  %v9900_v54 = vld [vmem:[#allocation86_spill] sm:$0xff] }
 0x166   :  { %v3459_v37 = vand.u32 4294901760, %v3458_v17  ;;  %v9892_v39 = vand.u32 4294901760, %v9883_v1  ;;  %5368 = vmatpush1.bf16.msra.mxu1 %v9893_v18  ;;  %v3471_v33 = vand.u32 4294901760, %v3470_v22  ;;  %v9894_v4 = vand.u32 4294901760, %v9886_v56  ;;  %v9901_v14 = vld [vmem:[#allocation97_spill] sm:$0xff] }
 0x167   :  { %5370 = vmatprep.subr.bf16.mxu1 %v6930_v26  ;;  %v9897_v36 = vand.u32 4294901760, %v7305_v28  ;;  %v9898_v7 = vand.u32 4294901760, %v9889_v19  ;;  %v7457_v26 = vpack.c.bf16 %v3441_v49, %v3429_v48  ;;  %v7463_v28 = vpack.c.bf16 %v3447_v53, %v3435_v46  ;;  %v9906_v53 = vld [vmem:[#allocation89_spill] sm:$0xff] }
 0x168   :  { %v7429_v41 = vsub.f32 %v9883_v1, %v9892_v39  ;;  %v7435_v44 = vsub.f32 %v9886_v56, %v9894_v4  ;;  %4988 = vmatpush1.bf16.msra.mxu0 %v6937_v60  ;;  %v9899_v4 = vand.u32 4294901760, %v9890_v47  ;;  %v7459_v60 = vand.u32 4294901760, %v2133_v6  ;;  %v9905_v6 = vld [vmem:[#allocation87_spill] sm:$0xff]  ;;  %v9909_v49 = vld [vmem:[#allocation93_spill] sm:$0xff] }
 0x169   :  { %v7443_v39 = vpack.c.bf16 %v2157_v24, %v9897_v36  ;;  %v7448_v17 = vsub.f32 %v9889_v19, %v9898_v7  ;;  %4990 = vmatprep.subr.bf16.mxu0 %v6951_v23  ;;  %v7461_v24 = vpack.c.bf16 %v2163_v16, %v2151_v0  ;;  %v7465_v36 = vpack.c.bf16 %v2181_v12, %v2169_v50  ;;  %v10031_v19 = vld [vmem:[#allocation154_spill] sm:$0xff]  ;;  %v10032_v1 = vld [vmem:[#allocation155_spill] sm:$0xff] }
 0x16a   :  { %v7453_v22 = vsub.f32 %v9890_v47, %v9899_v4  ;;  %v7467_v7 = vpack.c.bf16 %v3465_v63, %v3453_v45  ;;  %v7469_v18 = vpack.c.bf16 %v2187_v42, %v2175_v31  ;;  %5372 = vmatpush1.bf16.msra.mxu1 %v9901_v14  ;;  %v7473_v32 = vpack.c.bf16 %v3471_v33, %v3459_v37  ;;  %v9907_v42 = vld [vmem:[#allocation90_spill] sm:$0xff]  ;;  %v9910_v31 = vld [vmem:[#allocation95_spill] sm:$0xff]  ;;  %v9911_v37 = vld [vmem:[#allocation96_spill] sm:$0xff] }
 0x16b   :  { %v9902_v48 = vand.u32 4294901760, %v9895_v51  ;;  %v9903_v50 = vand.u32 4294901760, %v9896_v5  ;;  %5374 = vmatprep.subr.bf16.mxu1 %v6961_v61  ;;  %v9904_v45 = vand.u32 4294901760, %v9900_v54  ;;  %v9912_v14 = vld [vmem:[#allocation98_spill] sm:$0xff]  ;;  %v9916_v23 = vand.u32 4294901760, %v9905_v6 }
 0x16c   :  { %4992 = vmatpush1.bf16.msra.mxu0 %v6968_v27  ;;  %v9917_v27 = vld [vmem:[#allocation102_spill] sm:$0xff]  ;;  %v9920_v33 = vand.u32 4294901760, %v9907_v42  ;;  %v9321_v56 = vand.u32 4294901760, %v10031_v19 }
 0x16d   :  { %v7479_v0 = vsub.f32 %v9895_v51, %v9902_v48  ;;  %v7484_v63 = vsub.f32 %v9896_v5, %v9903_v50  ;;  %v7493_v46 = vsub.f32 %v9900_v54, %v9904_v45  ;;  %4994 = vmatprep.subr.bf16.mxu0 %v6984_v25  ;;  %v9908_v48 = vld [vmem:[#allocation92_spill] sm:$0xff]  ;;  %v9913_v45 = vld [vmem:[#allocation78_spill] sm:$0xff]  ;;  %v9914_v25 = vld [vmem:[#allocation99_spill] sm:$0xff]  ;;  %v3494_v62 = vsub.f32 %v9905_v6, %v9916_v23 }
 0x16e   :  { %5376 = vmatpush1.bf16.msra.mxu1 %v6976_v34  ;;  %v9915_v54 = vld [vmem:[#allocation100_spill] sm:$0xff]  ;;  %v9918_v34 = vld [vmem:[#allocation103_spill] sm:$0xff]  ;;  %v9922_v23 = vand.u32 4294901760, %v9909_v49  ;;  %v9924_v6 = vand.u32 4294901760, %v9911_v37 }
 0x16f   :  { %v2199_v16 = vand.u32 4294901760, %v7479_v0  ;;  %v2211_v12 = vand.u32 4294901760, %v7484_v63  ;;  %5378 = vmatprep.subr.bf16.mxu1 %v6991_v15  ;;  %v3483_v61 = vand.u32 4294901760, %v7493_v46  ;;  %v9919_v63 = vand.u32 4294901760, %v9906_v53  ;;  %v9933_v51 = vld [vmem:[#allocation131_spill] sm:$0xff] }
 0x170   :  { %4996 = vmatpush1.bf16.msra.mxu0 %v6998_v9  ;;  %v2228_v9 = vsub.f32 %v9907_v42, %v9920_v33  ;;  %v9921_v46 = vand.u32 4294901760, %v9908_v48  ;;  %v3512_v4 = vsub.f32 %v9909_v49, %v9922_v23  ;;  %v9923_v0 = vand.u32 4294901760, %v9910_v31 }
 0x171   :  { %4998 = vmatprep.subr.bf16.mxu0 %v7015_v21  ;;  %v2216_v50 = vsub.f32 %v9906_v53, %v9919_v63  ;;  %v2234_v63 = vsub.f32 %v9911_v37, %v9924_v6  ;;  %v9925_v53 = vand.u32 4294901760, %v9912_v14  ;;  %v9926_v42 = vand.u32 4294901760, %v9913_v45  ;;  %v9930_v37 = vld [vmem:[#allocation106_spill] sm:$0xff] }
 0x172   :  { %v3500_v15 = vsub.f32 %v9908_v48, %v9921_v46  ;;  %v2222_v21 = vsub.f32 %v9910_v31, %v9923_v0  ;;  %5380 = vmatpush1.bf16.msra.mxu1 %v7007_v57  ;;  %v9927_v23 = vand.u32 4294901760, %v9914_v25  ;;  %v9928_v0 = vand.u32 4294901760, %v9915_v54  ;;  %v9929_v48 = vld [vmem:[#allocation105_spill] sm:$0xff] }
 0x173   :  { %v3506_v33 = vsub.f32 %v9912_v14, %v9925_v53  ;;  %v3518_v46 = vsub.f32 %v9913_v45, %v9926_v42  ;;  %5382 = vmatprep.subr.bf16.mxu1 %v7020_v38  ;;  %v3495_v53 = vand.u32 4294901760, %v3494_v62  ;;  %v9931_v42 = vand.u32 4294901760, %v9917_v27 }
 0x174   :  { %v2240_v49 = vsub.f32 %v9914_v25, %v9927_v23  ;;  %v2252_v31 = vsub.f32 %v9915_v54, %v9928_v0  ;;  %5000 = vmatpush1.bf16.msra.mxu0 %v7028_v8  ;;  %v9932_v45 = vand.u32 4294901760, %v9918_v34  ;;  %v2217_v0 = vand.u32 4294901760, %v2216_v50  ;;  %v9936_v50 = vld [vmem:[#allocation44_spill] sm:$0xff] }
 0x175   :  { %v3524_v57 = vsub.f32 %v9917_v27, %v9931_v42  ;;  %5002 = vmatprep.subr.bf16.mxu0 %v7044_v2  ;;  %v2229_v6 = vand.u32 4294901760, %v2228_v9  ;;  %v3501_v5 = vand.u32 4294901760, %v3500_v15  ;;  %v3513_v54 = vand.u32 4294901760, %v3512_v4  ;;  %v9937_v15 = vld [vmem:[#allocation138_spill] sm:$0xff] }
 0x176   :  { %v3536_v23 = vsub.f32 %v9918_v34, %v9932_v45  ;;  %v2223_v38 = vand.u32 4294901760, %v2222_v21  ;;  %v2235_v25 = vand.u32 4294901760, %v2234_v63  ;;  %v3507_v8 = vand.u32 4294901760, %v3506_v33  ;;  %5384 = vmatpush1.bf16.msra.mxu1 %v9933_v51  ;;  %v9940_v33 = vld [vmem:[#allocation61_spill] sm:$0xff] }
 0x177   :  { %v3519_v62 = vand.u32 4294901760, %v3518_v46  ;;  %v2241_v47 = vand.u32 4294901760, %v2240_v49  ;;  %v2253_v42 = vand.u32 4294901760, %v2252_v31  ;;  %v9934_v27 = vand.u32 4294901760, %v9929_v48  ;;  %5386 = vmatprep.subr.bf16.mxu1 %v9936_v50  ;;  %v9939_v49 = vld [vmem:[#allocation109_spill] sm:$0xff] }
 0x178   :  { %v9935_v14 = vand.u32 4294901760, %v9930_v37  ;;  %5004 = vmatpush1.bf16.msra.mxu0 %v9937_v15  ;;  %v3525_v9 = vand.u32 4294901760, %v3524_v57  ;;  %v3537_v21 = vand.u32 4294901760, %v3536_v23  ;;  %v9938_v4 = vand.u32 4294901760, %v6980_v35 }
 0x179   :  { %v2246_v45 = vsub.f32 %v9929_v48, %v9934_v27  ;;  %5006 = vmatprep.subr.bf16.mxu0 %v9940_v33  ;;  %v9941_v27 = vand.u32 4294901760, %v7429_v41  ;;  %v9942_v46 = vand.u32 4294901760, %v7435_v44  ;;  %v9943_v50 = vand.u32 4294901760, %v7448_v17  ;;  %v9946_v41 = vld [vmem:[#allocation112_spill] sm:$0xff] }
 0x17a   :  { %v2258_v2 = vsub.f32 %v9930_v37, %v9935_v14  ;;  %v7574_v63 = vsub.f32 %v6980_v35, %v9938_v4  ;;  %v9944_v57 = vand.u32 4294901760, %v7453_v22  ;;  %v7590_v15 = vpack.c.bf16 %v2211_v12, %v2199_v16  ;;  %v9945_v4 = vld [vmem:[#allocation111_spill] sm:$0xff]  ;;  %v9979_v37 = vld [vmem:[#allocation136_spill] sm:$0xff] }
 0x17b   :  { %v7582_v14 = vpack.c.bf16 %v9942_v46, %v9941_v27  ;;  %v9257_v51 = vand.u32 4294901760, %v9945_v4  ;;  %v7593_v35 = vpack.c.bf16 %v3495_v53, %v3483_v61  ;;  %v7595_v31 = vpack.c.bf16 %v2229_v6, %v2217_v0  ;;  %v9947_v27 = vld [vmem:[#allocation58_spill] sm:$0xff]  ;;  %v9948_v12 = vld [vmem:[#allocation19_spill] sm:$0xff] }
 0x17c   :  { %v7588_v23 = vpack.c.bf16 %v9944_v57, %v9943_v50  ;;  %v7597_v33 = vpack.c.bf16 %v3513_v54, %v3501_v5  ;;  %v9259_v44 = vand.u32 4294901760, %v9946_v41  ;;  %5388 = vmatpush1.bf16.msra.mxu1 %v9947_v27  ;;  %v7601_v46 = vpack.c.bf16 %v2235_v25, %v2223_v38  ;;  %v9949_v50 = vld [vmem:[#allocation146_spill] sm:$0xff] }
 0x17d   :  { %v7603_v17 = vpack.c.bf16 %v3519_v62, %v3507_v8  ;;  %v7605_v22 = vpack.c.bf16 %v2253_v42, %v2241_v47  ;;  %v2247_v16 = vand.u32 4294901760, %v2246_v45  ;;  %5390 = vmatprep.subr.bf16.mxu1 %v9948_v12  ;;  %5008 = vmatpush1.bf16.msra.mxu0 %v9949_v50  ;;  %v7609_v61 = vpack.c.bf16 %v3537_v21, %v3525_v9  ;;  %v9951_v38 = vld [vmem:[#allocation114_spill] sm:$0xff]  ;;  %v9952_v47 = vld [vmem:[#allocation115_spill] sm:$0xff]  ;;  %v9953_v62 = vld [vmem:[#allocation117_spill] sm:$0xff] }
 0x17e   :  { %v2259_v6 = vand.u32 4294901760, %v2258_v2  ;;  %v9950_v5 = vand.u32 4294901760, %v9939_v49  ;;  %5010 = vmatprep.subr.bf16.mxu0 %v7101_v20  ;;  %v7621_v25 = vsub.f32 %v9945_v4, %v9257_v51  ;;  %v2276_v42 = vsub.f32 %v9946_v41, %v9259_v44  ;;  %v9954_v45 = vld [vmem:[#allocation118_spill] sm:$0xff]  ;;  %v9955_v21 = vld [vmem:[#allocation120_spill] sm:$0xff]  ;;  %v9957_v20 = vld [vmem:[#allocation21_spill] sm:$0xff] }
 0x17f   :  { %v9958_v51 = vld [vmem:[#allocation122_spill] sm:$0xff]  ;;  %v9959_v12 = vld [vmem:[#allocation124_spill] sm:$0xff]  ;;  %v9962_v9 = vld [vmem:[#allocation129_spill] sm:$0xff]  ;;  %v9964_v0 = vand.u32 4294901760, %v9951_v38  ;;  %v9965_v50 = vand.u32 4294901760, %v9952_v47  ;;  %v9967_v54 = vand.u32 4294901760, %v9954_v45 }
 0x180   :  { %v7615_v53 = vsub.f32 %v9939_v49, %v9950_v5  ;;  %v9956_v5 = vld [vmem:[#allocation121_spill] sm:$0xff]  ;;  %5392 = vmatpush1.bf16.msra.mxu1 %v9957_v20  ;;  %v9960_v27 = vld [vmem:[#allocation126_spill] sm:$0xff]  ;;  %v9961_v49 = vld [vmem:[#allocation127_spill] sm:$0xff]  ;;  %v7639_v44 = vpack.c.bf16 %v2259_v6, %v2247_v16  ;;  %v2265_v8 = vand.u32 4294901760, %v7621_v25  ;;  %v9966_v16 = vand.u32 4294901760, %v9953_v62 }
 0x181   :  { %5394 = vmatprep.subr.bf16.mxu1 %v7107_v58  ;;  %5012 = vmatpush1.bf16.msra.mxu0 %v7114_v52  ;;  %v9963_v41 = vld [vmem:[#allocation130_spill] sm:$0xff]  ;;  %v3548_v2 = vsub.f32 %v9951_v38, %v9964_v0  ;;  %v3560_v52 = vsub.f32 %v9952_v47, %v9965_v50  ;;  %v2282_v20 = vsub.f32 %v9954_v45, %v9967_v54  ;;  %v9969_v58 = vand.u32 4294901760, %v9956_v5 }
 0x182   :  { %v3543_v57 = vand.u32 4294901760, %v7615_v53  ;;  %5014 = vmatprep.subr.bf16.mxu0 %v7129_v29  ;;  %v2270_v6 = vsub.f32 %v9953_v62, %v9966_v16  ;;  %v2277_v53 = vand.u32 4294901760, %v2276_v42  ;;  %v9968_v29 = vand.u32 4294901760, %v9955_v21 }
 0x183   :  { %v3566_v0 = vsub.f32 %v9956_v5, %v9969_v58  ;;  %v9970_v50 = vand.u32 4294901760, %v9958_v51  ;;  %v9971_v42 = vand.u32 4294901760, %v9959_v12  ;;  %v9972_v54 = vand.u32 4294901760, %v9960_v27  ;;  %v9976_v5 = vld [vmem:[#allocation132_spill] sm:$0xff] }
 0x184   :  { %v3554_v25 = vsub.f32 %v9955_v21, %v9968_v29  ;;  %5396 = vmatpush1.bf16.msra.mxu1 %v7122_v11  ;;  %v9973_v29 = vand.u32 4294901760, %v9961_v49  ;;  %v9974_v58 = vand.u32 4294901760, %v9962_v9  ;;  %v9975_v11 = vand.u32 4294901760, %v9963_v41 }
 0x185   :  { %v2288_v47 = vsub.f32 %v9958_v51, %v9970_v50  ;;  %v2300_v16 = vsub.f32 %v9959_v12, %v9971_v42  ;;  %v3572_v45 = vsub.f32 %v9960_v27, %v9972_v54  ;;  %5398 = vmatprep.subr.bf16.mxu1 %v7137_v59  ;;  %5016 = vmatpush1.bf16.msra.mxu0 %v7147_v43  ;;  %v9977_v51 = vld [vmem:[#allocation133_spill] sm:$0xff]  ;;  %v3549_v27 = vand.u32 4294901760, %v3548_v2  ;;  %v9978_v59 = vld [vmem:[#allocation134_spill] sm:$0xff] }
 0x186   :  { %v3584_v21 = vsub.f32 %v9961_v49, %v9973_v29  ;;  %v2294_v50 = vsub.f32 %v9962_v9, %v9974_v58  ;;  %v2306_v42 = vsub.f32 %v9963_v41, %v9975_v11  ;;  %v9287_v54 = vand.u32 4294901760, %v9977_v51  ;;  %5018 = vmatprep.subr.bf16.mxu0 %v7166_v10  ;;  %v9993_v10 = vld [vmem:[#allocation187_spill] sm:$0xff] }
 0x187   :  { %v3561_v29 = vand.u32 4294901760, %v3560_v52  ;;  %v2271_v49 = vand.u32 4294901760, %v2270_v6  ;;  %v9296_v62 = vand.u32 4294901760, %v9978_v59  ;;  %v2283_v43 = vand.u32 4294901760, %v2282_v20 }
 0x188   :  { %v3555_v38 = vand.u32 4294901760, %v3554_v25  ;;  %v3567_v4 = vand.u32 4294901760, %v3566_v0  ;;  %5400 = vmatpush1.bf16.msra.mxu1 %v7154_v3  ;;  %v2289_v9 = vand.u32 4294901760, %v2288_v47  ;;  %v2301_v11 = vand.u32 4294901760, %v2300_v16  ;;  %v9982_v0 = vld [vmem:[#allocation137_spill] sm:$0xff] }
 0x189   :  { %v3573_v41 = vand.u32 4294901760, %v3572_v45  ;;  %v3585_v12 = vand.u32 4294901760, %v3584_v21  ;;  %5402 = vmatprep.subr.bf16.mxu1 %v7170_v55  ;;  %5020 = vmatpush1.bf16.msra.mxu0 %v7177_v13  ;;  %v2295_v2 = vand.u32 4294901760, %v2294_v50  ;;  %v2307_v52 = vand.u32 4294901760, %v2306_v42  ;;  %v9983_v50 = vld [vmem:[#allocation59_spill] sm:$0xff]  ;;  %v9986_v55 = vld [vmem:[#allocation140_spill] sm:$0xff] }
 0x18a   :  { %v9980_v6 = vand.u32 4294901760, %v9976_v5  ;;  %v3590_v25 = vsub.f32 %v9977_v51, %v9287_v54  ;;  %5022 = vmatprep.subr.bf16.mxu0 %v7193_v30  ;;  %v9981_v47 = vand.u32 4294901760, %v7574_v63  ;;  %v2312_v21 = vsub.f32 %v9978_v59, %v9296_v62  ;;  %v9985_v13 = vld [vmem:[#allocation139_spill] sm:$0xff]  ;;  %v10010_v51 = vld [vmem:[#allocation196_spill] sm:$0xff] }
 0x18b   :  { %v7709_v58 = vpack.c.bf16 %v2277_v53, %v2265_v8  ;;  %v7719_v3 = vpack.c.bf16 %v2283_v43, %v2271_v49  ;;  %v7721_v62 = vpack.c.bf16 %v3567_v4, %v3555_v38  ;;  %v7723_v16 = vpack.c.bf16 %v2301_v11, %v2289_v9  ;;  %v9989_v8 = vld [vmem:[#allocation32_spill] sm:$0xff]  ;;  %v9990_v53 = vld [vmem:[#allocation183_spill] sm:$0xff]  ;;  %v9996_v9 = vld [vmem:[#allocation141_spill] sm:$0xff] }
 0x18c   :  { %v3578_v20 = vsub.f32 %v9976_v5, %v9980_v6  ;;  %v7702_v45 = vpack.c.bf16 %v3543_v57, %v9981_v47  ;;  %v9984_v6 = vand.u32 4294901760, %v9979_v37  ;;  %v9987_v57 = vld [vmem:[#allocation31_spill] sm:$0xff]  ;;  %v7717_v47 = vpack.c.bf16 %v3561_v29, %v3549_v27  ;;  %v10030_v59 = vld [vmem:[#allocation40_spill] sm:$0xff] }
 0x18d   :  { %5404 = vmatpush1.bf16.msra.mxu1 %v9987_v57  ;;  %9988 = vst [vmem:[#allocation214_spill] sm:$0xff] %v7721_v62  ;;  %5024 = vmatpush1.bf16.msra.mxu0 %v9990_v53  ;;  %v7727_v42 = vpack.c.bf16 %v3585_v12, %v3573_v41  ;;  %v3591_v63 = vand.u32 4294901760, %v3590_v25  ;;  %v2313_v27 = vand.u32 4294901760, %v2312_v21  ;;  %v9994_v43 = vand.u32 4294901760, %v9982_v0  ;;  %v10000_v21 = vld [vmem:[#allocation35_spill] sm:$0xff]  ;;  %v10003_v41 = vld [vmem:[#allocation144_spill] sm:$0xff] }
 0x18e   :  { %v2324_v54 = vsub.f32 %v9979_v37, %v9984_v6  ;;  %5406 = vmatprep.subr.bf16.mxu1 %v9989_v8  ;;  %v7729_v6 = vpack.c.bf16 %v2307_v52, %v2295_v2  ;;  %v3579_v30 = vand.u32 4294901760, %v3578_v20  ;;  %5026 = vmatprep.subr.bf16.mxu0 %v9993_v10  ;;  %v9995_v4 = vand.u32 4294901760, %v9983_v50  ;;  %v9999_v20 = vld [vmem:[#allocation142_spill] sm:$0xff]  ;;  %v10004_v8 = vld [vmem:[#allocation145_spill] sm:$0xff]  ;;  %v10026_v5 = vld [vmem:[#allocation203_spill] sm:$0xff] }
 0x18f   :  { %9991 = vst [vmem:[#allocation215_spill] sm:$0xff] %v7727_v42  ;;  %v7735_v49 = vsub.f32 %v9982_v0, %v9994_v43  ;;  %v9997_v29 = vand.u32 4294901760, %v9985_v13  ;;  %v9998_v2 = vand.u32 4294901760, %v9986_v55  ;;  %v10001_v43 = vld [vmem:[#allocation143_spill] sm:$0xff]  ;;  %v10002_v10 = vld [vmem:[#allocation62_spill] sm:$0xff]  ;;  %v10011_v57 = vand.u32 4294901760, %v9996_v9 }
 0x190   :  { %9992 = vst [vmem:[#allocation216_spill] sm:$0xff] %v7729_v6  ;;  %v7740_v38 = vsub.f32 %v9983_v50, %v9995_v4  ;;  %v2325_v12 = vand.u32 4294901760, %v2324_v54  ;;  %v10005_v50 = vld [vmem:[#allocation36_spill] sm:$0xff]  ;;  %v10009_v0 = vld [vmem:[#allocation23_spill] sm:$0xff]  ;;  %v9320_v48 = vand.u32 4294901760, %v10030_v59  ;;  %v10034_v42 = vld [vmem:[#allocation73_spill] sm:$0xff] }
 0x191   :  { %v7746_v11 = vsub.f32 %v9985_v13, %v9997_v29  ;;  %v7751_v52 = vsub.f32 %v9986_v55, %v9998_v2  ;;  %5408 = vmatpush1.bf16.msra.mxu1 %v10000_v21  ;;  %5028 = vmatpush1.bf16.msra.mxu0 %v7239_v40  ;;  %v7761_v29 = vpack.c.bf16 %v3591_v63, %v3579_v30  ;;  %v10007_v2 = vld [vmem:[#allocation64_spill] sm:$0xff]  ;;  %v10008_v13 = vld [vmem:[#allocation147_spill] sm:$0xff]  ;;  %v3597_v53 = vand.u32 4294901760, %v7735_v49 }
 0x192   :  { %5410 = vmatprep.subr.bf16.mxu1 %v10005_v50  ;;  %5030 = vmatprep.subr.bf16.mxu0 %v10010_v51  ;;  %v3609_v54 = vand.u32 4294901760, %v7740_v38  ;;  %v3602_v4 = vsub.f32 %v9996_v9, %v10011_v57  ;;  %v10012_v50 = vld [vmem:[#allocation41_spill] sm:$0xff]  ;;  %v7773_v30 = vpack.c.bf16 %v2325_v12, %v2313_v27  ;;  %v10014_v21 = vand.u32 4294901760, %v9999_v20  ;;  %v10020_v9 = vld [vmem:[#allocation198_spill] sm:$0xff]  ;;  %v10029_v37 = vld [vmem:[#allocation152_spill] sm:$0xff] }
 0x193   :  { %10006 = vst [vmem:[#allocation217_spill] sm:$0xff] %v7761_v29  ;;  %v2319_v63 = vand.u32 4294901760, %v7746_v11  ;;  %v2331_v25 = vand.u32 4294901760, %v7751_v52  ;;  %v10015_v51 = vld [vmem:[#allocation193_spill] sm:$0xff]  ;;  %v10016_v49 = vand.u32 4294901760, %v10001_v43  ;;  %v10017_v57 = vand.u32 4294901760, %v10002_v10 }
 0x194   :  { %10013 = vst [vmem:[#allocation218_spill] sm:$0xff] %v7773_v30  ;;  %v3614_v55 = vsub.f32 %v9999_v20, %v10014_v21  ;;  %v10018_v27 = vand.u32 4294901760, %v10003_v41  ;;  %v10019_v11 = vand.u32 4294901760, %v10004_v8  ;;  %v10021_v21 = vld [vmem:[#allocation200_spill] sm:$0xff]  ;;  %v10023_v20 = vand.u32 4294901760, %v10008_v13  ;;  %v10033_v29 = vld [vmem:[#allocation67_spill] sm:$0xff] }
 0x195   :  { %5412 = vmatpush1.bf16.msra.mxu1 %v10015_v51  ;;  %v2336_v38 = vsub.f32 %v10001_v43, %v10016_v49  ;;  %v2348_v40 = vsub.f32 %v10002_v10, %v10017_v57  ;;  %5032 = vmatpush1.bf16.msra.mxu0 %v10021_v21  ;;  %v10022_v51 = vand.u32 4294901760, %v10007_v2  ;;  %v10024_v10 = vand.u32 4294901760, %v10009_v0 }
 0x196   :  { %v3620_v12 = vsub.f32 %v10003_v41, %v10018_v27  ;;  %v3632_v52 = vsub.f32 %v10004_v8, %v10019_v11  ;;  %5414 = vmatprep.subr.bf16.mxu1 %v10020_v9  ;;  %v2354_v57 = vsub.f32 %v10008_v13, %v10023_v20  ;;  %v10025_v41 = vld [vmem:[#allocation149_spill] sm:$0xff]  ;;  %5034 = vmatprep.subr.bf16.mxu0 %v10026_v5  ;;  %v10027_v11 = vand.u32 4294901760, %v10012_v50  ;;  %v10028_v9 = vld [vmem:[#allocation150_spill] sm:$0xff] }
 0x197   :  { %v2342_v49 = vsub.f32 %v10007_v2, %v10022_v51  ;;  %v3626_v27 = vsub.f32 %v10009_v0, %v10024_v10  ;;  %v3603_v34 = vand.u32 4294901760, %v3602_v4  ;;  %v3615_v20 = vand.u32 4294901760, %v3614_v55 }
 0x198   :  { %v3638_v21 = vsub.f32 %v10012_v50, %v10027_v11  ;;  %v2337_v43 = vand.u32 4294901760, %v2336_v38  ;;  %v2349_v5 = vand.u32 4294901760, %v2348_v40  ;;  %v3621_v30 = vand.u32 4294901760, %v3620_v12  ;;  %v10035_v11 = vld [vmem:[#allocation206_spill] sm:$0xff] }
 0x199   :  { %5416 = vmatpush1.bf16.msra.mxu1 %v10033_v29  ;;  %v3633_v6 = vand.u32 4294901760, %v3632_v52  ;;  %5036 = vmatpush1.bf16.msra.mxu0 %v10035_v11  ;;  %v2343_v8 = vand.u32 4294901760, %v2342_v49  ;;  %v2355_v51 = vand.u32 4294901760, %v2354_v57  ;;  %v3627_v62 = vand.u32 4294901760, %v3626_v27  ;;  %v10048_v11 = vld [vmem:[#allocation158_spill] sm:$0xff]  ;;  %v10063_v29 = vld [vmem:[#allocation175_spill] sm:$0xff] }
 0x19a   :  { %5418 = vmatprep.subr.bf16.mxu1 %v10034_v42  ;;  %v10036_v4 = vand.u32 4294901760, %v10025_v41  ;;  %5038 = vmatprep.subr.bf16.mxu0 %v7443_v39  ;;  %v3639_v10 = vand.u32 4294901760, %v3638_v21  ;;  %v10037_v38 = vand.u32 4294901760, %v10028_v9  ;;  %v10038_v12 = vand.u32 4294901760, %v10029_v37  ;;  %v10062_v42 = vld [vmem:[#allocation174_spill] sm:$0xff] }
 0x19b   :  { %v7836_v49 = vsub.f32 %v10030_v59, %v9320_v48  ;;  %v7838_v57 = vpack.c.bf16 %v3609_v54, %v3597_v53  ;;  %v7843_v39 = vsub.f32 %v10031_v19, %v9321_v56  ;;  %v10040_v21 = vand.u32 4294901760, %v10032_v1 }
 0x19c   :  { %v7820_v55 = vsub.f32 %v10025_v41, %v10036_v4  ;;  %v7826_v40 = vsub.f32 %v10028_v9, %v10037_v38  ;;  %v7831_v52 = vsub.f32 %v10029_v37, %v10038_v12  ;;  %v10041_v4 = vld [vmem:[#allocation157_spill] sm:$0xff]  ;;  %2135 = vmatmul.mubr.f32.vlgmr.msra.gmra.mrb[0].mxu0 %v7459_v60  ;;  %v7853_v48 = vpack.c.bf16 %v2331_v25, %v2319_v63 }
 0x19d   :  { %10039 = vst [vmem:[#allocation219_spill] sm:$0xff] %v7838_v57  ;;  %v7848_v27 = vsub.f32 %v10032_v1, %v10040_v21  ;;  %v10042_v12 = vld [vmem:[#allocation209_spill] sm:$0xff]  ;;  %v7855_v53 = vpack.c.bf16 %v3615_v20, %v3603_v34  ;;  %v7857_v54 = vpack.c.bf16 %v2349_v5, %v2337_v43  ;;  %5040 = vmatpush1.bf16.msra.mxu0 %v7461_v24  ;;  %v10054_v20 = vld [vmem:[#allocation162_spill] sm:$0xff]  ;;  %v10058_v24 = vld [vmem:[#allocation168_spill] sm:$0xff] }
 0x19e   :  { %5420 = vmatpush1.bf16.msra.mxu1 %v10042_v12  ;;  %10043 = vst [vmem:[#allocation220_spill] sm:$0xff] %v7853_v48  ;;  %v7861_v56 = vpack.c.bf16 %v3633_v6, %v3621_v30  ;;  %v7863_v21 = vpack.c.bf16 %v2355_v51, %v2343_v8  ;;  %v9323_v12 = vand.u32 4294901760, %v10048_v11  ;;  %5042 = vmatprep.subr.bf16.mxu0 %v7465_v36  ;;  %v10050_v43 = vld [vmem:[#allocation185_spill] sm:$0xff]  ;;  %v10051_v6 = vand.u32 4294901760, %v10041_v4  ;;  %v10057_v8 = vld [vmem:[#allocation166_spill] sm:$0xff]  ;;  %v10061_v30 = vld [vmem:[#allocation172_spill] sm:$0xff] }
 0x19f   :  { %10044 = vst [vmem:[#allocation221_spill] sm:$0xff] %v7855_v53  ;;  %10045 = vst [vmem:[#allocation222_spill] sm:$0xff] %v7857_v54  ;;  %5422 = vmatprep.subr.bf16.mxu1 %v7457_v26  ;;  %v7868_v25 = vpack.c.bf16 %v3639_v10, %v3627_v62  ;;  %2526 = vmatprep.mubr.f32.mxu0 %v10050_v43  ;;  %v10052_v62 = vld [vmem:[#allocation160_spill] sm:$0xff]  ;;  %v10053_v63 = vld [vmem:[#allocation81_spill] sm:$0xff]  ;;  %v10071_v10 = vand.u32 4294901760, %v10057_v8  ;;  %v10072_v53 = vand.u32 4294901760, %v10058_v24 }
 0x1a0   :  { %10046 = vst [vmem:[#allocation223_spill] sm:$0xff] %v7861_v56  ;;  %10047 = vst [vmem:[#allocation224_spill] sm:$0xff] %v7863_v21  ;;  %v7880_v36 = vsub.f32 %v10041_v4, %v10051_v6  ;;  %v10055_v26 = vld [vmem:[#allocation163_spill] sm:$0xff]  ;;  %v3662_v6 = vsub.f32 %v10048_v11, %v9323_v12  ;;  %v10059_v51 = vld [vmem:[#allocation169_spill] sm:$0xff]  ;;  %v10064_v12 = vand.u32 4294901760, %v10052_v62 }
 0x1a1   :  { %10049 = vst [vmem:[#allocation225_spill] sm:$0xff] %v7868_v25  ;;  %3419 = vmatmul.mubr.f32.vlgmr.msra.gmra.mrb[0].mxu1 %v7459_v60  ;;  %v10056_v60 = vld [vmem:[#allocation165_spill] sm:$0xff]  ;;  %5044 = vmatpush1.bf16.msra.mxu0 %v7469_v18  ;;  %v10060_v5 = vld [vmem:[#allocation170_spill] sm:$0xff]  ;;  %v10066_v56 = vld [vmem:[#allocation28_spill] sm:$0xff]  ;;  %v10073_v54 = vand.u32 4294901760, %v10059_v51 }
 0x1a2   :  { %5424 = vmatpush1.bf16.msra.mxu1 %v7463_v28  ;;  %3810 = vmatprep.mubr.f32.mxu1 %v10050_v43  ;;  %v3651_v25 = vand.u32 4294901760, %v7880_v36  ;;  %v2384_v28 = vsub.f32 %v10052_v62, %v10064_v12  ;;  %v10065_v21 = vld [vmem:[#allocation177_spill] sm:$0xff]  ;;  %v10069_v36 = vand.u32 4294901760, %v10055_v26  ;;  %v10070_v12 = vand.u32 4294901760, %v10056_v60  ;;  %v10139_v4 = vld [vmem:[#allocation208_spill] sm:$0xff]  ;;  %v10141_v62 = vld [vmem:[#allocation211_spill] sm:$0xff] }
 0x1a3   :  { %5426 = vmatprep.subr.bf16.mxu1 %v7467_v7  ;;  %5046 = vmatprep.subr.bf16.mxu0 %v7582_v14  ;;  %v10067_v14 = vand.u32 4294901760, %v10053_v63  ;;  %v10068_v7 = vand.u32 4294901760, %v10054_v20 }
 0x1a4   :  { %v3680_v34 = vsub.f32 %v10055_v26, %v10069_v36  ;;  %v2390_v38 = vsub.f32 %v10056_v60, %v10070_v12  ;;  %v3686_v36 = vsub.f32 %v10059_v51, %v10073_v54  ;;  %v10074_v12 = vand.u32 4294901760, %v10060_v5 }
 0x1a5   :  { %v2396_v43 = vsub.f32 %v10053_v63, %v10067_v14  ;;  %v3668_v18 = vsub.f32 %v10054_v20, %v10068_v7  ;;  %5048 = vmatpush1.bf16.msra.mxu0 %v7590_v15  ;;  %v2402_v14 = vsub.f32 %v10057_v8, %v10071_v10  ;;  %v3674_v7 = vsub.f32 %v10058_v24, %v10072_v53 }
 0x1a6   :  { %5428 = vmatpush1.bf16.msra.mxu1 %v7473_v32  ;;  %v3663_v32 = vand.u32 4294901760, %v3662_v6  ;;  %5050 = vmatprep.subr.bf16.mxu0 %v7595_v31  ;;  %v10075_v15 = vand.u32 4294901760, %v10061_v30  ;;  %v10076_v10 = vand.u32 4294901760, %v10062_v42  ;;  %v10077_v53 = vand.u32 4294901760, %v10063_v29  ;;  %v10135_v26 = vld [vmem:[#allocation222_spill] sm:$0xff]  ;;  %v10146_v11 = vld [vmem:[#allocation221_spill] sm:$0xff] }
 0x1a7   :  { %5430 = vmatprep.subr.bf16.mxu1 %v7588_v23  ;;  %v2408_v23 = vsub.f32 %v10060_v5, %v10074_v12  ;;  %v2385_v24 = vand.u32 4294901760, %v2384_v28  ;;  %v10078_v54 = vand.u32 4294901760, %v10065_v21  ;;  %v10079_v51 = vand.u32 4294901760, %v10066_v56  ;;  %v10080_v5 = vld [vmem:[#allocation30_spill] sm:$0xff]  ;;  %v10149_v37 = vld [vmem:[#allocation224_spill] sm:$0xff] }
 0x1a8   :  { %v2420_v6 = vsub.f32 %v10061_v30, %v10075_v15  ;;  %v3692_v48 = vsub.f32 %v10062_v42, %v10076_v10  ;;  %v3704_v57 = vsub.f32 %v10063_v29, %v10077_v53  ;;  %v2397_v15 = vand.u32 4294901760, %v2396_v43  ;;  %v10081_v42 = vld [vmem:[#allocation33_spill] sm:$0xff] }
 0x1a9   :  { %v2414_v31 = vsub.f32 %v10065_v21, %v10078_v54  ;;  %v2426_v12 = vsub.f32 %v10066_v56, %v10079_v51  ;;  %v3669_v30 = vand.u32 4294901760, %v3668_v18  ;;  %v3681_v10 = vand.u32 4294901760, %v3680_v34  ;;  %5052 = vmatpush1.bf16.msra.mxu0 %v7601_v46  ;;  %v10154_v59 = vld [vmem:[#allocation225_spill] sm:$0xff] }
 0x1aa   :  { %5432 = vmatpush1.bf16.msra.mxu1 %v7593_v35  ;;  %v2391_v28 = vand.u32 4294901760, %v2390_v38  ;;  %v2403_v53 = vand.u32 4294901760, %v2402_v14  ;;  %v3675_v54 = vand.u32 4294901760, %v3674_v7  ;;  %v3687_v21 = vand.u32 4294901760, %v3686_v36  ;;  %5054 = vmatprep.subr.bf16.mxu0 %v7605_v22 }
 0x1ab   :  { %5434 = vmatprep.subr.bf16.mxu1 %v7597_v33  ;;  %v2409_v51 = vand.u32 4294901760, %v2408_v23  ;;  %v2421_v56 = vand.u32 4294901760, %v2420_v6  ;;  %v3693_v8 = vand.u32 4294901760, %v3692_v48  ;;  %v3705_v29 = vand.u32 4294901760, %v3704_v57  ;;  %v10083_v33 = vld [vmem:[#allocation179_spill] sm:$0xff]  ;;  %v10089_v23 = vld [vmem:[#allocation180_spill] sm:$0xff] }
 0x1ac   :  { %v2415_v35 = vand.u32 4294901760, %v2414_v31  ;;  %v2427_v43 = vand.u32 4294901760, %v2426_v12  ;;  %v10082_v34 = vand.u32 4294901760, %v10080_v5  ;;  %v9336_v60 = vand.u32 4294901760, %v10083_v33  ;;  %v10092_v31 = vld [vmem:[#allocation181_spill] sm:$0xff] }
 0x1ad   :  { %v10084_v46 = vand.u32 4294901760, %v7820_v55  ;;  %v10085_v38 = vand.u32 4294901760, %v7826_v40  ;;  %v10086_v48 = vand.u32 4294901760, %v7831_v52  ;;  %v10087_v57 = vand.u32 4294901760, %v7836_v49  ;;  %5056 = vmatpush1.bf16.msra.mxu0 %v7639_v44 }
 0x1ae   :  { %v7960_v18 = vsub.f32 %v10080_v5, %v10082_v34  ;;  %5436 = vmatpush1.bf16.msra.mxu1 %v7603_v17  ;;  %v10088_v7 = vand.u32 4294901760, %v10081_v42  ;;  %v9335_v6 = vand.u32 4294901760, %v10089_v23  ;;  %v10090_v17 = vand.u32 4294901760, %v7843_v39  ;;  %5058 = vmatprep.subr.bf16.mxu0 %v7709_v58  ;;  %v10105_v58 = vld [vmem:[#allocation215_spill] sm:$0xff] }
 0x1af   :  { %v7968_v22 = vpack.c.bf16 %v10085_v38, %v10084_v46  ;;  %v7974_v14 = vpack.c.bf16 %v10087_v57, %v10086_v48  ;;  %5438 = vmatprep.subr.bf16.mxu1 %v7609_v61  ;;  %v10091_v55 = vand.u32 4294901760, %v7848_v27  ;;  %v7990_v52 = vpack.c.bf16 %v3663_v32, %v3651_v25  ;;  %v10107_v25 = vld [vmem:[#allocation43_spill] sm:$0xff]  ;;  %v10140_v38 = vld [vmem:[#allocation210_spill] sm:$0xff] }
 0x1b0   :  { %v7979_v36 = vsub.f32 %v10081_v42, %v10088_v7  ;;  %v7992_v49 = vpack.c.bf16 %v2397_v15, %v2385_v24  ;;  %v9334_v12 = vand.u32 4294901760, %v10092_v31  ;;  %v7996_v34 = vpack.c.bf16 %v3681_v10, %v3669_v30  ;;  %v10096_v10 = vld [vmem:[#allocation39_spill] sm:$0xff]  ;;  %v10106_v7 = vld [vmem:[#allocation216_spill] sm:$0xff]  ;;  %v10118_v42 = vld [vmem:[#allocation217_spill] sm:$0xff] }
 0x1b1   :  { %v7988_v40 = vpack.c.bf16 %v10091_v55, %v10090_v17  ;;  %v7998_v46 = vpack.c.bf16 %v2403_v53, %v2391_v28  ;;  %v8000_v61 = vpack.c.bf16 %v3687_v21, %v3675_v54  ;;  %v8002_v44 = vpack.c.bf16 %v2421_v56, %v2409_v51  ;;  %5060 = vmatpush1.bf16.msra.mxu0 %v7719_v3  ;;  %v10097_v53 = vld [vmem:[#allocation186_spill] sm:$0xff]  ;;  %v10098_v51 = vld [vmem:[#allocation188_spill] sm:$0xff]  ;;  %v10117_v57 = vld [vmem:[#allocation191_spill] sm:$0xff] }
 0x1b2   :  { %v8004_v39 = vpack.c.bf16 %v3705_v29, %v3693_v8  ;;  %v8006_v27 = vpack.c.bf16 %v2427_v43, %v2415_v35  ;;  %v8012_v24 = vsub.f32 %v10083_v33, %v9336_v60  ;;  %5440 = vmatpush1.bf16.msra.mxu1 %v7702_v45  ;;  %v8019_v56 = vsub.f32 %v10089_v23, %v9335_v6  ;;  %v10093_v29 = vld [vmem:[#allocation182_spill] sm:$0xff]  ;;  %v10094_v8 = vld [vmem:[#allocation184_spill] sm:$0xff]  ;;  %v10099_v43 = vld [vmem:[#allocation189_spill] sm:$0xff] }
 0x1b3   :  { %5442 = vmatprep.subr.bf16.mxu1 %v7717_v47  ;;  %v8028_v32 = vsub.f32 %v10092_v31, %v9334_v12  ;;  %v10095_v45 = vld [vmem:[#allocation34_spill] sm:$0xff]  ;;  %5062 = vmatprep.subr.bf16.mxu0 %v7723_v16  ;;  %v10120_v33 = vld [vmem:[#allocation195_spill] sm:$0xff]  ;;  %v10122_v23 = vld [vmem:[#allocation57_spill] sm:$0xff]  ;;  %v10136_v28 = vand.u32 4294901760, %v10093_v29  ;;  %v10147_v1 = vand.u32 4294901760, %v10099_v43 }
 0x1b4   :  { %v10100_v17 = vld [vmem:[#allocation214_spill] sm:$0xff]  ;;  %v10121_v31 = vld [vmem:[#allocation55_spill] sm:$0xff]  ;;  %v10125_v54 = vld [vmem:[#allocation201_spill] sm:$0xff]  ;;  %v10142_v6 = vand.u32 4294901760, %v10095_v45  ;;  %v2433_v63 = vand.u32 4294901760, %v8012_v24 }
 0x1b5   :  { %5064 = vmatpush1.bf16.msra.mxu0 %v10106_v7  ;;  %v10114_v21 = vld [vmem:[#allocation218_spill] sm:$0xff]  ;;  %v10123_v15 = vld [vmem:[#allocation63_spill] sm:$0xff]  ;;  %v10126_v55 = vld [vmem:[#allocation60_spill] sm:$0xff]  ;;  %v3728_v30 = vsub.f32 %v10093_v29, %v10136_v28  ;;  %v10144_v28 = vand.u32 4294901760, %v10097_v53 }
 0x1b6   :  { %5444 = vmatpush1.bf16.msra.mxu1 %v10100_v17  ;;  %5066 = vmatprep.subr.bf16.mxu0 %v10114_v21  ;;  %v10115_v21 = vld [vmem:[#allocation45_spill] sm:$0xff]  ;;  %v10116_v16 = vld [vmem:[#allocation190_spill] sm:$0xff]  ;;  %v10124_v12 = vld [vmem:[#allocation199_spill] sm:$0xff]  ;;  %v2450_v20 = vsub.f32 %v10095_v45, %v10142_v6  ;;  %v2468_v6 = vsub.f32 %v10099_v43, %v10147_v1 }
 0x1b7   :  { %5446 = vmatprep.subr.bf16.mxu1 %v10105_v58  ;;  %v10119_v58 = vld [vmem:[#allocation194_spill] sm:$0xff]  ;;  %v10127_v48 = vld [vmem:[#allocation219_spill] sm:$0xff]  ;;  %v10128_v47 = vld [vmem:[#allocation220_spill] sm:$0xff]  ;;  %v3734_v29 = vsub.f32 %v10097_v53, %v10144_v28  ;;  %v10150_v28 = vand.u32 4294901760, %v7960_v18  ;;  %v10153_v1 = vand.u32 4294901760, %v10115_v21  ;;  %v3717_v18 = vand.u32 4294901760, %v8028_v32 }
 0x1b8   :  { %v10129_v3 = vld [vmem:[#allocation202_spill] sm:$0xff]  ;;  %v10132_v7 = vld [vmem:[#allocation204_spill] sm:$0xff]  ;;  %v10133_v60 = vld [vmem:[#allocation69_spill] sm:$0xff]  ;;  %v9375_v32 = vand.u32 4294901760, %v10122_v23 }
 0x1b9   :  { %5068 = vmatpush1.bf16.msra.mxu0 %v10128_v47  ;;  %v10131_v17 = vld [vmem:[#allocation70_spill] sm:$0xff]  ;;  %v10134_v35 = vld [vmem:[#allocation75_spill] sm:$0xff]  ;;  %v3752_v45 = vsub.f32 %v10115_v21, %v10153_v1 }
 0x1ba   :  { %5448 = vmatpush1.bf16.msra.mxu1 %v10118_v42  ;;  %v10130_v42 = vld [vmem:[#allocation68_spill] sm:$0xff]  ;;  %5070 = vmatprep.subr.bf16.mxu0 %v10135_v26  ;;  %v10138_v5 = vld [vmem:[#allocation207_spill] sm:$0xff]  ;;  %v10143_v26 = vand.u32 4294901760, %v10096_v10 }
 0x1bb   :  { %5450 = vmatprep.subr.bf16.mxu1 %v10127_v48  ;;  %v10137_v48 = vand.u32 4294901760, %v10094_v8 }
 0x1bc   :  { %v3722_v19 = vsub.f32 %v10096_v10, %v10143_v26  ;;  %v10148_v10 = vld [vmem:[#allocation223_spill] sm:$0xff]  ;;  %v10156_v26 = vand.u32 4294901760, %v10117_v57 }
 0x1bd   :  { %v2438_v47 = vsub.f32 %v10094_v8, %v10137_v48  ;;  %v10145_v48 = vand.u32 4294901760, %v10098_v51  ;;  %5072 = vmatpush1.bf16.msra.mxu0 %v10149_v37  ;;  %v2445_v37 = vand.u32 4294901760, %v8019_v56  ;;  %v9374_v56 = vand.u32 4294901760, %v10120_v33 }
 0x1be   :  { %5452 = vmatpush1.bf16.msra.mxu1 %v10146_v11  ;;  %v10152_v11 = vand.u32 4294901760, %v10107_v25  ;;  %5074 = vmatprep.subr.bf16.mxu0 %v7968_v22  ;;  %v2474_v22 = vsub.f32 %v10117_v57, %v10156_v26 }
 0x1bf   :  { %v2456_v8 = vsub.f32 %v10098_v51, %v10145_v48  ;;  %5454 = vmatprep.subr.bf16.mxu1 %v10148_v10  ;;  %v10151_v48 = vand.u32 4294901760, %v7979_v36  ;;  %v3729_v10 = vand.u32 4294901760, %v3728_v30  ;;  %v2439_v36 = vand.u32 4294901760, %v2438_v47 }
 0x1c0   :  { %v3740_v24 = vsub.f32 %v10107_v25, %v10152_v11  ;;  %v3735_v51 = vand.u32 4294901760, %v3734_v29  ;;  %v2469_v11 = vand.u32 4294901760, %v2468_v6  ;;  %v10155_v25 = vand.u32 4294901760, %v10116_v16 }
 0x1c1   :  { %v8137_v53 = vpack.c.bf16 %v10151_v48, %v10150_v28  ;;  %v2451_v28 = vand.u32 4294901760, %v2450_v20  ;;  %v3723_v48 = vand.u32 4294901760, %v3722_v19  ;;  %v2457_v43 = vand.u32 4294901760, %v2456_v8  ;;  %5076 = vmatpush1.bf16.msra.mxu0 %v7988_v40 }
 0x1c2   :  { %5456 = vmatpush1.bf16.msra.mxu1 %v10154_v59  ;;  %v2462_v1 = vsub.f32 %v10116_v16, %v10155_v25  ;;  %v3741_v19 = vand.u32 4294901760, %v3740_v24  ;;  %v3753_v20 = vand.u32 4294901760, %v3752_v45  ;;  %v10157_v29 = vand.u32 4294901760, %v10119_v58  ;;  %5078 = vmatprep.subr.bf16.mxu0 %v7992_v49 }
 0x1c3   :  { %5458 = vmatprep.subr.bf16.mxu1 %v7974_v14  ;;  %v9376_v8 = vand.u32 4294901760, %v10121_v31  ;;  %v5085_v25 = vpack.c.bf16 %v2445_v37, %v2433_v63  ;;  %v5469_v30 = vpack.c.bf16 %v3729_v10, %v3717_v18  ;;  %v9373_v47 = vand.u32 4294901760, %v10123_v15 }
 0x1c4   :  { %v8162_v59 = vsub.f32 %v10119_v58, %v10157_v29  ;;  %v5087_v14 = vpack.c.bf16 %v2451_v28, %v2439_v36  ;;  %v9367_v40 = vand.u32 4294901760, %v10124_v12  ;;  %v9361_v45 = vand.u32 4294901760, %v10125_v54 }
 0x1c5   :  { %v9360_v6 = vand.u32 4294901760, %v10126_v55  ;;  %v5471_v26 = vpack.c.bf16 %v3735_v51, %v3723_v48  ;;  %v2463_v24 = vand.u32 4294901760, %v2462_v1  ;;  %v2475_v29 = vand.u32 4294901760, %v2474_v22  ;;  %5080 = vmatpush1.bf16.msra.mxu0 %v7998_v46 }
 0x1c6   :  { %5460 = vmatpush1.bf16.msra.mxu1 %v7990_v52  ;;  %v3758_v63 = vsub.f32 %v10120_v33, %v9374_v56  ;;  %v5089_v49 = vpack.c.bf16 %v2469_v11, %v2457_v43  ;;  %v5473_v37 = vpack.c.bf16 %v3753_v20, %v3741_v19  ;;  %v3747_v18 = vand.u32 4294901760, %v8162_v59  ;;  %5082 = vmatprep.subr.bf16.mxu0 %v8002_v44  ;;  %v10184_v56 = vld [vmem:[#allocation86_spill] sm:$0xff] }
 0x1c7   :  { %5462 = vmatprep.subr.bf16.mxu1 %v7996_v34  ;;  %v2480_v10 = vsub.f32 %v10121_v31, %v9376_v8  ;;  %v2492_v52 = vsub.f32 %v10122_v23, %v9375_v32  ;;  %v3764_v34 = vsub.f32 %v10123_v15, %v9373_v47  ;;  %v9366_v46 = vand.u32 4294901760, %v10131_v17  ;;  %v10186_v8 = vld [vmem:[#allocation92_spill] sm:$0xff] }
 0x1c8   :  { %v9365_v51 = vand.u32 4294901760, %v10132_v7  ;;  %v3776_v43 = vsub.f32 %v10124_v12, %v9367_v40  ;;  %v2486_v44 = vsub.f32 %v10125_v54, %v9361_v45  ;;  %v2498_v36 = vsub.f32 %v10126_v55, %v9360_v6 }
 0x1c9   :  { %v9364_v28 = vand.u32 4294901760, %v10129_v3  ;;  %v5091_v48 = vpack.c.bf16 %v2475_v29, %v2463_v24  ;;  %v3759_v11 = vand.u32 4294901760, %v3758_v63  ;;  %v9363_v1 = vand.u32 4294901760, %v10130_v42  ;;  %5084 = vmatpush1.bf16.msra.mxu0 %v8006_v27 }
 0x1ca   :  { %5464 = vmatpush1.bf16.msra.mxu1 %v8000_v61  ;;  %v9362_v22 = vand.u32 4294901760, %v10133_v60  ;;  %v2481_v19 = vand.u32 4294901760, %v2480_v10  ;;  %v9368_v20 = vand.u32 4294901760, %v10134_v35  ;;  %v9369_v59 = vand.u32 4294901760, %v10138_v5  ;;  %5086 = vmatprep.subr.bf16.mxu0 %v5085_v25 }
 0x1cb   :  { %5466 = vmatprep.subr.bf16.mxu1 %v8004_v39  ;;  %v9372_v6 = vand.u32 4294901760, %v10139_v4  ;;  %v2493_v45 = vand.u32 4294901760, %v2492_v52  ;;  %v3765_v61 = vand.u32 4294901760, %v3764_v34  ;;  %v2504_v24 = vsub.f32 %v10131_v17, %v9366_v46 }
 0x1cc   :  { %v2516_v39 = vsub.f32 %v10132_v7, %v9365_v51  ;;  %v3777_v29 = vand.u32 4294901760, %v3776_v43  ;;  %v2487_v27 = vand.u32 4294901760, %v2486_v44  ;;  %v2499_v63 = vand.u32 4294901760, %v2498_v36 }
 0x1cd   :  { %v3770_v10 = vsub.f32 %v10129_v3, %v9364_v28  ;;  %v3782_v25 = vsub.f32 %v10130_v42, %v9363_v1  ;;  %v3788_v52 = vsub.f32 %v10133_v60, %v9362_v22  ;;  %v9371_v34 = vand.u32 4294901760, %v10140_v38  ;;  %5088 = vmatpush1.bf16.msra.mxu0 %v5087_v14 }
 0x1ce   :  { %5468 = vmatpush1.bf16.msra.mxu1 %v8137_v53  ;;  %v9370_v43 = vand.u32 4294901760, %v10141_v62  ;;  %v3800_v44 = vsub.f32 %v10134_v35, %v9368_v20  ;;  %v2510_v53 = vsub.f32 %v10138_v5, %v9369_v59  ;;  %v2522_v36 = vsub.f32 %v10139_v4, %v9372_v6  ;;  %5090 = vmatprep.subr.bf16.mxu0 %v5089_v49  ;;  %v10183_v6 = vld [vmem:[#allocation90_spill] sm:$0xff] }
 0x1cf   :  { %5470 = vmatprep.subr.bf16.mxu1 %v5469_v30  ;;  %v5093_v22 = vpack.c.bf16 %v2493_v45, %v2481_v19  ;;  %v2505_v1 = vand.u32 4294901760, %v2504_v24  ;;  %v2517_v28 = vand.u32 4294901760, %v2516_v39  ;;  %v5475_v51 = vpack.c.bf16 %v3759_v11, %v3747_v18 }
 0x1d0   :  { %v5477_v46 = vpack.c.bf16 %v3777_v29, %v3765_v61  ;;  %v3771_v30 = vand.u32 4294901760, %v3770_v10  ;;  %v5095_v14 = vpack.c.bf16 %v2499_v63, %v2487_v27  ;;  %v3783_v40 = vand.u32 4294901760, %v3782_v25  ;;  %v10158_v27 = vld [vmem:[#allocation38_spill] sm:$0xff]  ;;  %v10161_v25 = vld [vmem:[#allocation49_spill] sm:$0xff] }
 0x1d1   :  { %v3794_v20 = vsub.f32 %v10140_v38, %v9371_v34  ;;  %v3806_v59 = vsub.f32 %v10141_v62, %v9370_v43  ;;  %5092 = vmatpush1.bf16.msra.mxu0 %v5091_v48  ;;  %v3789_v49 = vand.u32 4294901760, %v3788_v52  ;;  %v3801_v45 = vand.u32 4294901760, %v3800_v44  ;;  %v10159_v63 = vld [vmem:[#allocation42_spill] sm:$0xff]  ;;  %v10160_v48 = vld [vmem:[#allocation47_spill] sm:$0xff]  ;;  %v10167_v52 = vld [vmem:[#allocation56_spill] sm:$0xff] }
 0x1d2   :  { %5472 = vmatpush1.bf16.msra.mxu1 %v5471_v26  ;;  %v2511_v19 = vand.u32 4294901760, %v2510_v53  ;;  %v2523_v24 = vand.u32 4294901760, %v2522_v36  ;;  %5094 = vmatprep.subr.bf16.mxu0 %v5093_v22  ;;  %v5097_v18 = vpack.c.bf16 %v2517_v28, %v2505_v1  ;;  %v5479_v26 = vpack.c.bf16 %v3783_v40, %v3771_v30  ;;  %v10162_v28 = vld [vmem:[#allocation52_spill] sm:$0xff]  ;;  %v10164_v1 = vld [vmem:[#allocation71_spill] sm:$0xff]  ;;  %v10168_v44 = vld [vmem:[#allocation65_spill] sm:$0xff] }
 0x1d3   :  { %5474 = vmatprep.subr.bf16.mxu1 %v5473_v37  ;;  %v3795_v11 = vand.u32 4294901760, %v3794_v20  ;;  %v3807_v61 = vand.u32 4294901760, %v3806_v59  ;;  %v5481_v39 = vpack.c.bf16 %v3801_v45, %v3789_v49  ;;  %v5101_v10 = vpack.c.bf16 %v10159_v63, %v10158_v27  ;;  %v10166_v59 = vld [vmem:[#allocation205_spill] sm:$0xff]  ;;  %v10169_v36 = vld [vmem:[#allocation76_spill] sm:$0xff]  ;;  %v10171_v49 = vld [vmem:[#allocation79_spill] sm:$0xff] }
 0x1d4   :  { %v5099_v29 = vpack.c.bf16 %v2523_v24, %v2511_v19  ;;  %v5485_v22 = vpack.c.bf16 %v10161_v25, %v10160_v48  ;;  %v5487_v53 = vpack.c.bf16 %v10168_v44, %v10167_v52  ;;  %v10170_v30 = vld [vmem:[#allocation77_spill] sm:$0xff]  ;;  %v10172_v45 = vld [vmem:[#allocation16_spill] sm:$0xff] }
 0x1d5   :  { %5096 = vmatpush1.bf16.msra.mxu0 %v5095_v14  ;;  %v5483_v37 = vpack.c.bf16 %v3807_v61, %v3795_v11  ;;  %v5489_v14 = vpack.c.bf16 %v10170_v30, %v10169_v36  ;;  %v5107_v19 = vpack.c.bf16 %v10172_v45, %v10171_v49  ;;  %v10173_v24 = vld [vmem:[#allocation24_spill] sm:$0xff]  ;;  %v10182_v34 = vld [vmem:[#allocation89_spill] sm:$0xff] }
 0x1d6   :  { %5476 = vmatpush1.bf16.msra.mxu1 %v5475_v51  ;;  %5098 = vmatprep.subr.bf16.mxu0 %v5097_v18  ;;  %v10163_v51 = vld [vmem:[#allocation53_spill] sm:$0xff]  ;;  %v10174_v18 = vld [vmem:[#allocation26_spill] sm:$0xff]  ;;  %v10175_v11 = vld [vmem:[#allocation192_spill] sm:$0xff]  ;;  %v5113_v47 = vpack.c.bf16 %v10183_v6, %v10182_v34 }
 0x1d7   :  { %5478 = vmatprep.subr.bf16.mxu1 %v5477_v46  ;;  %v5103_v40 = vpack.c.bf16 %v10163_v51, %v10162_v28  ;;  %v10165_v46 = vld [vmem:[#allocation72_spill] sm:$0xff] }
 0x1d8   :  { %v5105_v20 = vpack.c.bf16 %v10165_v46, %v10164_v1  ;;  %v10176_v61 = vld [vmem:[#allocation20_spill] sm:$0xff] }
 0x1d9   :  { %5100 = vmatpush1.bf16.msra.mxu0 %v5099_v29 }
 0x1da   :  { %5480 = vmatpush1.bf16.msra.mxu1 %v5479_v26  ;;  %5102 = vmatprep.subr.bf16.mxu0 %v5101_v10  ;;  %v5109_v26 = vpack.c.bf16 %v10174_v18, %v10173_v24  ;;  %v10178_v10 = vld [vmem:[#allocation29_spill] sm:$0xff] }
 0x1db   :  { %5482 = vmatprep.subr.bf16.mxu1 %v5481_v39  ;;  %v10177_v39 = vld [vmem:[#allocation22_spill] sm:$0xff] }
 0x1dc   :  { %2528 = vmatmul.mubr.f32.vlgmr.msra.gmra.mrb[0].mxu0 %v10166_v59  ;;  %v5491_v29 = vpack.c.bf16 %v10177_v39, %v10176_v61 }
 0x1dd   :  { %5104 = vmatpush1.bf16.msra.mxu0 %v5103_v40  ;;  %2728 = vmatprep.mubr.f32.mxu0 %v10175_v11  ;;  %v10180_v40 = vld [vmem:[#allocation18_spill] sm:$0xff] }
 0x1de   :  { %5484 = vmatpush1.bf16.msra.mxu1 %v5483_v37  ;;  %5106 = vmatprep.subr.bf16.mxu0 %v5105_v20  ;;  %v10179_v37 = vld [vmem:[#allocation17_spill] sm:$0xff]  ;;  %v10181_v20 = vld [vmem:[#allocation84_spill] sm:$0xff] }
 0x1df   :  { %5486 = vmatprep.subr.bf16.mxu1 %v5485_v22  ;;  %v5493_v22 = vpack.c.bf16 %v10179_v37, %v10178_v10  ;;  %v5111_v43 = vpack.c.bf16 %v10181_v20, %v10180_v40  ;;  %v10190_v37 = vld [vmem:[#allocation99_spill] sm:$0xff]  ;;  %v10191_v10 = vld [vmem:[#allocation100_spill] sm:$0xff]  ;;  %v10193_v40 = vld [vmem:[#allocation78_spill] sm:$0xff] }
 0x1e0   :  { %v5117_v20 = vpack.c.bf16 %v10191_v10, %v10190_v37 }
 0x1e1   :  { %3812 = vmatmul.mubr.f32.vlgmr.msra.gmra.mrb[0].mxu1 %v10166_v59  ;;  %5108 = vmatpush1.bf16.msra.mxu0 %v5107_v19  ;;  %v10188_v19 = vld [vmem:[#allocation95_spill] sm:$0xff]  ;;  %v10189_v59 = vld [vmem:[#allocation96_spill] sm:$0xff] }
 0x1e2   :  { %5488 = vmatpush1.bf16.msra.mxu1 %v5487_v53  ;;  %4012 = vmatprep.mubr.f32.mxu1 %v10175_v11  ;;  %v10185_v53 = vld [vmem:[#allocation87_spill] sm:$0xff]  ;;  %v10187_v11 = vld [vmem:[#allocation93_spill] sm:$0xff]  ;;  %v5115_v39 = vpack.c.bf16 %v10189_v59, %v10188_v19 }
 0x1e3   :  { %5490 = vmatprep.subr.bf16.mxu1 %v5489_v14  ;;  %5110 = vmatprep.subr.bf16.mxu0 %v5109_v26  ;;  %v5495_v32 = vpack.c.bf16 %v10185_v53, %v10184_v56  ;;  %v5497_v14 = vpack.c.bf16 %v10187_v11, %v10186_v8  ;;  %v10192_v26 = vld [vmem:[#allocation98_spill] sm:$0xff]  ;;  %v10195_v53 = vld [vmem:[#allocation103_spill] sm:$0xff]  ;;  %v10199_v8 = vld [vmem:[#allocation112_spill] sm:$0xff] }
 0x1e4   :  { %v5499_v6 = vpack.c.bf16 %v10193_v40, %v10192_v26  ;;  %v10197_v56 = vld [vmem:[#allocation106_spill] sm:$0xff]  ;;  %v10198_v11 = vld [vmem:[#allocation111_spill] sm:$0xff]  ;;  %v10201_v19 = vld [vmem:[#allocation109_spill] sm:$0xff] }
 0x1e5   :  { %5112 = vmatpush1.bf16.msra.mxu0 %v5111_v43  ;;  %v10196_v43 = vld [vmem:[#allocation105_spill] sm:$0xff]  ;;  %v5121_v59 = vpack.c.bf16 %v10199_v8, %v10198_v11  ;;  %v10203_v40 = vld [vmem:[#allocation115_spill] sm:$0xff]  ;;  %v10205_v26 = vld [vmem:[#allocation118_spill] sm:$0xff] }
 0x1e6   :  { %5492 = vmatpush1.bf16.msra.mxu1 %v5491_v29  ;;  %5114 = vmatprep.subr.bf16.mxu0 %v5113_v47  ;;  %v10194_v29 = vld [vmem:[#allocation102_spill] sm:$0xff]  ;;  %v5119_v34 = vpack.c.bf16 %v10197_v56, %v10196_v43  ;;  %v10200_v47 = vld [vmem:[#allocation108_spill] sm:$0xff]  ;;  %v10209_v43 = vld [vmem:[#allocation121_spill] sm:$0xff] }
 0x1e7   :  { %5494 = vmatprep.subr.bf16.mxu1 %v5493_v22  ;;  %v5501_v22 = vpack.c.bf16 %v10195_v53, %v10194_v29  ;;  %v5503_v10 = vpack.c.bf16 %v10201_v19, %v10200_v47  ;;  %v10206_v53 = vld [vmem:[#allocation122_spill] sm:$0xff]  ;;  %v10207_v29 = vld [vmem:[#allocation124_spill] sm:$0xff]  ;;  %v10211_v19 = vld [vmem:[#allocation127_spill] sm:$0xff] }
 0x1e8   :  { %v5125_v56 = vpack.c.bf16 %v10207_v29, %v10206_v53  ;;  %v10213_v47 = vld [vmem:[#allocation130_spill] sm:$0xff] }
 0x1e9   :  { %5116 = vmatpush1.bf16.msra.mxu0 %v5115_v39  ;;  %v10204_v39 = vld [vmem:[#allocation117_spill] sm:$0xff] }
 0x1ea   :  { %5496 = vmatpush1.bf16.msra.mxu1 %v5495_v32  ;;  %5118 = vmatprep.subr.bf16.mxu0 %v5117_v20  ;;  %v10202_v32 = vld [vmem:[#allocation114_spill] sm:$0xff]  ;;  %v5123_v37 = vpack.c.bf16 %v10205_v26, %v10204_v39  ;;  %v10208_v20 = vld [vmem:[#allocation120_spill] sm:$0xff]  ;;  %v10217_v39 = vld [vmem:[#allocation133_spill] sm:$0xff] }
 0x1eb   :  { %5498 = vmatprep.subr.bf16.mxu1 %v5497_v14  ;;  %v5505_v14 = vpack.c.bf16 %v10203_v40, %v10202_v32  ;;  %v5507_v8 = vpack.c.bf16 %v10209_v43, %v10208_v20  ;;  %v10214_v40 = vld [vmem:[#allocation134_spill] sm:$0xff]  ;;  %v10215_v32 = vld [vmem:[#allocation136_spill] sm:$0xff]  ;;  %v10219_v43 = vld [vmem:[#allocation59_spill] sm:$0xff] }
 0x1ec   :  { %v5129_v26 = vpack.c.bf16 %v10215_v32, %v10214_v40  ;;  %v10221_v20 = vld [vmem:[#allocation140_spill] sm:$0xff] }
 0x1ed   :  { %5120 = vmatpush1.bf16.msra.mxu0 %v5119_v34  ;;  %v10212_v34 = vld [vmem:[#allocation129_spill] sm:$0xff] }
 0x1ee   :  { %5500 = vmatpush1.bf16.msra.mxu1 %v5499_v6  ;;  %5122 = vmatprep.subr.bf16.mxu0 %v5121_v59  ;;  %v10210_v6 = vld [vmem:[#allocation126_spill] sm:$0xff]  ;;  %v5127_v11 = vpack.c.bf16 %v10213_v47, %v10212_v34  ;;  %v10216_v59 = vld [vmem:[#allocation132_spill] sm:$0xff] }
 0x1ef   :  { %5502 = vmatprep.subr.bf16.mxu1 %v5501_v22  ;;  %v5509_v22 = vpack.c.bf16 %v10211_v19, %v10210_v6  ;;  %v5511_v29 = vpack.c.bf16 %v10217_v39, %v10216_v59  ;;  %v10222_v19 = vld [vmem:[#allocation143_spill] sm:$0xff]  ;;  %v10223_v6 = vld [vmem:[#allocation62_spill] sm:$0xff]  ;;  %v10227_v39 = vld [vmem:[#allocation145_spill] sm:$0xff] }
 0x1f0   :  { %v5133_v47 = vpack.c.bf16 %v10223_v6, %v10222_v19  ;;  %v10225_v34 = vld [vmem:[#allocation142_spill] sm:$0xff] }
 0x1f1   :  { %5124 = vmatpush1.bf16.msra.mxu0 %v5123_v37  ;;  %v10220_v37 = vld [vmem:[#allocation139_spill] sm:$0xff] }
 0x1f2   :  { %5504 = vmatpush1.bf16.msra.mxu1 %v5503_v10  ;;  %5126 = vmatprep.subr.bf16.mxu0 %v5125_v56  ;;  %v10218_v10 = vld [vmem:[#allocation137_spill] sm:$0xff]  ;;  %v5131_v53 = vpack.c.bf16 %v10221_v20, %v10220_v37 }
 0x1f3   :  { %5506 = vmatprep.subr.bf16.mxu1 %v5505_v14  ;;  %v5513_v14 = vpack.c.bf16 %v10219_v43, %v10218_v10  ;;  %v10224_v56 = vld [vmem:[#allocation141_spill] sm:$0xff] }
 0x1f4   :  { %v5515_v32 = vpack.c.bf16 %v10225_v34, %v10224_v56 }
 0x1f5   :  { %5128 = vmatpush1.bf16.msra.mxu0 %v5127_v11  ;;  %v10228_v11 = vpack.c.bf16 %v10008_v13, %v10007_v2  ;;  %v10241_v2 = vld [vmem:[#allocation157_spill] sm:$0xff] }
 0x1f6   :  { %5508 = vmatpush1.bf16.msra.mxu1 %v5507_v8  ;;  %5130 = vmatprep.subr.bf16.mxu0 %v5129_v26  ;;  %v10226_v8 = vld [vmem:[#allocation144_spill] sm:$0xff]  ;;  %v10229_v26 = vpack.c.bf16 %v10028_v9, %v10025_v41  ;;  %v10244_v41 = vld [vmem:[#allocation162_spill] sm:$0xff] }
 0x1f7   :  { %5510 = vmatprep.subr.bf16.mxu1 %v5509_v22  ;;  %v5517_v22 = vpack.c.bf16 %v10227_v39, %v10226_v8  ;;  %v10234_v39 = vld [vmem:[#allocation155_spill] sm:$0xff]  ;;  %v10238_v8 = vld [vmem:[#allocation160_spill] sm:$0xff] }
 0x1f9   :  { %5132 = vmatpush1.bf16.msra.mxu0 %v5131_v53  ;;  %v10232_v53 = vld [vmem:[#allocation152_spill] sm:$0xff] }
 0x1fa   :  { %5512 = vmatpush1.bf16.msra.mxu1 %v5511_v29  ;;  %5134 = vmatprep.subr.bf16.mxu0 %v5133_v47  ;;  %v10230_v29 = vpack.c.bf16 %v10012_v50, %v10009_v0  ;;  %v10235_v47 = vld [vmem:[#allocation154_spill] sm:$0xff]  ;;  %v10247_v0 = vld [vmem:[#allocation165_spill] sm:$0xff] }
 0x1fb   :  { %5514 = vmatprep.subr.bf16.mxu1 %v5513_v14  ;;  %v10231_v14 = vld [vmem:[#allocation40_spill] sm:$0xff] }
 0x1fc   :  { %v10233_v34 = vpack.c.bf16 %v10231_v14, %v10232_v53  ;;  %v10250_v53 = vld [vmem:[#allocation170_spill] sm:$0xff] }
 0x1fd   :  { %5136 = vmatpush1.bf16.msra.mxu0 %v10228_v11  ;;  %v10240_v11 = vld [vmem:[#allocation158_spill] sm:$0xff] }
 0x1fe   :  { %5516 = vmatpush1.bf16.msra.mxu1 %v5515_v32  ;;  %5138 = vmatprep.subr.bf16.mxu0 %v10229_v26  ;;  %v10236_v32 = vpack.c.bf16 %v10234_v39, %v10235_v47  ;;  %v10242_v9 = vpack.c.bf16 %v10240_v11, %v10241_v2  ;;  %v10243_v26 = vld [vmem:[#allocation163_spill] sm:$0xff]  ;;  %v10253_v47 = vld [vmem:[#allocation168_spill] sm:$0xff]  ;;  %v10259_v2 = vld [vmem:[#allocation177_spill] sm:$0xff] }
 0x1ff   :  { %5518 = vmatprep.subr.bf16.mxu1 %v5517_v22  ;;  %v10237_v22 = vld [vmem:[#allocation81_spill] sm:$0xff]  ;;  %v10245_v50 = vpack.c.bf16 %v10243_v26, %v10244_v41  ;;  %v10262_v41 = vld [vmem:[#allocation179_spill] sm:$0xff] }
 0x200   :  { %v10239_v13 = vpack.c.bf16 %v10237_v22, %v10238_v8  ;;  %v10256_v8 = vld [vmem:[#allocation174_spill] sm:$0xff] }
 0x201   :  { %5140 = vmatpush1.bf16.msra.mxu0 %v10236_v32  ;;  %v10252_v32 = vld [vmem:[#allocation169_spill] sm:$0xff] }
 0x202   :  { %5520 = vmatpush1.bf16.msra.mxu1 %v10230_v29  ;;  %5142 = vmatprep.subr.bf16.mxu0 %v10239_v13  ;;  %v10246_v29 = vld [vmem:[#allocation166_spill] sm:$0xff]  ;;  %v10254_v22 = vpack.c.bf16 %v10252_v32, %v10253_v47  ;;  %v10255_v13 = vld [vmem:[#allocation175_spill] sm:$0xff]  ;;  %v10271_v47 = vld [vmem:[#allocation184_spill] sm:$0xff] }
 0x203   :  { %5522 = vmatprep.subr.bf16.mxu1 %v10233_v34  ;;  %v10248_v14 = vpack.c.bf16 %v10246_v29, %v10247_v0  ;;  %v10249_v34 = vld [vmem:[#allocation172_spill] sm:$0xff]  ;;  %v10257_v11 = vpack.c.bf16 %v10255_v13, %v10256_v8  ;;  %v10265_v0 = vld [vmem:[#allocation30_spill] sm:$0xff] }
 0x204   :  { %v10251_v39 = vpack.c.bf16 %v10249_v34, %v10250_v53  ;;  %v10268_v53 = vld [vmem:[#allocation181_spill] sm:$0xff]  ;;  %v10274_v8 = vld [vmem:[#allocation188_spill] sm:$0xff] }
 0x205   :  { %5144 = vmatpush1.bf16.msra.mxu0 %v10248_v14  ;;  %v10264_v14 = vld [vmem:[#allocation33_spill] sm:$0xff] }
 0x206   :  { %5524 = vmatpush1.bf16.msra.mxu1 %v10242_v9  ;;  %5146 = vmatprep.subr.bf16.mxu0 %v10251_v39  ;;  %v10258_v9 = vld [vmem:[#allocation28_spill] sm:$0xff]  ;;  %v10266_v34 = vpack.c.bf16 %v10264_v14, %v10265_v0  ;;  %v10267_v39 = vld [vmem:[#allocation182_spill] sm:$0xff] }
 0x207   :  { %5526 = vmatprep.subr.bf16.mxu1 %v10245_v50  ;;  %v10260_v26 = vpack.c.bf16 %v10258_v9, %v10259_v2  ;;  %v10261_v50 = vld [vmem:[#allocation180_spill] sm:$0xff]  ;;  %v10269_v32 = vpack.c.bf16 %v10267_v39, %v10268_v53  ;;  %v10277_v2 = vld [vmem:[#allocation39_spill] sm:$0xff] }
 0x208   :  { %v10263_v29 = vpack.c.bf16 %v10261_v50, %v10262_v41 }
 0x209   :  { %5148 = vmatpush1.bf16.msra.mxu0 %v10260_v26  ;;  %v10276_v26 = vld [vmem:[#allocation186_spill] sm:$0xff] }
 0x20a   :  { %5528 = vmatpush1.bf16.msra.mxu1 %v10254_v22  ;;  %5150 = vmatprep.subr.bf16.mxu0 %v10263_v29  ;;  %v10270_v22 = vld [vmem:[#allocation34_spill] sm:$0xff]  ;;  %v10278_v50 = vpack.c.bf16 %v10276_v26, %v10277_v2  ;;  %v10279_v29 = vld [vmem:[#allocation43_spill] sm:$0xff] }
 0x20b   :  { %5530 = vmatprep.subr.bf16.mxu1 %v10257_v11  ;;  %v10272_v13 = vpack.c.bf16 %v10270_v22, %v10271_v47  ;;  %v10273_v11 = vld [vmem:[#allocation189_spill] sm:$0xff]  ;;  %v10280_v14 = vpack.c.bf16 %v10115_v21, %v10279_v29 }
 0x20c   :  { %v10275_v9 = vpack.c.bf16 %v10273_v11, %v10274_v8 }
 0x20d   :  { %5152 = vmatpush1.bf16.msra.mxu0 %v10272_v13  ;;  %v10283_v13 = vpack.c.bf16 %v10120_v33, %v10119_v58 }
 0x20e   :  { %5532 = vmatpush1.bf16.msra.mxu1 %v10266_v34  ;;  %5154 = vmatprep.subr.bf16.mxu0 %v10275_v9  ;;  %v10281_v34 = vpack.c.bf16 %v10117_v57, %v10116_v16  ;;  %v10284_v9 = vpack.c.bf16 %v10124_v12, %v10123_v15 }
 0x20f   :  { %5534 = vmatprep.subr.bf16.mxu1 %v10269_v32  ;;  %v10282_v32 = vpack.c.bf16 %v10122_v23, %v10121_v31 }
 0x211   :  { %5156 = vmatpush1.bf16.msra.mxu0 %v10281_v34  ;;  %v10287_v34 = vpack.c.bf16 %v10130_v42, %v10129_v3  ;;  %v10294_v42 = vld [vmem:[#allocation50_spill] sm:$0xff] }
 0x212   :  { %5536 = vmatpush1.bf16.msra.mxu1 %v10278_v50  ;;  %5158 = vmatprep.subr.bf16.mxu0 %v10282_v32  ;;  %v10285_v50 = vpack.c.bf16 %v10126_v55, %v10125_v54  ;;  %v10288_v32 = vpack.c.bf16 %v10134_v35, %v10133_v60  ;;  %v10296_v35 = vld [vmem:[#allocation197_spill] sm:$0xff] }
 0x213   :  { %5538 = vmatprep.subr.bf16.mxu1 %v10280_v14  ;;  %v10286_v14 = vpack.c.bf16 %v10132_v7, %v10131_v17  ;;  %v10292_v7 = vld [vmem:[#allocation212_spill] sm:$0xff] }
 0x215   :  { %5160 = vmatpush1.bf16.msra.mxu0 %v10285_v50  ;;  %v10291_v50 = vpack.c.bf16 %v10141_v62, %v10140_v38  ;;  %v10301_v62 = vld [vmem:[#allocation82_spill] sm:$0xff]  ;;  %v10305_v38 = vld [vmem:[#allocation85_spill] sm:$0xff] }
 0x216   :  { %5540 = vmatpush1.bf16.msra.mxu1 %v10283_v13  ;;  %5162 = vmatprep.subr.bf16.mxu0 %v10286_v14  ;;  %v10289_v13 = vpack.c.bf16 %v10139_v4, %v10138_v5  ;;  %v10293_v14 = vld [vmem:[#allocation46_spill] sm:$0xff] }
 0x217   :  { %5542 = vmatprep.subr.bf16.mxu1 %v10284_v9  ;;  %v10290_v9 = vld [vmem:[#allocation37_spill] sm:$0xff] }
 0x219   :  { %5164 = vmatpush1.bf16.msra.mxu0 %v10289_v13  ;;  %v10298_v13 = vld [vmem:[#allocation74_spill] sm:$0xff] }
 0x21a   :  { %5544 = vmatpush1.bf16.msra.mxu1 %v10287_v34  ;;  %5166 = vmatprep.subr.bf16.mxu0 %v10290_v9  ;;  %v10295_v34 = vld [vmem:[#allocation66_spill] sm:$0xff]  ;;  %v10299_v9 = vld [vmem:[#allocation80_spill] sm:$0xff] }
 0x21b   :  { %5546 = vmatprep.subr.bf16.mxu1 %v10288_v32  ;;  %v10297_v32 = vld [vmem:[#allocation54_spill] sm:$0xff] }
 0x21c   :  { %2731 = vmatmul.mubr.f32.vlgmr.msra.gmra.mrb[0].mxu0 %v10292_v7 }
 0x21d   :  { %5168 = vmatpush1.bf16.msra.mxu0 %v10294_v42  ;;  %2868 = vmatprep.mubr.f32.mxu0 %v10296_v35  ;;  %v10303_v42 = vld [vmem:[#allocation48_spill] sm:$0xff] }
 0x21e   :  { %5548 = vmatpush1.bf16.msra.mxu1 %v10291_v50  ;;  %5170 = vmatprep.subr.bf16.mxu0 %v10295_v34  ;;  %v10300_v50 = vld [vmem:[#allocation25_spill] sm:$0xff]  ;;  %v10304_v34 = vld [vmem:[#allocation88_spill] sm:$0xff] }
 0x21f   :  { %5550 = vmatprep.subr.bf16.mxu1 %v10293_v14  ;;  %v10302_v14 = vld [vmem:[#allocation27_spill] sm:$0xff] }
 0x221   :  { %4015 = vmatmul.mubr.f32.vlgmr.msra.gmra.mrb[0].mxu1 %v10292_v7  ;;  %5172 = vmatpush1.bf16.msra.mxu0 %v10299_v9  ;;  %v10306_v7 = vld [vmem:[#allocation91_spill] sm:$0xff]  ;;  %v10310_v9 = vld [vmem:[#allocation101_spill] sm:$0xff] }
 0x222   :  { %5552 = vmatpush1.bf16.msra.mxu1 %v10297_v32  ;;  %4152 = vmatprep.mubr.f32.mxu1 %v10296_v35  ;;  %v10307_v32 = vld [vmem:[#allocation94_spill] sm:$0xff]  ;;  %v10308_v35 = vld [vmem:[#allocation83_spill] sm:$0xff] }
 0x223   :  { %5554 = vmatprep.subr.bf16.mxu1 %v10298_v13  ;;  %5174 = vmatprep.subr.bf16.mxu0 %v10300_v50  ;;  %v10309_v13 = vld [vmem:[#allocation97_spill] sm:$0xff]  ;;  %v10311_v50 = vld [vmem:[#allocation104_spill] sm:$0xff] }
 0x225   :  { %5176 = vmatpush1.bf16.msra.mxu0 %v10303_v42  ;;  %v10314_v42 = vld [vmem:[#allocation113_spill] sm:$0xff] }
 0x226   :  { %5556 = vmatpush1.bf16.msra.mxu1 %v10301_v62  ;;  %5178 = vmatprep.subr.bf16.mxu0 %v10304_v34  ;;  %v10312_v62 = vld [vmem:[#allocation110_spill] sm:$0xff]  ;;  %v10315_v34 = vld [vmem:[#allocation116_spill] sm:$0xff] }
 0x227   :  { %5558 = vmatprep.subr.bf16.mxu1 %v10302_v14  ;;  %v10313_v14 = vld [vmem:[#allocation107_spill] sm:$0xff] }
 0x229   :  { %5180 = vmatpush1.bf16.msra.mxu0 %v10307_v32  ;;  %v10318_v32 = vld [vmem:[#allocation125_spill] sm:$0xff] }
 0x22a   :  { %5560 = vmatpush1.bf16.msra.mxu1 %v10305_v38  ;;  %5182 = vmatprep.subr.bf16.mxu0 %v10308_v35  ;;  %v10316_v38 = vld [vmem:[#allocation123_spill] sm:$0xff]  ;;  %v10319_v35 = vld [vmem:[#allocation128_spill] sm:$0xff] }
 0x22b   :  { %5562 = vmatprep.subr.bf16.mxu1 %v10306_v7  ;;  %v10317_v7 = vld [vmem:[#allocation119_spill] sm:$0xff] }
 0x22d   :  { %5184 = vmatpush1.bf16.msra.mxu0 %v10311_v50  ;;  %v10322_v50 = vld [vmem:[#allocation44_spill] sm:$0xff] }
 0x22e   :  { %5564 = vmatpush1.bf16.msra.mxu1 %v10309_v13  ;;  %5186 = vmatprep.subr.bf16.mxu0 %v10312_v62  ;;  %v10320_v13 = vld [vmem:[#allocation135_spill] sm:$0xff]  ;;  %v10323_v62 = vld [vmem:[#allocation138_spill] sm:$0xff] }
 0x22f   :  { %5566 = vmatprep.subr.bf16.mxu1 %v10310_v9  ;;  %v10321_v9 = vld [vmem:[#allocation131_spill] sm:$0xff] }
 0x231   :  { %5188 = vmatpush1.bf16.msra.mxu0 %v10315_v34  ;;  %v10326_v34 = vld [vmem:[#allocation19_spill] sm:$0xff] }
 0x232   :  { %5568 = vmatpush1.bf16.msra.mxu1 %v10313_v14  ;;  %5190 = vmatprep.subr.bf16.mxu0 %v10316_v38  ;;  %v10324_v14 = vld [vmem:[#allocation61_spill] sm:$0xff]  ;;  %v10327_v38 = vld [vmem:[#allocation146_spill] sm:$0xff] }
 0x233   :  { %5570 = vmatprep.subr.bf16.mxu1 %v10314_v42  ;;  %v10325_v42 = vld [vmem:[#allocation58_spill] sm:$0xff] }
 0x235   :  { %5192 = vmatpush1.bf16.msra.mxu0 %v10319_v35  ;;  %v10330_v35 = vld [vmem:[#allocation151_spill] sm:$0xff] }
 0x236   :  { %5572 = vmatpush1.bf16.msra.mxu1 %v10317_v7  ;;  %5194 = vmatprep.subr.bf16.mxu0 %v10320_v13  ;;  %v10328_v7 = vld [vmem:[#allocation148_spill] sm:$0xff]  ;;  %v10331_v13 = vld [vmem:[#allocation153_spill] sm:$0xff] }
 0x237   :  { %5574 = vmatprep.subr.bf16.mxu1 %v10318_v32  ;;  %v10329_v32 = vld [vmem:[#allocation21_spill] sm:$0xff] }
 0x239   :  { %5196 = vmatpush1.bf16.msra.mxu0 %v10323_v62  ;;  %v10334_v62 = vld [vmem:[#allocation161_spill] sm:$0xff] }
 0x23a   :  { %5576 = vmatpush1.bf16.msra.mxu1 %v10321_v9  ;;  %5198 = vmatprep.subr.bf16.mxu0 %v10324_v14  ;;  %v10332_v9 = vld [vmem:[#allocation159_spill] sm:$0xff]  ;;  %v10335_v14 = vld [vmem:[#allocation164_spill] sm:$0xff] }
 0x23b   :  { %5578 = vmatprep.subr.bf16.mxu1 %v10322_v50  ;;  %v10333_v50 = vld [vmem:[#allocation156_spill] sm:$0xff] }
 0x23d   :  { %5200 = vmatpush1.bf16.msra.mxu0 %v10327_v38  ;;  %v10338_v38 = vld [vmem:[#allocation173_spill] sm:$0xff] }
 0x23e   :  { %5580 = vmatpush1.bf16.msra.mxu1 %v10325_v42  ;;  %5202 = vmatprep.subr.bf16.mxu0 %v10328_v7  ;;  %v10336_v42 = vld [vmem:[#allocation171_spill] sm:$0xff]  ;;  %v10339_v7 = vld [vmem:[#allocation176_spill] sm:$0xff] }
 0x23f   :  { %5582 = vmatprep.subr.bf16.mxu1 %v10326_v34  ;;  %v10337_v34 = vld [vmem:[#allocation167_spill] sm:$0xff] }
 0x241   :  { %5204 = vmatpush1.bf16.msra.mxu0 %v10331_v13  ;;  %v10342_v13 = vld [vmem:[#allocation32_spill] sm:$0xff] }
 0x242   :  { %5584 = vmatpush1.bf16.msra.mxu1 %v10329_v32  ;;  %5206 = vmatprep.subr.bf16.mxu0 %v10332_v9  ;;  %v10340_v32 = vld [vmem:[#allocation178_spill] sm:$0xff]  ;;  %v10343_v9 = vld [vmem:[#allocation183_spill] sm:$0xff] }
 0x243   :  { %5586 = vmatprep.subr.bf16.mxu1 %v10330_v35  ;;  %v10341_v35 = vld [vmem:[#allocation31_spill] sm:$0xff] }
 0x245   :  { %5208 = vmatpush1.bf16.msra.mxu0 %v10335_v14  ;;  %v10346_v14 = vld [vmem:[#allocation36_spill] sm:$0xff] }
 0x246   :  { %5588 = vmatpush1.bf16.msra.mxu1 %v10333_v50  ;;  %5210 = vmatprep.subr.bf16.mxu0 %v10336_v42  ;;  %v10344_v50 = vld [vmem:[#allocation187_spill] sm:$0xff] }
 0x247   :  { %5590 = vmatprep.subr.bf16.mxu1 %v10334_v62  ;;  %v10345_v62 = vld [vmem:[#allocation35_spill] sm:$0xff] }
 0x248   :  { %v10347_v42 = vld [vmem:[#allocation51_spill] sm:$0xff] }
 0x249   :  { %5212 = vmatpush1.bf16.msra.mxu0 %v10339_v7  ;;  %v10350_v7 = vld [vmem:[#allocation198_spill] sm:$0xff] }
 0x24a   :  { %5592 = vmatpush1.bf16.msra.mxu1 %v10337_v34  ;;  %5214 = vmatprep.subr.bf16.mxu0 %v10340_v32  ;;  %v10348_v34 = vld [vmem:[#allocation196_spill] sm:$0xff] }
 0x24b   :  { %5594 = vmatprep.subr.bf16.mxu1 %v10338_v38  ;;  %v10349_v38 = vld [vmem:[#allocation193_spill] sm:$0xff]  ;;  %v10351_v32 = vld [vmem:[#allocation200_spill] sm:$0xff] }
 0x24d   :  { %5216 = vmatpush1.bf16.msra.mxu0 %v10343_v9  ;;  %v10353_v9 = vand.u32 4294901760, %v10158_v27  ;;  %v10362_v27 = vand.u32 4294901760, %v10164_v1  ;;  %v10370_v1 = vand.u32 4294901760, %v10171_v49  ;;  %v10378_v49 = vld [vmem:[#allocation29_spill] sm:$0xff] }
 0x24e   :  { %5596 = vmatpush1.bf16.msra.mxu1 %v10341_v35  ;;  %5218 = vmatprep.subr.bf16.mxu0 %v10344_v50  ;;  %v10352_v35 = vld [vmem:[#allocation203_spill] sm:$0xff]  ;;  %v10354_v50 = vand.u32 4294901760, %v10159_v63  ;;  %v10363_v63 = vand.u32 4294901760, %v10165_v46  ;;  %v10371_v46 = vand.u32 4294901760, %v10172_v45  ;;  %v10379_v45 = vand.u32 4294901760, %v10378_v49 }
 0x24f   :  { %5598 = vmatprep.subr.bf16.mxu1 %v10342_v13 }
 0x250   :  { %v5229_v13 = vpack.c.bf16 %v10354_v50, %v10353_v9  ;;  %v5233_v9 = vpack.c.bf16 %v10363_v63, %v10362_v27  ;;  %v10364_v50 = vld [vmem:[#allocation209_spill] sm:$0xff]  ;;  %v10382_v63 = vld [vmem:[#allocation18_spill] sm:$0xff] }
 0x251   :  { %5220 = vmatpush1.bf16.msra.mxu0 %v10347_v42  ;;  %v10357_v42 = vld [vmem:[#allocation206_spill] sm:$0xff] }
 0x252   :  { %5600 = vmatpush1.bf16.msra.mxu1 %v10345_v62  ;;  %5222 = vmatprep.subr.bf16.mxu0 %v10348_v34  ;;  %v10355_v62 = vld [vmem:[#allocation67_spill] sm:$0xff]  ;;  %v10358_v34 = vand.u32 4294901760, %v10160_v48  ;;  %v10366_v48 = vand.u32 4294901760, %v10167_v52  ;;  %v10373_v52 = vand.u32 4294901760, %v10174_v18 }
 0x253   :  { %5602 = vmatprep.subr.bf16.mxu1 %v10346_v14  ;;  %v10356_v14 = vld [vmem:[#allocation73_spill] sm:$0xff] }
 0x255   :  { %5224 = vmatpush1.bf16.msra.mxu0 %v10351_v32  ;;  %v10360_v32 = vand.u32 4294901760, %v10162_v28  ;;  %v10368_v28 = vand.u32 4294901760, %v10169_v36  ;;  %v10376_v36 = vld [vmem:[#allocation22_spill] sm:$0xff] }
 0x256   :  { %5604 = vmatpush1.bf16.msra.mxu1 %v10349_v38  ;;  %5226 = vmatprep.subr.bf16.mxu0 %v10352_v35  ;;  %v10359_v38 = vand.u32 4294901760, %v10161_v25  ;;  %v10361_v35 = vand.u32 4294901760, %v10163_v51  ;;  %v10367_v25 = vand.u32 4294901760, %v10168_v44  ;;  %v10369_v51 = vand.u32 4294901760, %v10170_v30  ;;  %v10374_v44 = vld [vmem:[#allocation185_spill] sm:$0xff] }
 0x257   :  { %5606 = vmatprep.subr.bf16.mxu1 %v10350_v7  ;;  %v10377_v30 = vand.u32 4294901760, %v10376_v36 }
 0x258   :  { %v5613_v7 = vpack.c.bf16 %v10359_v38, %v10358_v34  ;;  %v5231_v4 = vpack.c.bf16 %v10361_v35, %v10360_v32  ;;  %v5615_v38 = vpack.c.bf16 %v10367_v25, %v10366_v48  ;;  %v5617_v34 = vpack.c.bf16 %v10369_v51, %v10368_v28  ;;  %v10384_v48 = vld [vmem:[#allocation84_spill] sm:$0xff]  ;;  %v10388_v28 = vld [vmem:[#allocation90_spill] sm:$0xff] }
 0x259   :  { %5228 = vmatpush1.bf16.msra.mxu0 %v10357_v42  ;;  %v5235_v32 = vpack.c.bf16 %v10371_v46, %v10370_v1  ;;  %v10385_v25 = vand.u32 4294901760, %v10384_v48  ;;  %v10389_v51 = vand.u32 4294901760, %v10388_v28  ;;  %v10390_v46 = vld [vmem:[#allocation86_spill] sm:$0xff]  ;;  %v10402_v48 = vld [vmem:[#allocation99_spill] sm:$0xff] }
 0x25a   :  { %5608 = vmatpush1.bf16.msra.mxu1 %v10355_v62  ;;  %5230 = vmatprep.subr.bf16.mxu0 %v5229_v13  ;;  %v10372_v13 = vand.u32 4294901760, %v10173_v24  ;;  %v10380_v24 = vld [vmem:[#allocation17_spill] sm:$0xff]  ;;  %v10406_v28 = vld [vmem:[#allocation98_spill] sm:$0xff] }
 0x25b   :  { %5610 = vmatprep.subr.bf16.mxu1 %v10356_v14  ;;  %v10365_v14 = vld [vmem:[#allocation213_spill] sm:$0xff]  ;;  %v10381_v27 = vand.u32 4294901760, %v10380_v24  ;;  %v10398_v24 = vld [vmem:[#allocation95_spill] sm:$0xff] }
 0x25c   :  { %2872 = vmatmul.mubr.f32.vlgmr.msra.gmra.mrb[0].mxu0 %v10365_v14  ;;  %v5237_v35 = vpack.c.bf16 %v10373_v52, %v10372_v13 }
 0x25d   :  { %5232 = vmatpush1.bf16.msra.mxu0 %v5231_v4  ;;  %3135 = vmatprep.mubr.f32.mxu0 %v10374_v44  ;;  %v10375_v4 = vand.u32 4294901760, %v10176_v61  ;;  %v5621_v18 = vpack.c.bf16 %v10381_v27, %v10379_v45  ;;  %v10400_v27 = vld [vmem:[#allocation96_spill] sm:$0xff] }
 0x25e   :  { %5612 = vmatpush1.bf16.msra.mxu1 %v10364_v50  ;;  %5234 = vmatprep.subr.bf16.mxu0 %v5233_v9  ;;  %v10383_v9 = vand.u32 4294901760, %v10382_v63  ;;  %v10401_v63 = vand.u32 4294901760, %v10400_v27  ;;  %v10418_v27 = vld [vmem:[#allocation111_spill] sm:$0xff] }
 0x25f   :  { %5614 = vmatprep.subr.bf16.mxu1 %v5613_v7  ;;  %v5619_v7 = vpack.c.bf16 %v10377_v30, %v10375_v4  ;;  %v10394_v4 = vld [vmem:[#allocation92_spill] sm:$0xff]  ;;  %v10396_v30 = vld [vmem:[#allocation93_spill] sm:$0xff] }
 0x260   :  { %v10395_v36 = vand.u32 4294901760, %v10394_v4  ;;  %v10397_v49 = vand.u32 4294901760, %v10396_v30  ;;  %v10414_v30 = vld [vmem:[#allocation105_spill] sm:$0xff] }
 0x261   :  { %4156 = vmatmul.mubr.f32.vlgmr.msra.gmra.mrb[0].mxu1 %v10365_v14  ;;  %5236 = vmatpush1.bf16.msra.mxu0 %v5235_v32  ;;  %v5239_v14 = vpack.c.bf16 %v10385_v25, %v10383_v9  ;;  %v10392_v32 = vld [vmem:[#allocation87_spill] sm:$0xff]  ;;  %v10404_v25 = vld [vmem:[#allocation100_spill] sm:$0xff] }
 0x262   :  { %5616 = vmatpush1.bf16.msra.mxu1 %v5615_v38  ;;  %4419 = vmatprep.mubr.f32.mxu1 %v10374_v44  ;;  %v10386_v38 = vld [vmem:[#allocation89_spill] sm:$0xff]  ;;  %v10393_v13 = vand.u32 4294901760, %v10392_v32  ;;  %v5625_v45 = vpack.c.bf16 %v10397_v49, %v10395_v36  ;;  %v10416_v49 = vld [vmem:[#allocation106_spill] sm:$0xff] }
 0x263   :  { %5618 = vmatprep.subr.bf16.mxu1 %v5617_v34  ;;  %5238 = vmatprep.subr.bf16.mxu0 %v5237_v35  ;;  %v10387_v61 = vand.u32 4294901760, %v10386_v38  ;;  %v10391_v34 = vand.u32 4294901760, %v10390_v46  ;;  %v10399_v35 = vand.u32 4294901760, %v10398_v24  ;;  %v10405_v38 = vand.u32 4294901760, %v10404_v25  ;;  %v10422_v25 = vld [vmem:[#allocation108_spill] sm:$0xff] }
 0x264   :  { %v10417_v24 = vand.u32 4294901760, %v10416_v49  ;;  %v10434_v49 = vld [vmem:[#allocation122_spill] sm:$0xff] }
 0x265   :  { %v5241_v1 = vpack.c.bf16 %v10389_v51, %v10387_v61  ;;  %v5623_v52 = vpack.c.bf16 %v10393_v13, %v10391_v34  ;;  %5240 = vmatpush1.bf16.msra.mxu0 %v5239_v14  ;;  %v5243_v9 = vpack.c.bf16 %v10401_v63, %v10399_v35  ;;  %v10408_v14 = vld [vmem:[#allocation78_spill] sm:$0xff]  ;;  %v10412_v13 = vld [vmem:[#allocation103_spill] sm:$0xff]  ;;  %v10420_v63 = vld [vmem:[#allocation112_spill] sm:$0xff] }
 0x266   :  { %5620 = vmatpush1.bf16.msra.mxu1 %v5619_v7  ;;  %v10403_v7 = vand.u32 4294901760, %v10402_v48  ;;  %v10409_v51 = vand.u32 4294901760, %v10408_v14  ;;  %v10410_v34 = vld [vmem:[#allocation102_spill] sm:$0xff]  ;;  %v10413_v4 = vand.u32 4294901760, %v10412_v13  ;;  %v10421_v48 = vand.u32 4294901760, %v10420_v63  ;;  %v10430_v13 = vld [vmem:[#allocation117_spill] sm:$0xff] }
 0x267   :  { %5622 = vmatprep.subr.bf16.mxu1 %v5621_v18  ;;  %5242 = vmatprep.subr.bf16.mxu0 %v5241_v1  ;;  %v10407_v18 = vand.u32 4294901760, %v10406_v28  ;;  %v10411_v32 = vand.u32 4294901760, %v10410_v34  ;;  %v10415_v1 = vand.u32 4294901760, %v10414_v30  ;;  %v10438_v63 = vld [vmem:[#allocation120_spill] sm:$0xff] }
 0x268   :  { %v5245_v61 = vpack.c.bf16 %v10405_v38, %v10403_v7 }
 0x269   :  { %v5627_v46 = vpack.c.bf16 %v10409_v51, %v10407_v18  ;;  %5244 = vmatpush1.bf16.msra.mxu0 %v5243_v9  ;;  %v5629_v36 = vpack.c.bf16 %v10413_v4, %v10411_v32  ;;  %v5247_v35 = vpack.c.bf16 %v10417_v24, %v10415_v1  ;;  %v10424_v9 = vld [vmem:[#allocation109_spill] sm:$0xff]  ;;  %v10426_v18 = vld [vmem:[#allocation114_spill] sm:$0xff]  ;;  %v10428_v51 = vld [vmem:[#allocation115_spill] sm:$0xff] }
 0x26a   :  { %5624 = vmatpush1.bf16.msra.mxu1 %v5623_v52  ;;  %5246 = vmatprep.subr.bf16.mxu0 %v5245_v61  ;;  %v10419_v52 = vand.u32 4294901760, %v10418_v27  ;;  %v10425_v38 = vand.u32 4294901760, %v10424_v9  ;;  %v10427_v14 = vand.u32 4294901760, %v10426_v18  ;;  %v10429_v34 = vand.u32 4294901760, %v10428_v51  ;;  %v10432_v4 = vld [vmem:[#allocation118_spill] sm:$0xff]  ;;  %v10436_v24 = vld [vmem:[#allocation124_spill] sm:$0xff] }
 0x26b   :  { %5626 = vmatprep.subr.bf16.mxu1 %v5625_v45  ;;  %v10423_v45 = vand.u32 4294901760, %v10422_v25  ;;  %v10431_v61 = vand.u32 4294901760, %v10430_v13  ;;  %v10433_v30 = vand.u32 4294901760, %v10432_v4  ;;  %v10437_v27 = vand.u32 4294901760, %v10436_v24  ;;  %v10446_v51 = vld [vmem:[#allocation129_spill] sm:$0xff]  ;;  %v10451_v4 = vld [vmem:[#allocation136_spill] sm:$0xff] }
 0x26c   :  { %v5249_v7 = vpack.c.bf16 %v10421_v48, %v10419_v52  ;;  %v5633_v32 = vpack.c.bf16 %v10429_v34, %v10427_v14  ;;  %v10448_v34 = vld [vmem:[#allocation130_spill] sm:$0xff] }
 0x26d   :  { %v5631_v28 = vpack.c.bf16 %v10425_v38, %v10423_v45  ;;  %5248 = vmatpush1.bf16.msra.mxu0 %v5247_v35  ;;  %v5251_v1 = vpack.c.bf16 %v10433_v30, %v10431_v61  ;;  %v10440_v35 = vld [vmem:[#allocation121_spill] sm:$0xff]  ;;  %v10442_v45 = vld [vmem:[#allocation126_spill] sm:$0xff]  ;;  %v10444_v38 = vld [vmem:[#allocation127_spill] sm:$0xff]  ;;  %v10449_v13 = vand.u32 4294901760, %v10448_v34  ;;  %v10452_v30 = vand.u32 4294901760, %v10451_v4 }
 0x26e   :  { %5628 = vmatpush1.bf16.msra.mxu1 %v5627_v46  ;;  %5250 = vmatprep.subr.bf16.mxu0 %v5249_v7  ;;  %v10435_v46 = vand.u32 4294901760, %v10434_v49  ;;  %v10441_v48 = vand.u32 4294901760, %v10440_v35  ;;  %v10443_v9 = vand.u32 4294901760, %v10442_v45  ;;  %v10445_v18 = vand.u32 4294901760, %v10444_v38  ;;  %v10471_v34 = vld [vmem:[#allocation147_spill] sm:$0xff] }
 0x26f   :  { %5630 = vmatprep.subr.bf16.mxu1 %v5629_v36  ;;  %v10439_v36 = vand.u32 4294901760, %v10438_v63  ;;  %v10447_v7 = vand.u32 4294901760, %v10446_v51  ;;  %v10457_v63 = vand.u32 4294901760, %v10219_v43  ;;  %v10462_v45 = vand.u32 4294901760, %v10224_v56  ;;  %v10465_v43 = vld [vmem:[#allocation144_spill] sm:$0xff] }
 0x270   :  { %v5253_v52 = vpack.c.bf16 %v10437_v27, %v10435_v46  ;;  %v5637_v14 = vpack.c.bf16 %v10445_v18, %v10443_v9  ;;  %v10456_v27 = vand.u32 4294901760, %v10218_v10  ;;  %v10463_v9 = vld [vmem:[#allocation142_spill] sm:$0xff]  ;;  %v10466_v18 = vand.u32 4294901760, %v10465_v43  ;;  %v10469_v51 = vld [vmem:[#allocation64_spill] sm:$0xff] }
 0x271   :  { %v5635_v25 = vpack.c.bf16 %v10441_v48, %v10439_v36  ;;  %5252 = vmatpush1.bf16.msra.mxu0 %v5251_v1  ;;  %v5255_v61 = vpack.c.bf16 %v10449_v13, %v10447_v7  ;;  %v10454_v1 = vld [vmem:[#allocation133_spill] sm:$0xff]  ;;  %v10460_v48 = vand.u32 4294901760, %v10222_v19  ;;  %v10464_v38 = vand.u32 4294901760, %v10463_v9 }
 0x272   :  { %5632 = vmatpush1.bf16.msra.mxu1 %v5631_v28  ;;  %5254 = vmatprep.subr.bf16.mxu0 %v5253_v52  ;;  %v10450_v28 = vand.u32 4294901760, %v10214_v40  ;;  %v10455_v46 = vand.u32 4294901760, %v10454_v1  ;;  %v5641_v36 = vpack.c.bf16 %v10457_v63, %v10456_v27  ;;  %v10458_v52 = vand.u32 4294901760, %v10220_v37  ;;  %v10467_v37 = vld [vmem:[#allocation145_spill] sm:$0xff]  ;;  %v10483_v63 = vld [vmem:[#allocation40_spill] sm:$0xff] }
 0x273   :  { %5634 = vmatprep.subr.bf16.mxu1 %v5633_v32  ;;  %v10453_v32 = vand.u32 4294901760, %v10216_v59  ;;  %v10459_v40 = vand.u32 4294901760, %v10221_v20  ;;  %v10461_v59 = vand.u32 4294901760, %v10223_v6  ;;  %v5643_v10 = vpack.c.bf16 %v10464_v38, %v10462_v45  ;;  %v10473_v6 = vld [vmem:[#allocation149_spill] sm:$0xff]  ;;  %v10489_v45 = vld [vmem:[#allocation160_spill] sm:$0xff] }
 0x274   :  { %v5257_v49 = vpack.c.bf16 %v10452_v30, %v10450_v28  ;;  %v10470_v7 = vand.u32 4294901760, %v10469_v51  ;;  %v10472_v19 = vand.u32 4294901760, %v10471_v34  ;;  %v10475_v28 = vld [vmem:[#allocation150_spill] sm:$0xff]  ;;  %v10477_v30 = vld [vmem:[#allocation23_spill] sm:$0xff]  ;;  %v10490_v9 = vand.u32 4294901760, %v10489_v45  ;;  %v10491_v38 = vld [vmem:[#allocation81_spill] sm:$0xff] }
 0x275   :  { %v5639_v24 = vpack.c.bf16 %v10455_v46, %v10453_v32  ;;  %5256 = vmatpush1.bf16.msra.mxu0 %v5255_v61  ;;  %v5259_v35 = vpack.c.bf16 %v10459_v40, %v10458_v52  ;;  %v10474_v61 = vand.u32 4294901760, %v10473_v6  ;;  %v10476_v56 = vand.u32 4294901760, %v10475_v28  ;;  %v10479_v32 = vld [vmem:[#allocation41_spill] sm:$0xff]  ;;  %v10485_v40 = vld [vmem:[#allocation154_spill] sm:$0xff] }
 0x276   :  { %5636 = vmatpush1.bf16.msra.mxu1 %v5635_v25  ;;  %5258 = vmatprep.subr.bf16.mxu0 %v5257_v49  ;;  %v5261_v25 = vpack.c.bf16 %v10461_v59, %v10460_v48  ;;  %v5263_v13 = vpack.c.bf16 %v10472_v19, %v10470_v7  ;;  %v10478_v49 = vand.u32 4294901760, %v10477_v30  ;;  %v10480_v1 = vand.u32 4294901760, %v10479_v32  ;;  %v10487_v48 = vld [vmem:[#allocation155_spill] sm:$0xff]  ;;  %v10497_v7 = vld [vmem:[#allocation162_spill] sm:$0xff] }
 0x277   :  { %5638 = vmatprep.subr.bf16.mxu1 %v5637_v14  ;;  %v10468_v14 = vand.u32 4294901760, %v10467_v37  ;;  %v5265_v4 = vpack.c.bf16 %v10476_v56, %v10474_v61  ;;  %v10488_v59 = vand.u32 4294901760, %v10487_v48  ;;  %v10498_v34 = vand.u32 4294901760, %v10497_v7  ;;  %v10499_v19 = vld [vmem:[#allocation163_spill] sm:$0xff]  ;;  %v10501_v61 = vld [vmem:[#allocation165_spill] sm:$0xff]  ;;  %v10503_v56 = vld [vmem:[#allocation166_spill] sm:$0xff] }
 0x278   :  { %v5647_v46 = vpack.c.bf16 %v10480_v1, %v10478_v49  ;;  %v10502_v28 = vand.u32 4294901760, %v10501_v61  ;;  %v10505_v49 = vld [vmem:[#allocation170_spill] sm:$0xff]  ;;  %v10507_v1 = vld [vmem:[#allocation172_spill] sm:$0xff]  ;;  %v10524_v7 = vand.u32 4294901760, %v10265_v0  ;;  %v10528_v61 = vand.u32 4294901760, %v10267_v39 }
 0x279   :  { %5260 = vmatpush1.bf16.msra.mxu0 %v5259_v35  ;;  %v5645_v20 = vpack.c.bf16 %v10468_v14, %v10466_v18  ;;  %v10486_v35 = vand.u32 4294901760, %v10485_v40  ;;  %v10493_v18 = vld [vmem:[#allocation157_spill] sm:$0xff]  ;;  %v10495_v14 = vld [vmem:[#allocation158_spill] sm:$0xff]  ;;  %v10506_v32 = vand.u32 4294901760, %v10505_v49  ;;  %v10532_v0 = vand.u32 4294901760, %v10273_v11 }
 0x27a   :  { %5640 = vmatpush1.bf16.msra.mxu1 %v5639_v24  ;;  %5262 = vmatprep.subr.bf16.mxu0 %v5261_v25  ;;  %v10481_v24 = vld [vmem:[#allocation152_spill] sm:$0xff]  ;;  %v10494_v37 = vand.u32 4294901760, %v10493_v18  ;;  %v10535_v39 = vand.u32 4294901760, %v10279_v29  ;;  %v10539_v11 = vand.u32 4294901760, %v10121_v31  ;;  %v10546_v31 = vand.u32 4294901760, %v10126_v55 }
 0x27b   :  { %5642 = vmatprep.subr.bf16.mxu1 %v5641_v36  ;;  %v10482_v27 = vand.u32 4294901760, %v10481_v24  ;;  %v10484_v36 = vand.u32 4294901760, %v10483_v63  ;;  %v5267_v25 = vpack.c.bf16 %v10488_v59, %v10486_v35  ;;  %v10513_v35 = vld [vmem:[#allocation174_spill] sm:$0xff]  ;;  %v10515_v59 = vld [vmem:[#allocation175_spill] sm:$0xff] }
 0x27c   :  { %v10514_v48 = vand.u32 4294901760, %v10513_v35 }
 0x27d   :  { %5264 = vmatpush1.bf16.msra.mxu0 %v5263_v13  ;;  %v5649_v52 = vpack.c.bf16 %v10484_v36, %v10482_v27  ;;  %v10500_v13 = vand.u32 4294901760, %v10499_v19  ;;  %v10509_v27 = vld [vmem:[#allocation168_spill] sm:$0xff]  ;;  %v10511_v36 = vld [vmem:[#allocation169_spill] sm:$0xff] }
 0x27e   :  { %5644 = vmatpush1.bf16.msra.mxu1 %v5643_v10  ;;  %5266 = vmatprep.subr.bf16.mxu0 %v5265_v4  ;;  %v10492_v10 = vand.u32 4294901760, %v10491_v38  ;;  %v10504_v4 = vand.u32 4294901760, %v10503_v56  ;;  %v10510_v63 = vand.u32 4294901760, %v10509_v27  ;;  %v10529_v56 = vand.u32 4294901760, %v10271_v47 }
 0x27f   :  { %5646 = vmatprep.subr.bf16.mxu1 %v5645_v20  ;;  %v10496_v20 = vand.u32 4294901760, %v10495_v14  ;;  %v5653_v6 = vpack.c.bf16 %v10500_v13, %v10498_v34  ;;  %v10522_v14 = vld [vmem:[#allocation180_spill] sm:$0xff]  ;;  %v10525_v34 = vld [vmem:[#allocation33_spill] sm:$0xff]  ;;  %v10536_v47 = vand.u32 4294901760, %v10115_v21  ;;  %v10543_v21 = vand.u32 4294901760, %v10123_v15 }
 0x280   :  { %v5269_v43 = vpack.c.bf16 %v10492_v10, %v10490_v9  ;;  %v5271_v30 = vpack.c.bf16 %v10504_v4, %v10502_v28  ;;  %v10517_v9 = vld [vmem:[#allocation177_spill] sm:$0xff]  ;;  %v10519_v10 = vld [vmem:[#allocation28_spill] sm:$0xff]  ;;  %v10526_v19 = vand.u32 4294901760, %v10525_v34  ;;  %v10569_v34 = vld [vmem:[#allocation74_spill] sm:$0xff] }
 0x281   :  { %v5651_v51 = vpack.c.bf16 %v10496_v20, %v10494_v37  ;;  %5268 = vmatpush1.bf16.msra.mxu0 %v5267_v25  ;;  %v10516_v25 = vand.u32 4294901760, %v10515_v59  ;;  %v10518_v38 = vand.u32 4294901760, %v10517_v9  ;;  %v10521_v37 = vand.u32 4294901760, %v10262_v41  ;;  %v10557_v9 = vld [vmem:[#allocation208_spill] sm:$0xff] }
 0x282   :  { %5648 = vmatpush1.bf16.msra.mxu1 %v5647_v46  ;;  %5270 = vmatprep.subr.bf16.mxu0 %v5269_v43  ;;  %v10508_v46 = vand.u32 4294901760, %v10507_v1  ;;  %v10520_v43 = vand.u32 4294901760, %v10519_v10  ;;  %v10523_v20 = vand.u32 4294901760, %v10522_v14  ;;  %v5659_v13 = vpack.c.bf16 %v10526_v19, %v10524_v7  ;;  %v10559_v10 = vld [vmem:[#allocation210_spill] sm:$0xff]  ;;  %v10563_v14 = vld [vmem:[#allocation37_spill] sm:$0xff]  ;;  %v10570_v19 = vld [vmem:[#allocation80_spill] sm:$0xff] }
 0x283   :  { %5650 = vmatprep.subr.bf16.mxu1 %v5649_v52  ;;  %v10512_v52 = vand.u32 4294901760, %v10511_v36  ;;  %v5657_v45 = vpack.c.bf16 %v10516_v25, %v10514_v48  ;;  %v10530_v41 = vand.u32 4294901760, %v10270_v22  ;;  %v10534_v1 = vand.u32 4294901760, %v10276_v26  ;;  %v10551_v48 = vld [vmem:[#allocation68_spill] sm:$0xff]  ;;  %v10568_v7 = vld [vmem:[#allocation54_spill] sm:$0xff] }
 0x284   :  { %v5273_v24 = vpack.c.bf16 %v10508_v46, %v10506_v32  ;;  %v5275_v18 = vpack.c.bf16 %v10520_v43, %v10518_v38  ;;  %v10533_v32 = vand.u32 4294901760, %v10277_v2  ;;  %v5665_v22 = vpack.c.bf16 %v10536_v47, %v10535_v39  ;;  %v10585_v39 = vld [vmem:[#allocation113_spill] sm:$0xff]  ;;  %v10586_v47 = vld [vmem:[#allocation116_spill] sm:$0xff] }
 0x285   :  { %v5655_v40 = vpack.c.bf16 %v10512_v52, %v10510_v63  ;;  %5272 = vmatpush1.bf16.msra.mxu0 %v5271_v30  ;;  %v5279_v4 = vpack.c.bf16 %v10530_v41, %v10529_v56  ;;  %v10531_v30 = vand.u32 4294901760, %v10274_v8  ;;  %v10537_v46 = vand.u32 4294901760, %v10116_v16  ;;  %v10575_v56 = vld [vmem:[#allocation88_spill] sm:$0xff]  ;;  %v10576_v41 = vld [vmem:[#allocation85_spill] sm:$0xff] }
 0x286   :  { %5652 = vmatpush1.bf16.msra.mxu1 %v5651_v51  ;;  %5274 = vmatprep.subr.bf16.mxu0 %v5273_v24  ;;  %v5277_v51 = vpack.c.bf16 %v10523_v20, %v10521_v37  ;;  %v10538_v8 = vand.u32 4294901760, %v10117_v57  ;;  %v10540_v2 = vand.u32 4294901760, %v10122_v23  ;;  %v10541_v26 = vand.u32 4294901760, %v10119_v58  ;;  %v10565_v20 = vld [vmem:[#allocation46_spill] sm:$0xff] }
 0x287   :  { %5654 = vmatprep.subr.bf16.mxu1 %v5653_v6  ;;  %v10527_v6 = vand.u32 4294901760, %v10268_v53  ;;  %v5281_v49 = vpack.c.bf16 %v10532_v0, %v10531_v30  ;;  %v5663_v53 = vpack.c.bf16 %v10534_v1, %v10533_v32  ;;  %v10542_v63 = vand.u32 4294901760, %v10120_v33  ;;  %v10578_v30 = vld [vmem:[#allocation94_spill] sm:$0xff]  ;;  %v10580_v0 = vld [vmem:[#allocation97_spill] sm:$0xff]  ;;  %v10582_v32 = vld [vmem:[#allocation104_spill] sm:$0xff] }
 0x288   :  { %v5283_v24 = vpack.c.bf16 %v10538_v8, %v10537_v46  ;;  %v5285_v27 = vpack.c.bf16 %v10540_v2, %v10539_v11  ;;  %v10544_v16 = vand.u32 4294901760, %v10124_v12  ;;  %v10545_v36 = vand.u32 4294901760, %v10125_v54  ;;  %v10554_v54 = vld [vmem:[#allocation75_spill] sm:$0xff]  ;;  %v10583_v1 = vld [vmem:[#allocation110_spill] sm:$0xff]  ;;  %v10589_v8 = vld [vmem:[#allocation125_spill] sm:$0xff] }
 0x289   :  { %5276 = vmatpush1.bf16.msra.mxu0 %v5275_v18  ;;  %v5661_v28 = vpack.c.bf16 %v10528_v61, %v10527_v6  ;;  %v5667_v29 = vpack.c.bf16 %v10542_v63, %v10541_v26  ;;  %v10547_v23 = vand.u32 4294901760, %v10131_v17  ;;  %v10550_v33 = vand.u32 4294901760, %v10129_v3  ;;  %v10561_v3 = vld [vmem:[#allocation211_spill] sm:$0xff]  ;;  %v10572_v6 = vld [vmem:[#allocation82_spill] sm:$0xff]  ;;  %v10595_v63 = vld [vmem:[#allocation61_spill] sm:$0xff] }
 0x28a   :  { %5656 = vmatpush1.bf16.msra.mxu1 %v5655_v40  ;;  %5278 = vmatprep.subr.bf16.mxu0 %v5277_v51  ;;  %v5669_v57 = vpack.c.bf16 %v10544_v16, %v10543_v21  ;;  %v5287_v52 = vpack.c.bf16 %v10546_v31, %v10545_v36  ;;  %v10548_v40 = vld [vmem:[#allocation204_spill] sm:$0xff]  ;;  %v10552_v59 = vand.u32 4294901760, %v10551_v48  ;;  %v10553_v12 = vand.u32 4294901760, %v10133_v60  ;;  %v10564_v60 = vld [vmem:[#allocation205_spill] sm:$0xff]  ;;  %v10567_v51 = vld [vmem:[#allocation66_spill] sm:$0xff] }
 0x28b   :  { %5658 = vmatprep.subr.bf16.mxu1 %v5657_v45  ;;  %v10549_v58 = vand.u32 4294901760, %v10548_v40  ;;  %v10555_v25 = vand.u32 4294901760, %v10554_v54  ;;  %v10556_v45 = vand.u32 4294901760, %v10138_v5  ;;  %v10558_v17 = vand.u32 4294901760, %v10557_v9  ;;  %v10566_v5 = vld [vmem:[#allocation50_spill] sm:$0xff]  ;;  %v10573_v61 = vld [vmem:[#allocation27_spill] sm:$0xff] }
 0x28c   :  { %v5671_v15 = vpack.c.bf16 %v10552_v59, %v10550_v33  ;;  %v10560_v43 = vand.u32 4294901760, %v10559_v10  ;;  %v10562_v18 = vand.u32 4294901760, %v10561_v3  ;;  %v10588_v46 = vld [vmem:[#allocation119_spill] sm:$0xff]  ;;  %v10594_v26 = vld [vmem:[#allocation138_spill] sm:$0xff]  ;;  %v10600_v36 = vld [vmem:[#allocation21_spill] sm:$0xff] }
 0x28d   :  { %5280 = vmatpush1.bf16.msra.mxu0 %v5279_v4  ;;  %v5289_v35 = vpack.c.bf16 %v10549_v58, %v10547_v23  ;;  %v5673_v55 = vpack.c.bf16 %v10555_v25, %v10553_v12  ;;  %v5291_v38 = vpack.c.bf16 %v10558_v17, %v10556_v45  ;;  %v10577_v4 = vld [vmem:[#allocation91_spill] sm:$0xff]  ;;  %v10598_v16 = vld [vmem:[#allocation146_spill] sm:$0xff]  ;;  %v10604_v40 = vld [vmem:[#allocation156_spill] sm:$0xff] }
 0x28e   :  { %5660 = vmatpush1.bf16.msra.mxu1 %v5659_v13  ;;  %5282 = vmatprep.subr.bf16.mxu0 %v5281_v49  ;;  %v5675_v37 = vpack.c.bf16 %v10562_v18, %v10560_v43  ;;  %v10571_v13 = vld [vmem:[#allocation25_spill] sm:$0xff]  ;;  %v10591_v11 = vld [vmem:[#allocation135_spill] sm:$0xff]  ;;  %v10611_v12 = vld [vmem:[#allocation178_spill] sm:$0xff] }
 0x28f   :  { %5662 = vmatprep.subr.bf16.mxu1 %v5661_v28  ;;  %v10574_v28 = vld [vmem:[#allocation48_spill] sm:$0xff]  ;;  %v10581_v49 = vld [vmem:[#allocation101_spill] sm:$0xff]  ;;  %v10592_v2 = vld [vmem:[#allocation131_spill] sm:$0xff] }
 0x290   :  { %v10597_v21 = vld [vmem:[#allocation19_spill] sm:$0xff]  ;;  %v10605_v58 = vld [vmem:[#allocation161_spill] sm:$0xff]  ;;  %v10613_v25 = vld [vmem:[#allocation32_spill] sm:$0xff] }
 0x291   :  { %5284 = vmatpush1.bf16.msra.mxu0 %v5283_v24  ;;  %v10590_v24 = vld [vmem:[#allocation128_spill] sm:$0xff]  ;;  %v10601_v31 = vld [vmem:[#allocation151_spill] sm:$0xff]  ;;  %v10609_v59 = vld [vmem:[#allocation173_spill] sm:$0xff] }
 0x292   :  { %5664 = vmatpush1.bf16.msra.mxu1 %v5663_v53  ;;  %5286 = vmatprep.subr.bf16.mxu0 %v5285_v27  ;;  %v10584_v53 = vld [vmem:[#allocation107_spill] sm:$0xff]  ;;  %v10593_v27 = vld [vmem:[#allocation44_spill] sm:$0xff]  ;;  %v10620_v43 = vld [vmem:[#allocation193_spill] sm:$0xff] }
 0x293   :  { %5666 = vmatprep.subr.bf16.mxu1 %v5665_v22  ;;  %v10587_v22 = vld [vmem:[#allocation123_spill] sm:$0xff]  ;;  %v10617_v17 = vld [vmem:[#allocation36_spill] sm:$0xff]  ;;  %v10621_v3 = vld [vmem:[#allocation198_spill] sm:$0xff] }
 0x294   :  { %v10603_v23 = vld [vmem:[#allocation159_spill] sm:$0xff]  ;;  %v10619_v10 = vld [vmem:[#allocation196_spill] sm:$0xff] }
 0x295   :  { %5288 = vmatpush1.bf16.msra.mxu0 %v5287_v52  ;;  %v10602_v52 = vld [vmem:[#allocation153_spill] sm:$0xff]  ;;  %v10607_v33 = vld [vmem:[#allocation171_spill] sm:$0xff]  ;;  %v10622_v18 = vld [vmem:[#allocation200_spill] sm:$0xff] }
 0x296   :  { %5668 = vmatpush1.bf16.msra.mxu1 %v5667_v29  ;;  %5290 = vmatprep.subr.bf16.mxu0 %v5289_v35  ;;  %v10596_v29 = vld [vmem:[#allocation58_spill] sm:$0xff]  ;;  %v10606_v35 = vld [vmem:[#allocation164_spill] sm:$0xff]  ;;  %v10608_v48 = vld [vmem:[#allocation167_spill] sm:$0xff] }
 0x297   :  { %5670 = vmatprep.subr.bf16.mxu1 %v5669_v57  ;;  %v10599_v57 = vld [vmem:[#allocation148_spill] sm:$0xff]  ;;  %v10612_v54 = vld [vmem:[#allocation31_spill] sm:$0xff] }
 0x298   :  { %v10615_v45 = vld [vmem:[#allocation187_spill] sm:$0xff] }
 0x299   :  { %5292 = vmatpush1.bf16.msra.mxu0 %v5291_v38  ;;  %v10616_v9 = vld [vmem:[#allocation35_spill] sm:$0xff] }
 0x29a   :  { %5672 = vmatpush1.bf16.msra.mxu1 %v5671_v15  ;;  %5294 = vmatprep.subr.bf16.mxu0 %v10563_v14  ;;  %v10610_v15 = vld [vmem:[#allocation176_spill] sm:$0xff]  ;;  %v10618_v38 = vld [vmem:[#allocation51_spill] sm:$0xff]  ;;  %v10624_v14 = vld [vmem:[#allocation73_spill] sm:$0xff] }
 0x29b   :  { %5674 = vmatprep.subr.bf16.mxu1 %v5673_v55  ;;  %v10614_v55 = vld [vmem:[#allocation183_spill] sm:$0xff] }
 0x29c   :  { %3137 = vmatmul.mubr.f32.vlgmr.msra.gmra.mrb[0].mxu0 %v10564_v60 }
 0x29d   :  { %5296 = vmatpush1.bf16.msra.mxu0 %v10566_v5  ;;  %3272 = vmatprep.mubr.f32.mxu0 %v10374_v44 }
 0x29e   :  { %5676 = vmatpush1.bf16.msra.mxu1 %v5675_v37  ;;  %5298 = vmatprep.subr.bf16.mxu0 %v10567_v51  ;;  %v10623_v37 = vld [vmem:[#allocation203_spill] sm:$0xff] }
 0x29f   :  { %5678 = vmatprep.subr.bf16.mxu1 %v10565_v20 }
 0x2a1   :  { %4421 = vmatmul.mubr.f32.vlgmr.msra.gmra.mrb[0].mxu1 %v10564_v60  ;;  %5300 = vmatpush1.bf16.msra.mxu0 %v10570_v19 }
 0x2a2   :  { %5680 = vmatpush1.bf16.msra.mxu1 %v10568_v7  ;;  %4556 = vmatprep.mubr.f32.mxu1 %v10374_v44  ;;  %v10579_v44 = vld [vmem:[#allocation83_spill] sm:$0xff] }
 0x2a3   :  { %5682 = vmatprep.subr.bf16.mxu1 %v10569_v34  ;;  %5302 = vmatprep.subr.bf16.mxu0 %v10571_v13 }
 0x2a5   :  { %5304 = vmatpush1.bf16.msra.mxu0 %v10574_v28 }
 0x2a6   :  { %5684 = vmatpush1.bf16.msra.mxu1 %v10572_v6  ;;  %5306 = vmatprep.subr.bf16.mxu0 %v10575_v56 }
 0x2a7   :  { %5686 = vmatprep.subr.bf16.mxu1 %v10573_v61 }
 0x2a9   :  { %5308 = vmatpush1.bf16.msra.mxu0 %v10578_v30 }
 0x2aa   :  { %5688 = vmatpush1.bf16.msra.mxu1 %v10576_v41  ;;  %5310 = vmatprep.subr.bf16.mxu0 %v10579_v44 }
 0x2ab   :  { %5690 = vmatprep.subr.bf16.mxu1 %v10577_v4 }
 0x2ad   :  { %5312 = vmatpush1.bf16.msra.mxu0 %v10582_v32 }
 0x2ae   :  { %5692 = vmatpush1.bf16.msra.mxu1 %v10580_v0  ;;  %5314 = vmatprep.subr.bf16.mxu0 %v10583_v1 }
 0x2af   :  { %5694 = vmatprep.subr.bf16.mxu1 %v10581_v49 }
 0x2b1   :  { %5316 = vmatpush1.bf16.msra.mxu0 %v10586_v47 }
 0x2b2   :  { %5696 = vmatpush1.bf16.msra.mxu1 %v10584_v53  ;;  %5318 = vmatprep.subr.bf16.mxu0 %v10587_v22 }
 0x2b3   :  { %5698 = vmatprep.subr.bf16.mxu1 %v10585_v39 }
 0x2b5   :  { %5320 = vmatpush1.bf16.msra.mxu0 %v10590_v24 }
 0x2b6   :  { %5700 = vmatpush1.bf16.msra.mxu1 %v10588_v46  ;;  %5322 = vmatprep.subr.bf16.mxu0 %v10591_v11 }
 0x2b7   :  { %5702 = vmatprep.subr.bf16.mxu1 %v10589_v8 }
 0x2b9   :  { %5324 = vmatpush1.bf16.msra.mxu0 %v10594_v26 }
 0x2ba   :  { %5704 = vmatpush1.bf16.msra.mxu1 %v10592_v2  ;;  %5326 = vmatprep.subr.bf16.mxu0 %v10595_v63 }
 0x2bb   :  { %5706 = vmatprep.subr.bf16.mxu1 %v10593_v27 }
 0x2bd   :  { %5328 = vmatpush1.bf16.msra.mxu0 %v10598_v16 }
 0x2be   :  { %5708 = vmatpush1.bf16.msra.mxu1 %v10596_v29  ;;  %5330 = vmatprep.subr.bf16.mxu0 %v10599_v57 }
 0x2bf   :  { %5710 = vmatprep.subr.bf16.mxu1 %v10597_v21 }
 0x2c1   :  { %5332 = vmatpush1.bf16.msra.mxu0 %v10602_v52 }
 0x2c2   :  { %5712 = vmatpush1.bf16.msra.mxu1 %v10600_v36  ;;  %5334 = vmatprep.subr.bf16.mxu0 %v10603_v23 }
 0x2c3   :  { %5714 = vmatprep.subr.bf16.mxu1 %v10601_v31 }
 0x2c5   :  { %5336 = vmatpush1.bf16.msra.mxu0 %v10606_v35 }
 0x2c6   :  { %5716 = vmatpush1.bf16.msra.mxu1 %v10604_v40  ;;  %5338 = vmatprep.subr.bf16.mxu0 %v10607_v33 }
 0x2c7   :  { %5718 = vmatprep.subr.bf16.mxu1 %v10605_v58 }
 0x2c9   :  { %5340 = vmatpush1.bf16.msra.mxu0 %v10610_v15 }
 0x2ca   :  { %5720 = vmatpush1.bf16.msra.mxu1 %v10608_v48  ;;  %5342 = vmatprep.subr.bf16.mxu0 %v10611_v12 }
 0x2cb   :  { %5722 = vmatprep.subr.bf16.mxu1 %v10609_v59 }
 0x2cd   :  { %5344 = vmatpush1.bf16.msra.mxu0 %v10614_v55 }
 0x2ce   :  { %5724 = vmatpush1.bf16.msra.mxu1 %v10612_v54  ;;  %5346 = vmatprep.subr.bf16.mxu0 %v10615_v45 }
 0x2cf   :  { %5726 = vmatprep.subr.bf16.mxu1 %v10613_v25 }
 0x2d1   :  { %5348 = vmatpush1.bf16.msra.mxu0 %v10618_v38 }
 0x2d2   :  { %5728 = vmatpush1.bf16.msra.mxu1 %v10616_v9  ;;  %5350 = vmatprep.subr.bf16.mxu0 %v10619_v10 }
 0x2d3   :  { %5730 = vmatprep.subr.bf16.mxu1 %v10617_v17 }
 0x2d5   :  { %5352 = vmatpush1.bf16.msra.mxu0 %v10622_v18 }
 0x2d6   :  { %5732 = vmatpush1.bf16.msra.mxu1 %v10620_v43  ;;  %5354 = vmatprep.subr.bf16.mxu0 %v10623_v37 }
 0x2d7   :  { %5734 = vmatprep.subr.bf16.mxu1 %v10621_v3 }
 0x2d9   :  { %5356 = vmatpush1.bf16.msra.mxu0 %v10357_v42 }
 0x2da   :  { %5736 = vmatpush1.bf16.msra.mxu1 %v10355_v62 }
 0x2db   :  { %5738 = vmatprep.subr.bf16.mxu1 %v10624_v14 }
 0x2dc   :  { %3274 = vmatmul.mubr.f32.vlgmr.msra.gmra.mrb[0].mxu0 %v10564_v60 }
 0x2de   :  { %5740 = vmatpush1.bf16.msra.mxu1 %v10364_v50 }
 0x2e1   :  { %4558 = vmatmul.mubr.f32.vlgmr.msra.gmra.mrb[0].mxu1 %v10564_v60 }
 0x3af   :  { %v3275_v20 = vpop.f32.mrb[0].mxu0 }
 0x3b0   :  { %4564 = vst [vmem:[#allocation11] sm:$0xff] %v3275_v20  ;;  %v3277_v5 = vpop.f32.mrb[1].mxu0 }
 0x3b1   :  { %4565 = vst [vmem:[#allocation11 + $0x8] sm:$0xff] %v3277_v5 }
 0x3b4   :  { %v4559_v51 = vpop.f32.mrb[0].mxu1 }
 0x3b5   :  { %4567 = vst [vmem:[#allocation11 + $0x10] sm:$0xff] %v4559_v51  ;;  %v4561_v62 = vpop.f32.mrb[1].mxu1 }
 0x3b6   :  { %4568 = vst [vmem:[#allocation11 + $0x18] sm:$0xff] %v4561_v62 }
 0x3b7   :  { %5920 = shalt.err (!%p5917_p8)
}
 0x3b8   :  { %s5921_s30 = scalar_lea.hbm %s8818_s5, 512 }
 0x3b9   :  { %p5922_p9 = scmp.ne.s32.totalorder %s8818_s5, %s5921_s30  ;;  %p5925_p10 = scmp.lt.u32.totalorder %s5921_s30, %s8818_s5 }
 0x3bb   :  { %p5927_p11 = pnand %p5925_p10, %p5922_p9 }
 0x3bd   :  { %5930 = shalt.err (!%p5927_p11)
}
 0x3be   :  { %s5948_s10 = smov 256   ;;  %s5949_s11 = smov 16  }
 0x3bf   :  { %4580 = dma.vmem_to_hbm [thread:$0]  %s4575_s15, 512, %s8818_s5, [#allocation4], %s5948_s10, %s5948_s10, %s5949_s11  }
 0x3c0   :  { %5937 = dma.done.wait [#allocation4], 512  }
 0x3c1   :  { %5938 = vsyncadd [#allocation4], 4294966784 }
 0x3c2   :  { %4584 = vsyncpa [#allocation3], 1 }
 0x3c3   :  { %4585 = vsyncpa [#allocation6], 1 }
 0x3c4   :  { %4586 = vsyncpa [#allocation9], 1 }
 0x3c5   :  { %4587 = vsyncpa [#allocation4], 1 }

</bundles_post_ra>
